<compile_context>
chip_gen: v7x
topology: tpu7x:2x2x1
jax: 0.10.0
libtpu: 0.0.40
codegen_flags: <defaults>
</compile_context>

<pallas_src>
import numpy as np
import jax
import jax.numpy as jnp
from jax.experimental import pallas as pl
from jax.experimental.pallas import tpu as pltpu


# --------------------------------------------------------------------------
# Fused kernel
# --------------------------------------------------------------------------
def _make_cldnn_kernel(*, S, W, Wp, HCo, HID, KW, L, D, Nb):
    """All sizes are Python ints baked into the closure."""

    def kernel(len_ref,                      # SMEM (N,) int32  (scalar prefetch)
               x_ref,                        # (1, S*Wp*Nb, Hp*C) padded input rows
               wband_ref,                    # (S*KW, Hp*C, H*Co) banded conv weights
               convb_ref,                    # (S, 1, H*Co)
               wd_ref, bd_ref,               # (S*H*Co, HID), (1, HID)
               wih_ref, whh_ref, blstm_ref,  # (L, HID, 4H), (L, HID, 4H), (L, 1, 4H)
               roww_ref, rownb_ref,          # (Nb*W, HID) int32 row->w / row->nb maps
               *refs):
        it = iter(refs)
        dnn_w = [next(it) for _ in range(D)]
        dnn_b = [next(it) for _ in range(D)]
        out_ref = next(it)                   # (1, Nb*W, OUT_PAD)
        feat_ref = next(it)                  # (Nb*W, S*H*Co)
        seq_ref = next(it)                   # (Nb*W, HID)
        gat_ref = next(it)                   # (Nb*W, 4*HID)

        R = W * Nb                           # rows, ordered r = w*Nb + nb

        # ------------- per-stream 'same' Conv2d + ReLU ----------------------
        # One (R, Hp*C) x (Hp*C, H*Co) matmul per (stream, kw); the banded RHS
        # encodes the KH taps, so there is no im2col scatter at all.
        for s in range(S):
            y = None
            for kw in range(KW):
                lo = s * Wp * Nb + kw * Nb
                part = jnp.dot(x_ref[0, lo:lo + R], wband_ref[s * KW + kw],
                               preferred_element_type=jnp.float32)
                y = part if y is None else y + part
            y = jnp.maximum(y + convb_ref[s], 0.0)               # (R, H*Co)
            # lane-aligned feature-slab store (offset is a multiple of H*Co)
            feat_ref[:, s * HCo:(s + 1) * HCo] = y

        # ------------- dim_reduce: per-timestep 1x1 Conv1d == one matmul ----
        seq_ref[...] = (jnp.dot(feat_ref[...], wd_ref[...],
                                preferred_element_type=jnp.float32) + bd_ref[...])

        # ------------- LSTM stack (batched recurrence, M = Nb) --------------
        for l in range(L):
            # All-timestep input projections hoisted out of the recurrence.
            # NOTE: gat_ref must be fully written from seq_ref BEFORE the loop
            # below overwrites seq_ref in place.
            gat_ref[...] = (jnp.dot(seq_ref[...], wih_ref[l],
                                    preferred_element_type=jnp.float32)
                            + blstm_ref[l])
            whh = whh_ref[l]                                     # (HID, 4*HID)
            h = jnp.zeros((Nb, HID), jnp.float32)
            c = jnp.zeros((Nb, HID), jnp.float32)
            for t in range(W):                                   # static unroll
                g = gat_ref[t * Nb:(t + 1) * Nb] + jnp.dot(
                    h, whh, preferred_element_type=jnp.float32)  # (Nb, 4H)
                sg = jax.nn.sigmoid(g)                           # one pass over 4H
                i_g = sg[:, 0:HID]
                f_g = sg[:, HID:2 * HID]
                o_g = sg[:, 3 * HID:4 * HID]
                g_g = jnp.tanh(g[:, 2 * HID:3 * HID])
                c = f_g * c + i_g * g_g
                h = o_g * jnp.tanh(c)
                seq_ref[t * Nb:(t + 1) * Nb] = h

        # ---- pack_padded / pad_packed semantics: zero timesteps >= length ---
        base = pl.program_id(0) * Nb
        lens = jnp.zeros((R, HID), jnp.int32)
        for nb in range(Nb):
            lens = lens + jnp.where(rownb_ref[...] == nb, len_ref[base + nb], 0)
        z = jnp.where(roww_ref[...] < lens, seq_ref[...], 0.0)

        # ------------- DNN head: 1x1 Conv1d stack ----------------------------
        for l in range(D):
            z = (jnp.dot(z, dnn_w[l][...], preferred_element_type=jnp.float32)
                 + dnn_b[l][...])
            if l < D - 1:
                z = jnp.maximum(z, 0.0)

        out_ref[0] = z.astype(out_ref.dtype)                     # lane-dense store

    return kernel


def _full_spec(a):
    nd = a.ndim
    return pl.BlockSpec(a.shape, lambda g, lens, _nd=nd: (0,) * _nd)


# --------------------------------------------------------------------------
# Wrapper
# --------------------------------------------------------------------------
def nnet_cldnn3d_forward(params, x, lengths, num_blocks=None):
    """x: (N, C, num_streams, H, W) float32 (PyTorch layout); lengths: (N,) int32.

    Returns (N, W, output_size), matching the reference forward."""
    cfg = params["cfg"]
    N, C, S, H, W = x.shape
    KH, KW = cfg["kernel"]
    Co, HID = cfg["co"], cfg["hidden"]
    L, D, OUT = cfg["l_num_layers"], cfg["d_num_layers"], cfg["output_size"]
    OUT_PAD = params["dnn_w"][-1].shape[1]
    ph, pw = (KH - 1) // 2, (KW - 1) // 2
    Hp, Wp = H + 2 * ph, W + 2 * pw
    HCo = H * Co

    if num_blocks is None:
        # One block = whole batch per kernel invocation: best on single-TC
        # chips (v5e/v6e).  On v7x (2 TensorCores) pass num_blocks=2 when N is
        # even and >= 4 so each core gets N/2 samples.
        num_blocks = 1
    G = num_blocks
    assert N % G == 0, "num_blocks must divide the batch size"
    Nb = N // G

    # Host-side layout plumbing only: zero-pad H/W and arrange the (tiny) raw
    # input as (G, S*Wp*Nb, Hp*C) with row index s*Wp*Nb + wp*Nb + nb so every
    # in-kernel read is a contiguous, lane-dense slab slice.
    xt = jnp.transpose(x, (2, 4, 0, 3, 1))                       # (S, W, N, H, C)
    xt = jnp.pad(xt, ((0, 0), (pw, pw), (0, 0), (ph, ph), (0, 0)))
    xt = xt.reshape(S, Wp, G, Nb, Hp * C)
    x_k = jnp.transpose(xt, (2, 0, 1, 3, 4)).reshape(G, S * Wp * Nb, Hp * C)

    # Constant row -> (w, sample) index tables (avoid in-kernel int div/mod).
    rows = np.arange(W * Nb, dtype=np.int32)
    row_w = jnp.asarray(np.repeat((rows // Nb)[:, None], HID, axis=1))
    row_nb = jnp.asarray(np.repeat((rows % Nb)[:, None], HID, axis=1))

    tensor_args = ([params["wband"], params["conv_b"], params["wd"], params["bd"],
                    params["w_ih"], params["w_hh"], params["b_lstm"],
                    row_w, row_nb]
                   + params["dnn_w"] + params["dnn_b"])

    in_specs = [pl.BlockSpec((1, S * Wp * Nb, Hp * C), lambda g, lens: (g, 0, 0))]
    in_specs += [_full_spec(a) for a in tensor_args]

    scratch = [
        pltpu.VMEM((W * Nb, S * HCo), jnp.float32),   # lane-dense CNN features
        pltpu.VMEM((W * Nb, HID), jnp.float32),       # sequence buffer
        pltpu.VMEM((W * Nb, 4 * HID), jnp.float32),   # LSTM input projections
    ]

    kernel = _make_cldnn_kernel(S=S, W=W, Wp=Wp, HCo=HCo, HID=HID, KW=KW,
                                L=L, D=D, Nb=Nb)

    out = pl.pallas_call(
        kernel,
        out_shape=jax.ShapeDtypeStruct((G, W * Nb, OUT_PAD), jnp.float32),
        grid_spec=pltpu.PrefetchScalarGridSpec(
            num_scalar_prefetch=1,
            grid=(G,),
            in_specs=in_specs,
            out_specs=pl.BlockSpec((1, W * Nb, OUT_PAD), lambda g, lens: (g, 0, 0)),
            scratch_shapes=scratch),
        compiler_params=pltpu.CompilerParams(
            dimension_semantics=("parallel",)),
        # Total VMEM footprint (input block + weights + scratch) is ~1.5 MiB:
        # no tiling / manual DMA / Buffered() tuning is worthwhile on any
        # generation (incl. v7x's 64 MiB VMEM).
    )(jnp.asarray(lengths, jnp.int32), x_k, *tensor_args)

    # (G, W*Nb, OUT_PAD) rows are (w, nb) -> (N, W, OUT)
    out = out.reshape(G, W, Nb, OUT_PAD)
    out = jnp.transpose(out, (0, 2, 1, 3)).reshape(N, W, OUT_PAD)
    return out[:, :, :OUT]


# --------------------------------------------------------------------------
# Deterministic synthetic parameters (PyTorch layouts -> kernel layouts)
# --------------------------------------------------------------------------
def init_params(key, *, input_h, input_w, num_streams, in_channels, out_channels,
                kernel, hidden_size, l_num_layers, d_num_layers, output_size):
    KH, KW = kernel
    C_in, C_out = in_channels[-1], out_channels[-1]   # only the last group exists
    S, H, HID = num_streams, input_h, hidden_size
    ph = (KH - 1) // 2
    Hp = H + 2 * ph
    OUT_PAD = -(-output_size // 128) * 128            # lane-dense output width

    def uniform(k, shape, fan_in):
        bound = 1.0 / float(fan_in) ** 0.5
        return jax.random.uniform(k, shape, jnp.float32, -bound, bound)

    p = {}

    # per-stream Conv2d (PyTorch (Co, Ci, KH, KW)) -> KW banded matrices
    # wband[s*KW + kw][(h+kh)*Ci + c, h*Co + co] = w_pt[co, c, kh, kw]
    wband = np.zeros((S * KW, Hp * C_in, H * C_out), np.float32)
    conv_b = np.zeros((S, 1, H * C_out), np.float32)
    for s in range(S):
        key, k1, k2 = jax.random.split(key, 3)
        fan = C_in * KH * KW
        w_pt = np.asarray(uniform(k1, (C_out, C_in, KH, KW), fan))
        b_pt = np.asarray(uniform(k2, (C_out,), fan))
        for kw in range(KW):
            for kh in range(KH):
                blk = w_pt[:, :, kh, kw].T            # (Ci, Co)
                for h in range(H):
                    wband[s * KW + kw,
                          (h + kh) * C_in:(h + kh + 1) * C_in,
                          h * C_out:(h + 1) * C_out] = blk
        conv_b[s, 0, :] = np.tile(b_pt, H)            # bias broadcast over h
    p["wband"] = jnp.asarray(wband)
    p["conv_b"] = jnp.asarray(conv_b)

    # dim_reduce Conv1d: PyTorch feature order f = c*S*H + s*H + h;
    # kernel feature order is f = s*H*Co + h*Co + c  -> permute the weight.
    cnn_out_dim = C_out * H * S
    key, k1, k2 = jax.random.split(key, 3)
    wd_pt = uniform(k1, (HID, cnn_out_dim), cnn_out_dim)
    bd_pt = uniform(k2, (HID,), cnn_out_dim)
    p["wd"] = jnp.transpose(wd_pt.reshape(HID, C_out, S, H),
                            (2, 3, 1, 0)).reshape(S * H * C_out, HID)
    p["bd"] = bd_pt.reshape(1, HID)

    # LSTM layers (PyTorch gate order i, f, g, o), stacked per layer
    w_ih_l, w_hh_l, b_l = [], [], []
    for _ in range(l_num_layers):
        key, k1, k2, k3, k4 = jax.random.split(key, 5)
        w_ih = uniform(k1, (4 * HID, HID), HID)
        w_hh = uniform(k2, (4 * HID, HID), HID)
        b_ih = uniform(k3, (4 * HID,), HID)
        b_hh = uniform(k4, (4 * HID,), HID)
        w_ih_l.append(w_ih.T)                         # (HID, 4*HID)
        w_hh_l.append(w_hh.T)
        b_l.append((b_ih + b_hh).reshape(1, 4 * HID))
    p["w_ih"] = jnp.stack(w_ih_l)                     # (L, HID, 4*HID)
    p["w_hh"] = jnp.stack(w_hh_l)
    p["b_lstm"] = jnp.stack(b_l)                      # (L, 1, 4*HID)

    # DNN 1x1 Conv1d stack; last layer zero-padded to OUT_PAD lanes
    in_sizes = [HID] * d_num_layers
    out_sizes = [HID] * (d_num_layers - 1) + [output_size]
    dnn_w, dnn_b = [], []
    for li, (fi, fo) in enumerate(zip(in_sizes, out_sizes)):
        key, k1, k2 = jax.random.split(key, 3)
        w_k = uniform(k1, (fo, fi), fi).T             # (in, out)
        b_k = uniform(k2, (fo,), fi).reshape(1, fo)
        if li == d_num_layers - 1 and OUT_PAD > fo:
            w_k = jnp.pad(w_k, ((0, 0), (0, OUT_PAD - fo)))
            b_k = jnp.pad(b_k, ((0, 0), (0, OUT_PAD - fo)))
        dnn_w.append(w_k)
        dnn_b.append(b_k)
    p["dnn_w"] = dnn_w
    p["dnn_b"] = dnn_b

    p["cfg"] = dict(kernel=(KH, KW), co=C_out, hidden=HID,
                    l_num_layers=l_num_layers, d_num_layers=d_num_layers,
                    output_size=output_size)
    return p


# --------------------------------------------------------------------------
if __name__ == "__main__":
    input_h, input_w = 16, 16
    num_streams = 2
    in_channels = [4, 8]      # only the last pair is actually used (module quirk)
    out_channels = [8, 8]
    kernel = (3, 3)
    hidden_size = 32
    l_num_layers = 2
    d_num_layers = 2
    output_size = 10
    N = 2

    key = jax.random.PRNGKey(0)
    kp, kx = jax.random.split(key)
    params = init_params(kp, input_h=input_h, input_w=input_w,
                         num_streams=num_streams, in_channels=in_channels,
                         out_channels=out_channels, kernel=kernel,
                         hidden_size=hidden_size, l_num_layers=l_num_layers,
                         d_num_layers=d_num_layers, output_size=output_size)

    # In-place write in the reference forward requires C == out_channels[-1].
    C = in_channels[-1]
    x = jax.random.normal(kx, (N, C, num_streams, input_h, input_w), jnp.float32)
    lengths = jnp.array([input_w, 12], jnp.int32)   # descending, as pack_padded needs

    out = nnet_cldnn3d_forward(params, x, lengths)
    jax.block_until_ready(out)
    assert out.shape == (N, input_w, output_size), out.shape
    print("KERNEL_OK")
</pallas_src>

<mosaic_0001>
module attributes {stable_mosaic.version = 11 : i64} {
  func.func @kernel(%arg0: i32, %arg1: memref<2xi32, #tpu.memory_space<smem>>, %arg2: memref<1x72x144xf32, #tpu.memory_space<vmem>>, %arg3: memref<6x144x128xf32, #tpu.memory_space<vmem>>, %arg4: memref<2x1x128xf32, #tpu.memory_space<vmem>>, %arg5: memref<256x32xf32, #tpu.memory_space<vmem>>, %arg6: memref<1x32xf32, #tpu.memory_space<vmem>>, %arg7: memref<2x32x128xf32, #tpu.memory_space<vmem>>, %arg8: memref<2x32x128xf32, #tpu.memory_space<vmem>>, %arg9: memref<2x1x128xf32, #tpu.memory_space<vmem>>, %arg10: memref<32x32xi32, #tpu.memory_space<vmem>>, %arg11: memref<32x32xi32, #tpu.memory_space<vmem>>, %arg12: memref<32x32xf32, #tpu.memory_space<vmem>>, %arg13: memref<32x128xf32, #tpu.memory_space<vmem>>, %arg14: memref<1x32xf32, #tpu.memory_space<vmem>>, %arg15: memref<1x128xf32, #tpu.memory_space<vmem>>, %arg16: memref<1x32x128xf32, #tpu.memory_space<vmem>>, %arg17: memref<32x256xf32, #tpu.memory_space<vmem>>, %arg18: memref<32x32xf32, #tpu.memory_space<vmem>>, %arg19: memref<32x128xf32, #tpu.memory_space<vmem>>) attributes {dimension_semantics = [#tpu.dimension_semantics<parallel>], iteration_bounds = array<i64: 1>, scalar_prefetch = 1 : i64, scratch_operands = 3 : i64, tpu.core_type = #tpu.core_type<tc>, window_params = [{transform_indices = @transform_0, window_bounds = array<i64: 1, 72, 144>}, {pipeline_mode = #tpu.pipeline_mode<synchronous>, transform_indices = @transform_1, window_bounds = array<i64: 6, 144, 128>}, {pipeline_mode = #tpu.pipeline_mode<synchronous>, transform_indices = @transform_2, window_bounds = array<i64: 2, 1, 128>}, {pipeline_mode = #tpu.pipeline_mode<synchronous>, transform_indices = @transform_3, window_bounds = array<i64: 256, 32>}, {pipeline_mode = #tpu.pipeline_mode<synchronous>, transform_indices = @transform_4, window_bounds = array<i64: 1, 32>}, {pipeline_mode = #tpu.pipeline_mode<synchronous>, transform_indices = @transform_5, window_bounds = array<i64: 2, 32, 128>}, {pipeline_mode = #tpu.pipeline_mode<synchronous>, transform_indices = @transform_6, window_bounds = array<i64: 2, 32, 128>}, {pipeline_mode = #tpu.pipeline_mode<synchronous>, transform_indices = @transform_7, window_bounds = array<i64: 2, 1, 128>}, {pipeline_mode = #tpu.pipeline_mode<synchronous>, transform_indices = @transform_8, window_bounds = array<i64: 32, 32>}, {pipeline_mode = #tpu.pipeline_mode<synchronous>, transform_indices = @transform_9, window_bounds = array<i64: 32, 32>}, {pipeline_mode = #tpu.pipeline_mode<synchronous>, transform_indices = @transform_10, window_bounds = array<i64: 32, 32>}, {pipeline_mode = #tpu.pipeline_mode<synchronous>, transform_indices = @transform_11, window_bounds = array<i64: 32, 128>}, {pipeline_mode = #tpu.pipeline_mode<synchronous>, transform_indices = @transform_12, window_bounds = array<i64: 1, 32>}, {pipeline_mode = #tpu.pipeline_mode<synchronous>, transform_indices = @transform_13, window_bounds = array<i64: 1, 128>}, {transform_indices = @transform_14, window_bounds = array<i64: 1, 32, 128>}]} {
    %c0 = arith.constant 0 : index
    %c0_0 = arith.constant 0 : index
    %c0_1 = arith.constant 0 : index
    %0 = vector.load %arg2[%c0, %c0_0, %c0_1] : memref<1x72x144xf32, #tpu.memory_space<vmem>>, vector<1x32x144xf32>
    %1 = vector.shape_cast %0 : vector<1x32x144xf32> to vector<32x144xf32>
    %c0_2 = arith.constant 0 : index
    %c0_3 = arith.constant 0 : index
    %c0_4 = arith.constant 0 : index
    %2 = vector.load %arg3[%c0_2, %c0_3, %c0_4] : memref<6x144x128xf32, #tpu.memory_space<vmem>>, vector<1x144x128xf32>
    %3 = vector.shape_cast %2 : vector<1x144x128xf32> to vector<144x128xf32>
    %cst = arith.constant dense<0.000000e+00> : vector<32x128xf32>
    %4 = tpu.matmul %1, %3, %cst {dimension_numbers = #tpu.dot_dimension_numbers<[1], [0], [0], [1], [0, 0, 1, 1], [], []>} : vector<32x144xf32>, vector<144x128xf32>, vector<32x128xf32> -> vector<32x128xf32>
    %c0_5 = arith.constant 0 : index
    %c2 = arith.constant 2 : index
    %c0_6 = arith.constant 0 : index
    %5 = vector.load %arg2[%c0_5, %c2, %c0_6] : memref<1x72x144xf32, #tpu.memory_space<vmem>>, vector<1x32x144xf32>
    %6 = vector.shape_cast %5 : vector<1x32x144xf32> to vector<32x144xf32>
    %c1 = arith.constant 1 : index
    %c0_7 = arith.constant 0 : index
    %c0_8 = arith.constant 0 : index
    %7 = vector.load %arg3[%c1, %c0_7, %c0_8] : memref<6x144x128xf32, #tpu.memory_space<vmem>>, vector<1x144x128xf32>
    %8 = vector.shape_cast %7 : vector<1x144x128xf32> to vector<144x128xf32>
    %cst_9 = arith.constant dense<0.000000e+00> : vector<32x128xf32>
    %9 = tpu.matmul %6, %8, %cst_9 {dimension_numbers = #tpu.dot_dimension_numbers<[1], [0], [0], [1], [0, 0, 1, 1], [], []>} : vector<32x144xf32>, vector<144x128xf32>, vector<32x128xf32> -> vector<32x128xf32>
    %10 = arith.addf %4, %9 : vector<32x128xf32>
    %c0_10 = arith.constant 0 : index
    %c4 = arith.constant 4 : index
    %c0_11 = arith.constant 0 : index
    %11 = vector.load %arg2[%c0_10, %c4, %c0_11] : memref<1x72x144xf32, #tpu.memory_space<vmem>>, vector<1x32x144xf32>
    %12 = vector.shape_cast %11 : vector<1x32x144xf32> to vector<32x144xf32>
    %c2_12 = arith.constant 2 : index
    %c0_13 = arith.constant 0 : index
    %c0_14 = arith.constant 0 : index
    %13 = vector.load %arg3[%c2_12, %c0_13, %c0_14] : memref<6x144x128xf32, #tpu.memory_space<vmem>>, vector<1x144x128xf32>
    %14 = vector.shape_cast %13 : vector<1x144x128xf32> to vector<144x128xf32>
    %cst_15 = arith.constant dense<0.000000e+00> : vector<32x128xf32>
    %15 = tpu.matmul %12, %14, %cst_15 {dimension_numbers = #tpu.dot_dimension_numbers<[1], [0], [0], [1], [0, 0, 1, 1], [], []>} : vector<32x144xf32>, vector<144x128xf32>, vector<32x128xf32> -> vector<32x128xf32>
    %16 = arith.addf %10, %15 : vector<32x128xf32>
    %c0_16 = arith.constant 0 : index
    %c0_17 = arith.constant 0 : index
    %c0_18 = arith.constant 0 : index
    %17 = vector.load %arg4[%c0_16, %c0_17, %c0_18] : memref<2x1x128xf32, #tpu.memory_space<vmem>>, vector<1x1x128xf32>
    %18 = vector.shape_cast %17 : vector<1x1x128xf32> to vector<1x128xf32>
    %19 = vector.broadcast %18 : vector<1x128xf32> to vector<32x128xf32>
    %20 = arith.addf %16, %19 : vector<32x128xf32>
    %cst_19 = arith.constant 0.000000e+00 : f32
    %21 = vector.broadcast %cst_19 : f32 to vector<32x128xf32>
    %22 = arith.maximumf %20, %21 : vector<32x128xf32>
    %c0_20 = arith.constant 0 : index
    %c0_21 = arith.constant 0 : index
    %23 = vector.load %arg17[%c0_20, %c0_21] : memref<32x256xf32, #tpu.memory_space<vmem>>, vector<32x128xf32>
    tpu.vector_store %arg17[%c0_20, %c0_21], %22 {strides = array<i32>} : memref<32x256xf32, #tpu.memory_space<vmem>>, vector<32x128xf32>,
    %c0_22 = arith.constant 0 : index
    %c36 = arith.constant 36 : index
    %c0_23 = arith.constant 0 : index
    %24 = vector.load %arg2[%c0_22, %c36, %c0_23] : memref<1x72x144xf32, #tpu.memory_space<vmem>>, vector<1x32x144xf32>
    %25 = vector.shape_cast %24 : vector<1x32x144xf32> to vector<32x144xf32>
    %c3 = arith.constant 3 : index
    %c0_24 = arith.constant 0 : index
    %c0_25 = arith.constant 0 : index
    %26 = vector.load %arg3[%c3, %c0_24, %c0_25] : memref<6x144x128xf32, #tpu.memory_space<vmem>>, vector<1x144x128xf32>
    %27 = vector.shape_cast %26 : vector<1x144x128xf32> to vector<144x128xf32>
    %cst_26 = arith.constant dense<0.000000e+00> : vector<32x128xf32>
    %28 = tpu.matmul %25, %27, %cst_26 {dimension_numbers = #tpu.dot_dimension_numbers<[1], [0], [0], [1], [0, 0, 1, 1], [], []>} : vector<32x144xf32>, vector<144x128xf32>, vector<32x128xf32> -> vector<32x128xf32>
    %c0_27 = arith.constant 0 : index
    %c38 = arith.constant 38 : index
    %c0_28 = arith.constant 0 : index
    %29 = vector.load %arg2[%c0_27, %c38, %c0_28] : memref<1x72x144xf32, #tpu.memory_space<vmem>>, vector<1x32x144xf32>
    %30 = vector.shape_cast %29 : vector<1x32x144xf32> to vector<32x144xf32>
    %c4_29 = arith.constant 4 : index
    %c0_30 = arith.constant 0 : index
    %c0_31 = arith.constant 0 : index
    %31 = vector.load %arg3[%c4_29, %c0_30, %c0_31] : memref<6x144x128xf32, #tpu.memory_space<vmem>>, vector<1x144x128xf32>
    %32 = vector.shape_cast %31 : vector<1x144x128xf32> to vector<144x128xf32>
    %cst_32 = arith.constant dense<0.000000e+00> : vector<32x128xf32>
    %33 = tpu.matmul %30, %32, %cst_32 {dimension_numbers = #tpu.dot_dimension_numbers<[1], [0], [0], [1], [0, 0, 1, 1], [], []>} : vector<32x144xf32>, vector<144x128xf32>, vector<32x128xf32> -> vector<32x128xf32>
    %34 = arith.addf %28, %33 : vector<32x128xf32>
    %c0_33 = arith.constant 0 : index
    %c40 = arith.constant 40 : index
    %c0_34 = arith.constant 0 : index
    %35 = vector.load %arg2[%c0_33, %c40, %c0_34] : memref<1x72x144xf32, #tpu.memory_space<vmem>>, vector<1x32x144xf32>
    %36 = vector.shape_cast %35 : vector<1x32x144xf32> to vector<32x144xf32>
    %c5 = arith.constant 5 : index
    %c0_35 = arith.constant 0 : index
    %c0_36 = arith.constant 0 : index
    %37 = vector.load %arg3[%c5, %c0_35, %c0_36] : memref<6x144x128xf32, #tpu.memory_space<vmem>>, vector<1x144x128xf32>
    %38 = vector.shape_cast %37 : vector<1x144x128xf32> to vector<144x128xf32>
    %cst_37 = arith.constant dense<0.000000e+00> : vector<32x128xf32>
    %39 = tpu.matmul %36, %38, %cst_37 {dimension_numbers = #tpu.dot_dimension_numbers<[1], [0], [0], [1], [0, 0, 1, 1], [], []>} : vector<32x144xf32>, vector<144x128xf32>, vector<32x128xf32> -> vector<32x128xf32>
    %40 = arith.addf %34, %39 : vector<32x128xf32>
    %c1_38 = arith.constant 1 : index
    %c0_39 = arith.constant 0 : index
    %c0_40 = arith.constant 0 : index
    %41 = vector.load %arg4[%c1_38, %c0_39, %c0_40] : memref<2x1x128xf32, #tpu.memory_space<vmem>>, vector<1x1x128xf32>
    %42 = vector.shape_cast %41 : vector<1x1x128xf32> to vector<1x128xf32>
    %43 = vector.broadcast %42 : vector<1x128xf32> to vector<32x128xf32>
    %44 = arith.addf %40, %43 : vector<32x128xf32>
    %cst_41 = arith.constant 0.000000e+00 : f32
    %45 = vector.broadcast %cst_41 : f32 to vector<32x128xf32>
    %46 = arith.maximumf %44, %45 : vector<32x128xf32>
    %c0_42 = arith.constant 0 : index
    %c128 = arith.constant 128 : index
    %47 = vector.load %arg17[%c0_42, %c128] : memref<32x256xf32, #tpu.memory_space<vmem>>, vector<32x128xf32>
    tpu.vector_store %arg17[%c0_42, %c128], %46 {strides = array<i32>} : memref<32x256xf32, #tpu.memory_space<vmem>>, vector<32x128xf32>,
    %c0_43 = arith.constant 0 : index
    %c0_44 = arith.constant 0 : index
    %48 = vector.load %arg17[%c0_43, %c0_44] : memref<32x256xf32, #tpu.memory_space<vmem>>, vector<32x256xf32>
    %c0_45 = arith.constant 0 : index
    %c0_46 = arith.constant 0 : index
    %49 = vector.load %arg5[%c0_45, %c0_46] : memref<256x32xf32, #tpu.memory_space<vmem>>, vector<256x32xf32>
    %cst_47 = arith.constant dense<0.000000e+00> : vector<32x32xf32>
    %50 = tpu.matmul %48, %49, %cst_47 {dimension_numbers = #tpu.dot_dimension_numbers<[1], [0], [0], [1], [0, 0, 1, 1], [], []>} : vector<32x256xf32>, vector<256x32xf32>, vector<32x32xf32> -> vector<32x32xf32>
    %c0_48 = arith.constant 0 : index
    %c0_49 = arith.constant 0 : index
    %51 = vector.load %arg6[%c0_48, %c0_49] : memref<1x32xf32, #tpu.memory_space<vmem>>, vector<1x32xf32>
    %52 = vector.broadcast %51 : vector<1x32xf32> to vector<32x32xf32>
    %53 = arith.addf %50, %52 : vector<32x32xf32>
    %c0_50 = arith.constant 0 : index
    %c0_51 = arith.constant 0 : index
    %54 = vector.load %arg18[%c0_50, %c0_51] : memref<32x32xf32, #tpu.memory_space<vmem>>, vector<32x32xf32>
    tpu.vector_store %arg18[%c0_50, %c0_51], %53 {strides = array<i32>} : memref<32x32xf32, #tpu.memory_space<vmem>>, vector<32x32xf32>,
    %c0_52 = arith.constant 0 : index
    %c0_53 = arith.constant 0 : index
    %55 = vector.load %arg18[%c0_52, %c0_53] : memref<32x32xf32, #tpu.memory_space<vmem>>, vector<32x32xf32>
    %c0_54 = arith.constant 0 : index
    %c0_55 = arith.constant 0 : index
    %c0_56 = arith.constant 0 : index
    %56 = vector.load %arg7[%c0_54, %c0_55, %c0_56] : memref<2x32x128xf32, #tpu.memory_space<vmem>>, vector<1x32x128xf32>
    %57 = vector.shape_cast %56 : vector<1x32x128xf32> to vector<32x128xf32>
    %cst_57 = arith.constant dense<0.000000e+00> : vector<32x128xf32>
    %58 = tpu.matmul %55, %57, %cst_57 {dimension_numbers = #tpu.dot_dimension_numbers<[1], [0], [0], [1], [0, 0, 1, 1], [], []>} : vector<32x32xf32>, vector<32x128xf32>, vector<32x128xf32> -> vector<32x128xf32>
    %c0_58 = arith.constant 0 : index
    %c0_59 = arith.constant 0 : index
    %c0_60 = arith.constant 0 : index
    %59 = vector.load %arg9[%c0_58, %c0_59, %c0_60] : memref<2x1x128xf32, #tpu.memory_space<vmem>>, vector<1x1x128xf32>
    %60 = vector.shape_cast %59 : vector<1x1x128xf32> to vector<1x128xf32>
    %61 = vector.broadcast %60 : vector<1x128xf32> to vector<32x128xf32>
    %62 = arith.addf %58, %61 : vector<32x128xf32>
    %c0_61 = arith.constant 0 : index
    %c0_62 = arith.constant 0 : index
    %63 = vector.load %arg19[%c0_61, %c0_62] : memref<32x128xf32, #tpu.memory_space<vmem>>, vector<32x128xf32>
    tpu.vector_store %arg19[%c0_61, %c0_62], %62 {strides = array<i32>} : memref<32x128xf32, #tpu.memory_space<vmem>>, vector<32x128xf32>,
    %c0_63 = arith.constant 0 : index
    %c0_64 = arith.constant 0 : index
    %c0_65 = arith.constant 0 : index
    %64 = vector.load %arg8[%c0_63, %c0_64, %c0_65] : memref<2x32x128xf32, #tpu.memory_space<vmem>>, vector<1x32x128xf32>
    %65 = vector.shape_cast %64 : vector<1x32x128xf32> to vector<32x128xf32>
    %cst_66 = arith.constant 0.000000e+00 : f32
    %66 = vector.broadcast %cst_66 : f32 to vector<2x32xf32>
    %cst_67 = arith.constant 0.000000e+00 : f32
    %67 = vector.broadcast %cst_67 : f32 to vector<2x32xf32>
    %c0_68 = arith.constant 0 : index
    %c0_69 = arith.constant 0 : index
    %68 = vector.load %arg19[%c0_68, %c0_69] : memref<32x128xf32, #tpu.memory_space<vmem>>, vector<2x128xf32>
    %cst_70 = arith.constant dense<0.000000e+00> : vector<2x128xf32>
    %69 = tpu.matmul %66, %65, %cst_70 {dimension_numbers = #tpu.dot_dimension_numbers<[1], [0], [0], [1], [0, 0, 1, 1], [], []>} : vector<2x32xf32>, vector<32x128xf32>, vector<2x128xf32> -> vector<2x128xf32>
    %70 = arith.addf %68, %69 : vector<2x128xf32>
    %71 = arith.negf %70 : vector<2x128xf32>
    %72 = math.exp %71 : vector<2x128xf32>
    %cst_71 = arith.constant 1.000000e+00 : f32
    %73 = vector.broadcast %cst_71 : f32 to vector<2x128xf32>
    %74 = arith.addf %73, %72 : vector<2x128xf32>
    %75 = arith.divf %73, %74 : vector<2x128xf32>
    %76 = vector.extract_strided_slice %75 {offsets = [0, 0], sizes = [2, 32], strides = [1, 1]} : vector<2x128xf32> to vector<2x32xf32>
    %77 = vector.extract_strided_slice %75 {offsets = [0, 32], sizes = [2, 32], strides = [1, 1]} : vector<2x128xf32> to vector<2x32xf32>
    %78 = vector.extract_strided_slice %75 {offsets = [0, 96], sizes = [2, 32], strides = [1, 1]} : vector<2x128xf32> to vector<2x32xf32>
    %79 = vector.extract_strided_slice %70 {offsets = [0, 64], sizes = [2, 32], strides = [1, 1]} : vector<2x128xf32> to vector<2x32xf32>
    %80 = math.tanh %79 : vector<2x32xf32>
    %81 = arith.mulf %77, %67 : vector<2x32xf32>
    %82 = arith.mulf %76, %80 : vector<2x32xf32>
    %83 = arith.addf %81, %82 : vector<2x32xf32>
    %84 = math.tanh %83 : vector<2x32xf32>
    %85 = arith.mulf %78, %84 : vector<2x32xf32>
    %c0_72 = arith.constant 0 : index
    %c0_73 = arith.constant 0 : index
    %86 = vector.load %arg18[%c0_72, %c0_73] : memref<32x32xf32, #tpu.memory_space<vmem>>, vector<2x32xf32>
    tpu.vector_store %arg18[%c0_72, %c0_73], %85 {strides = array<i32>} : memref<32x32xf32, #tpu.memory_space<vmem>>, vector<2x32xf32>,
    %c2_74 = arith.constant 2 : index
    %c0_75 = arith.constant 0 : index
    %87 = vector.load %arg19[%c2_74, %c0_75] : memref<32x128xf32, #tpu.memory_space<vmem>>, vector<2x128xf32>
    %cst_76 = arith.constant dense<0.000000e+00> : vector<2x128xf32>
    %88 = tpu.matmul %85, %65, %cst_76 {dimension_numbers = #tpu.dot_dimension_numbers<[1], [0], [0], [1], [0, 0, 1, 1], [], []>} : vector<2x32xf32>, vector<32x128xf32>, vector<2x128xf32> -> vector<2x128xf32>
    %89 = arith.addf %87, %88 : vector<2x128xf32>
    %90 = arith.negf %89 : vector<2x128xf32>
    %91 = math.exp %90 : vector<2x128xf32>
    %cst_77 = arith.constant 1.000000e+00 : f32
    %92 = vector.broadcast %cst_77 : f32 to vector<2x128xf32>
    %93 = arith.addf %92, %91 : vector<2x128xf32>
    %94 = arith.divf %92, %93 : vector<2x128xf32>
    %95 = vector.extract_strided_slice %94 {offsets = [0, 0], sizes = [2, 32], strides = [1, 1]} : vector<2x128xf32> to vector<2x32xf32>
    %96 = vector.extract_strided_slice %94 {offsets = [0, 32], sizes = [2, 32], strides = [1, 1]} : vector<2x128xf32> to vector<2x32xf32>
    %97 = vector.extract_strided_slice %94 {offsets = [0, 96], sizes = [2, 32], strides = [1, 1]} : vector<2x128xf32> to vector<2x32xf32>
    %98 = vector.extract_strided_slice %89 {offsets = [0, 64], sizes = [2, 32], strides = [1, 1]} : vector<2x128xf32> to vector<2x32xf32>
    %99 = math.tanh %98 : vector<2x32xf32>
    %100 = arith.mulf %96, %83 : vector<2x32xf32>
    %101 = arith.mulf %95, %99 : vector<2x32xf32>
    %102 = arith.addf %100, %101 : vector<2x32xf32>
    %103 = math.tanh %102 : vector<2x32xf32>
    %104 = arith.mulf %97, %103 : vector<2x32xf32>
    %c2_78 = arith.constant 2 : index
    %c0_79 = arith.constant 0 : index
    %105 = vector.load %arg18[%c2_78, %c0_79] : memref<32x32xf32, #tpu.memory_space<vmem>>, vector<2x32xf32>
    tpu.vector_store %arg18[%c2_78, %c0_79], %104 {strides = array<i32>} : memref<32x32xf32, #tpu.memory_space<vmem>>, vector<2x32xf32>,
    %c4_80 = arith.constant 4 : index
    %c0_81 = arith.constant 0 : index
    %106 = vector.load %arg19[%c4_80, %c0_81] : memref<32x128xf32, #tpu.memory_space<vmem>>, vector<2x128xf32>
    %cst_82 = arith.constant dense<0.000000e+00> : vector<2x128xf32>
    %107 = tpu.matmul %104, %65, %cst_82 {dimension_numbers = #tpu.dot_dimension_numbers<[1], [0], [0], [1], [0, 0, 1, 1], [], []>} : vector<2x32xf32>, vector<32x128xf32>, vector<2x128xf32> -> vector<2x128xf32>
    %108 = arith.addf %106, %107 : vector<2x128xf32>
    %109 = arith.negf %108 : vector<2x128xf32>
    %110 = math.exp %109 : vector<2x128xf32>
    %cst_83 = arith.constant 1.000000e+00 : f32
    %111 = vector.broadcast %cst_83 : f32 to vector<2x128xf32>
    %112 = arith.addf %111, %110 : vector<2x128xf32>
    %113 = arith.divf %111, %112 : vector<2x128xf32>
    %114 = vector.extract_strided_slice %113 {offsets = [0, 0], sizes = [2, 32], strides = [1, 1]} : vector<2x128xf32> to vector<2x32xf32>
    %115 = vector.extract_strided_slice %113 {offsets = [0, 32], sizes = [2, 32], strides = [1, 1]} : vector<2x128xf32> to vector<2x32xf32>
    %116 = vector.extract_strided_slice %113 {offsets = [0, 96], sizes = [2, 32], strides = [1, 1]} : vector<2x128xf32> to vector<2x32xf32>
    %117 = vector.extract_strided_slice %108 {offsets = [0, 64], sizes = [2, 32], strides = [1, 1]} : vector<2x128xf32> to vector<2x32xf32>
    %118 = math.tanh %117 : vector<2x32xf32>
    %119 = arith.mulf %115, %102 : vector<2x32xf32>
    %120 = arith.mulf %114, %118 : vector<2x32xf32>
    %121 = arith.addf %119, %120 : vector<2x32xf32>
    %122 = math.tanh %121 : vector<2x32xf32>
    %123 = arith.mulf %116, %122 : vector<2x32xf32>
    %c4_84 = arith.constant 4 : index
    %c0_85 = arith.constant 0 : index
    %124 = vector.load %arg18[%c4_84, %c0_85] : memref<32x32xf32, #tpu.memory_space<vmem>>, vector<2x32xf32>
    tpu.vector_store %arg18[%c4_84, %c0_85], %123 {strides = array<i32>} : memref<32x32xf32, #tpu.memory_space<vmem>>, vector<2x32xf32>,
    %c6 = arith.constant 6 : index
    %c0_86 = arith.constant 0 : index
    %125 = vector.load %arg19[%c6, %c0_86] : memref<32x128xf32, #tpu.memory_space<vmem>>, vector<2x128xf32>
    %cst_87 = arith.constant dense<0.000000e+00> : vector<2x128xf32>
    %126 = tpu.matmul %123, %65, %cst_87 {dimension_numbers = #tpu.dot_dimension_numbers<[1], [0], [0], [1], [0, 0, 1, 1], [], []>} : vector<2x32xf32>, vector<32x128xf32>, vector<2x128xf32> -> vector<2x128xf32>
    %127 = arith.addf %125, %126 : vector<2x128xf32>
    %128 = arith.negf %127 : vector<2x128xf32>
    %129 = math.exp %128 : vector<2x128xf32>
    %cst_88 = arith.constant 1.000000e+00 : f32
    %130 = vector.broadcast %cst_88 : f32 to vector<2x128xf32>
    %131 = arith.addf %130, %129 : vector<2x128xf32>
    %132 = arith.divf %130, %131 : vector<2x128xf32>
    %133 = vector.extract_strided_slice %132 {offsets = [0, 0], sizes = [2, 32], strides = [1, 1]} : vector<2x128xf32> to vector<2x32xf32>
    %134 = vector.extract_strided_slice %132 {offsets = [0, 32], sizes = [2, 32], strides = [1, 1]} : vector<2x128xf32> to vector<2x32xf32>
    %135 = vector.extract_strided_slice %132 {offsets = [0, 96], sizes = [2, 32], strides = [1, 1]} : vector<2x128xf32> to vector<2x32xf32>
    %136 = vector.extract_strided_slice %127 {offsets = [0, 64], sizes = [2, 32], strides = [1, 1]} : vector<2x128xf32> to vector<2x32xf32>
    %137 = math.tanh %136 : vector<2x32xf32>
    %138 = arith.mulf %134, %121 : vector<2x32xf32>
    %139 = arith.mulf %133, %137 : vector<2x32xf32>
    %140 = arith.addf %138, %139 : vector<2x32xf32>
    %141 = math.tanh %140 : vector<2x32xf32>
    %142 = arith.mulf %135, %141 : vector<2x32xf32>
    %c6_89 = arith.constant 6 : index
    %c0_90 = arith.constant 0 : index
    %143 = vector.load %arg18[%c6_89, %c0_90] : memref<32x32xf32, #tpu.memory_space<vmem>>, vector<2x32xf32>
    tpu.vector_store %arg18[%c6_89, %c0_90], %142 {strides = array<i32>} : memref<32x32xf32, #tpu.memory_space<vmem>>, vector<2x32xf32>,
    %c8 = arith.constant 8 : index
    %c0_91 = arith.constant 0 : index
    %144 = vector.load %arg19[%c8, %c0_91] : memref<32x128xf32, #tpu.memory_space<vmem>>, vector<2x128xf32>
    %cst_92 = arith.constant dense<0.000000e+00> : vector<2x128xf32>
    %145 = tpu.matmul %142, %65, %cst_92 {dimension_numbers = #tpu.dot_dimension_numbers<[1], [0], [0], [1], [0, 0, 1, 1], [], []>} : vector<2x32xf32>, vector<32x128xf32>, vector<2x128xf32> -> vector<2x128xf32>
    %146 = arith.addf %144, %145 : vector<2x128xf32>
    %147 = arith.negf %146 : vector<2x128xf32>
    %148 = math.exp %147 : vector<2x128xf32>
    %cst_93 = arith.constant 1.000000e+00 : f32
    %149 = vector.broadcast %cst_93 : f32 to vector<2x128xf32>
    %150 = arith.addf %149, %148 : vector<2x128xf32>
    %151 = arith.divf %149, %150 : vector<2x128xf32>
    %152 = vector.extract_strided_slice %151 {offsets = [0, 0], sizes = [2, 32], strides = [1, 1]} : vector<2x128xf32> to vector<2x32xf32>
    %153 = vector.extract_strided_slice %151 {offsets = [0, 32], sizes = [2, 32], strides = [1, 1]} : vector<2x128xf32> to vector<2x32xf32>
    %154 = vector.extract_strided_slice %151 {offsets = [0, 96], sizes = [2, 32], strides = [1, 1]} : vector<2x128xf32> to vector<2x32xf32>
    %155 = vector.extract_strided_slice %146 {offsets = [0, 64], sizes = [2, 32], strides = [1, 1]} : vector<2x128xf32> to vector<2x32xf32>
    %156 = math.tanh %155 : vector<2x32xf32>
    %157 = arith.mulf %153, %140 : vector<2x32xf32>
    %158 = arith.mulf %152, %156 : vector<2x32xf32>
    %159 = arith.addf %157, %158 : vector<2x32xf32>
    %160 = math.tanh %159 : vector<2x32xf32>
    %161 = arith.mulf %154, %160 : vector<2x32xf32>
    %c8_94 = arith.constant 8 : index
    %c0_95 = arith.constant 0 : index
    %162 = vector.load %arg18[%c8_94, %c0_95] : memref<32x32xf32, #tpu.memory_space<vmem>>, vector<2x32xf32>
    tpu.vector_store %arg18[%c8_94, %c0_95], %161 {strides = array<i32>} : memref<32x32xf32, #tpu.memory_space<vmem>>, vector<2x32xf32>,
    %c10 = arith.constant 10 : index
    %c0_96 = arith.constant 0 : index
    %163 = vector.load %arg19[%c10, %c0_96] : memref<32x128xf32, #tpu.memory_space<vmem>>, vector<2x128xf32>
    %cst_97 = arith.constant dense<0.000000e+00> : vector<2x128xf32>
    %164 = tpu.matmul %161, %65, %cst_97 {dimension_numbers = #tpu.dot_dimension_numbers<[1], [0], [0], [1], [0, 0, 1, 1], [], []>} : vector<2x32xf32>, vector<32x128xf32>, vector<2x128xf32> -> vector<2x128xf32>
    %165 = arith.addf %163, %164 : vector<2x128xf32>
    %166 = arith.negf %165 : vector<2x128xf32>
    %167 = math.exp %166 : vector<2x128xf32>
    %cst_98 = arith.constant 1.000000e+00 : f32
    %168 = vector.broadcast %cst_98 : f32 to vector<2x128xf32>
    %169 = arith.addf %168, %167 : vector<2x128xf32>
    %170 = arith.divf %168, %169 : vector<2x128xf32>
    %171 = vector.extract_strided_slice %170 {offsets = [0, 0], sizes = [2, 32], strides = [1, 1]} : vector<2x128xf32> to vector<2x32xf32>
    %172 = vector.extract_strided_slice %170 {offsets = [0, 32], sizes = [2, 32], strides = [1, 1]} : vector<2x128xf32> to vector<2x32xf32>
    %173 = vector.extract_strided_slice %170 {offsets = [0, 96], sizes = [2, 32], strides = [1, 1]} : vector<2x128xf32> to vector<2x32xf32>
    %174 = vector.extract_strided_slice %165 {offsets = [0, 64], sizes = [2, 32], strides = [1, 1]} : vector<2x128xf32> to vector<2x32xf32>
    %175 = math.tanh %174 : vector<2x32xf32>
    %176 = arith.mulf %172, %159 : vector<2x32xf32>
    %177 = arith.mulf %171, %175 : vector<2x32xf32>
    %178 = arith.addf %176, %177 : vector<2x32xf32>
    %179 = math.tanh %178 : vector<2x32xf32>
    %180 = arith.mulf %173, %179 : vector<2x32xf32>
    %c10_99 = arith.constant 10 : index
    %c0_100 = arith.constant 0 : index
    %181 = vector.load %arg18[%c10_99, %c0_100] : memref<32x32xf32, #tpu.memory_space<vmem>>, vector<2x32xf32>
    tpu.vector_store %arg18[%c10_99, %c0_100], %180 {strides = array<i32>} : memref<32x32xf32, #tpu.memory_space<vmem>>, vector<2x32xf32>,
    %c12 = arith.constant 12 : index
    %c0_101 = arith.constant 0 : index
    %182 = vector.load %arg19[%c12, %c0_101] : memref<32x128xf32, #tpu.memory_space<vmem>>, vector<2x128xf32>
    %cst_102 = arith.constant dense<0.000000e+00> : vector<2x128xf32>
    %183 = tpu.matmul %180, %65, %cst_102 {dimension_numbers = #tpu.dot_dimension_numbers<[1], [0], [0], [1], [0, 0, 1, 1], [], []>} : vector<2x32xf32>, vector<32x128xf32>, vector<2x128xf32> -> vector<2x128xf32>
    %184 = arith.addf %182, %183 : vector<2x128xf32>
    %185 = arith.negf %184 : vector<2x128xf32>
    %186 = math.exp %185 : vector<2x128xf32>
    %cst_103 = arith.constant 1.000000e+00 : f32
    %187 = vector.broadcast %cst_103 : f32 to vector<2x128xf32>
    %188 = arith.addf %187, %186 : vector<2x128xf32>
    %189 = arith.divf %187, %188 : vector<2x128xf32>
    %190 = vector.extract_strided_slice %189 {offsets = [0, 0], sizes = [2, 32], strides = [1, 1]} : vector<2x128xf32> to vector<2x32xf32>
    %191 = vector.extract_strided_slice %189 {offsets = [0, 32], sizes = [2, 32], strides = [1, 1]} : vector<2x128xf32> to vector<2x32xf32>
    %192 = vector.extract_strided_slice %189 {offsets = [0, 96], sizes = [2, 32], strides = [1, 1]} : vector<2x128xf32> to vector<2x32xf32>
    %193 = vector.extract_strided_slice %184 {offsets = [0, 64], sizes = [2, 32], strides = [1, 1]} : vector<2x128xf32> to vector<2x32xf32>
    %194 = math.tanh %193 : vector<2x32xf32>
    %195 = arith.mulf %191, %178 : vector<2x32xf32>
    %196 = arith.mulf %190, %194 : vector<2x32xf32>
    %197 = arith.addf %195, %196 : vector<2x32xf32>
    %198 = math.tanh %197 : vector<2x32xf32>
    %199 = arith.mulf %192, %198 : vector<2x32xf32>
    %c12_104 = arith.constant 12 : index
    %c0_105 = arith.constant 0 : index
    %200 = vector.load %arg18[%c12_104, %c0_105] : memref<32x32xf32, #tpu.memory_space<vmem>>, vector<2x32xf32>
    tpu.vector_store %arg18[%c12_104, %c0_105], %199 {strides = array<i32>} : memref<32x32xf32, #tpu.memory_space<vmem>>, vector<2x32xf32>,
    %c14 = arith.constant 14 : index
    %c0_106 = arith.constant 0 : index
    %201 = vector.load %arg19[%c14, %c0_106] : memref<32x128xf32, #tpu.memory_space<vmem>>, vector<2x128xf32>
    %cst_107 = arith.constant dense<0.000000e+00> : vector<2x128xf32>
    %202 = tpu.matmul %199, %65, %cst_107 {dimension_numbers = #tpu.dot_dimension_numbers<[1], [0], [0], [1], [0, 0, 1, 1], [], []>} : vector<2x32xf32>, vector<32x128xf32>, vector<2x128xf32> -> vector<2x128xf32>
    %203 = arith.addf %201, %202 : vector<2x128xf32>
    %204 = arith.negf %203 : vector<2x128xf32>
    %205 = math.exp %204 : vector<2x128xf32>
    %cst_108 = arith.constant 1.000000e+00 : f32
    %206 = vector.broadcast %cst_108 : f32 to vector<2x128xf32>
    %207 = arith.addf %206, %205 : vector<2x128xf32>
    %208 = arith.divf %206, %207 : vector<2x128xf32>
    %209 = vector.extract_strided_slice %208 {offsets = [0, 0], sizes = [2, 32], strides = [1, 1]} : vector<2x128xf32> to vector<2x32xf32>
    %210 = vector.extract_strided_slice %208 {offsets = [0, 32], sizes = [2, 32], strides = [1, 1]} : vector<2x128xf32> to vector<2x32xf32>
    %211 = vector.extract_strided_slice %208 {offsets = [0, 96], sizes = [2, 32], strides = [1, 1]} : vector<2x128xf32> to vector<2x32xf32>
    %212 = vector.extract_strided_slice %203 {offsets = [0, 64], sizes = [2, 32], strides = [1, 1]} : vector<2x128xf32> to vector<2x32xf32>
    %213 = math.tanh %212 : vector<2x32xf32>
    %214 = arith.mulf %210, %197 : vector<2x32xf32>
    %215 = arith.mulf %209, %213 : vector<2x32xf32>
    %216 = arith.addf %214, %215 : vector<2x32xf32>
    %217 = math.tanh %216 : vector<2x32xf32>
    %218 = arith.mulf %211, %217 : vector<2x32xf32>
    %c14_109 = arith.constant 14 : index
    %c0_110 = arith.constant 0 : index
    %219 = vector.load %arg18[%c14_109, %c0_110] : memref<32x32xf32, #tpu.memory_space<vmem>>, vector<2x32xf32>
    tpu.vector_store %arg18[%c14_109, %c0_110], %218 {strides = array<i32>} : memref<32x32xf32, #tpu.memory_space<vmem>>, vector<2x32xf32>,
    %c16 = arith.constant 16 : index
    %c0_111 = arith.constant 0 : index
    %220 = vector.load %arg19[%c16, %c0_111] : memref<32x128xf32, #tpu.memory_space<vmem>>, vector<2x128xf32>
    %cst_112 = arith.constant dense<0.000000e+00> : vector<2x128xf32>
    %221 = tpu.matmul %218, %65, %cst_112 {dimension_numbers = #tpu.dot_dimension_numbers<[1], [0], [0], [1], [0, 0, 1, 1], [], []>} : vector<2x32xf32>, vector<32x128xf32>, vector<2x128xf32> -> vector<2x128xf32>
    %222 = arith.addf %220, %221 : vector<2x128xf32>
    %223 = arith.negf %222 : vector<2x128xf32>
    %224 = math.exp %223 : vector<2x128xf32>
    %cst_113 = arith.constant 1.000000e+00 : f32
    %225 = vector.broadcast %cst_113 : f32 to vector<2x128xf32>
    %226 = arith.addf %225, %224 : vector<2x128xf32>
    %227 = arith.divf %225, %226 : vector<2x128xf32>
    %228 = vector.extract_strided_slice %227 {offsets = [0, 0], sizes = [2, 32], strides = [1, 1]} : vector<2x128xf32> to vector<2x32xf32>
    %229 = vector.extract_strided_slice %227 {offsets = [0, 32], sizes = [2, 32], strides = [1, 1]} : vector<2x128xf32> to vector<2x32xf32>
    %230 = vector.extract_strided_slice %227 {offsets = [0, 96], sizes = [2, 32], strides = [1, 1]} : vector<2x128xf32> to vector<2x32xf32>
    %231 = vector.extract_strided_slice %222 {offsets = [0, 64], sizes = [2, 32], strides = [1, 1]} : vector<2x128xf32> to vector<2x32xf32>
    %232 = math.tanh %231 : vector<2x32xf32>
    %233 = arith.mulf %229, %216 : vector<2x32xf32>
    %234 = arith.mulf %228, %232 : vector<2x32xf32>
    %235 = arith.addf %233, %234 : vector<2x32xf32>
    %236 = math.tanh %235 : vector<2x32xf32>
    %237 = arith.mulf %230, %236 : vector<2x32xf32>
    %c16_114 = arith.constant 16 : index
    %c0_115 = arith.constant 0 : index
    %238 = vector.load %arg18[%c16_114, %c0_115] : memref<32x32xf32, #tpu.memory_space<vmem>>, vector<2x32xf32>
    tpu.vector_store %arg18[%c16_114, %c0_115], %237 {strides = array<i32>} : memref<32x32xf32, #tpu.memory_space<vmem>>, vector<2x32xf32>,
    %c18 = arith.constant 18 : index
    %c0_116 = arith.constant 0 : index
    %239 = vector.load %arg19[%c18, %c0_116] : memref<32x128xf32, #tpu.memory_space<vmem>>, vector<2x128xf32>
    %cst_117 = arith.constant dense<0.000000e+00> : vector<2x128xf32>
    %240 = tpu.matmul %237, %65, %cst_117 {dimension_numbers = #tpu.dot_dimension_numbers<[1], [0], [0], [1], [0, 0, 1, 1], [], []>} : vector<2x32xf32>, vector<32x128xf32>, vector<2x128xf32> -> vector<2x128xf32>
    %241 = arith.addf %239, %240 : vector<2x128xf32>
    %242 = arith.negf %241 : vector<2x128xf32>
    %243 = math.exp %242 : vector<2x128xf32>
    %cst_118 = arith.constant 1.000000e+00 : f32
    %244 = vector.broadcast %cst_118 : f32 to vector<2x128xf32>
    %245 = arith.addf %244, %243 : vector<2x128xf32>
    %246 = arith.divf %244, %245 : vector<2x128xf32>
    %247 = vector.extract_strided_slice %246 {offsets = [0, 0], sizes = [2, 32], strides = [1, 1]} : vector<2x128xf32> to vector<2x32xf32>
    %248 = vector.extract_strided_slice %246 {offsets = [0, 32], sizes = [2, 32], strides = [1, 1]} : vector<2x128xf32> to vector<2x32xf32>
    %249 = vector.extract_strided_slice %246 {offsets = [0, 96], sizes = [2, 32], strides = [1, 1]} : vector<2x128xf32> to vector<2x32xf32>
    %250 = vector.extract_strided_slice %241 {offsets = [0, 64], sizes = [2, 32], strides = [1, 1]} : vector<2x128xf32> to vector<2x32xf32>
    %251 = math.tanh %250 : vector<2x32xf32>
    %252 = arith.mulf %248, %235 : vector<2x32xf32>
    %253 = arith.mulf %247, %251 : vector<2x32xf32>
    %254 = arith.addf %252, %253 : vector<2x32xf32>
    %255 = math.tanh %254 : vector<2x32xf32>
    %256 = arith.mulf %249, %255 : vector<2x32xf32>
    %c18_119 = arith.constant 18 : index
    %c0_120 = arith.constant 0 : index
    %257 = vector.load %arg18[%c18_119, %c0_120] : memref<32x32xf32, #tpu.memory_space<vmem>>, vector<2x32xf32>
    tpu.vector_store %arg18[%c18_119, %c0_120], %256 {strides = array<i32>} : memref<32x32xf32, #tpu.memory_space<vmem>>, vector<2x32xf32>,
    %c20 = arith.constant 20 : index
    %c0_121 = arith.constant 0 : index
    %258 = vector.load %arg19[%c20, %c0_121] : memref<32x128xf32, #tpu.memory_space<vmem>>, vector<2x128xf32>
    %cst_122 = arith.constant dense<0.000000e+00> : vector<2x128xf32>
    %259 = tpu.matmul %256, %65, %cst_122 {dimension_numbers = #tpu.dot_dimension_numbers<[1], [0], [0], [1], [0, 0, 1, 1], [], []>} : vector<2x32xf32>, vector<32x128xf32>, vector<2x128xf32> -> vector<2x128xf32>
    %260 = arith.addf %258, %259 : vector<2x128xf32>
    %261 = arith.negf %260 : vector<2x128xf32>
    %262 = math.exp %261 : vector<2x128xf32>
    %cst_123 = arith.constant 1.000000e+00 : f32
    %263 = vector.broadcast %cst_123 : f32 to vector<2x128xf32>
    %264 = arith.addf %263, %262 : vector<2x128xf32>
    %265 = arith.divf %263, %264 : vector<2x128xf32>
    %266 = vector.extract_strided_slice %265 {offsets = [0, 0], sizes = [2, 32], strides = [1, 1]} : vector<2x128xf32> to vector<2x32xf32>
    %267 = vector.extract_strided_slice %265 {offsets = [0, 32], sizes = [2, 32], strides = [1, 1]} : vector<2x128xf32> to vector<2x32xf32>
    %268 = vector.extract_strided_slice %265 {offsets = [0, 96], sizes = [2, 32], strides = [1, 1]} : vector<2x128xf32> to vector<2x32xf32>
    %269 = vector.extract_strided_slice %260 {offsets = [0, 64], sizes = [2, 32], strides = [1, 1]} : vector<2x128xf32> to vector<2x32xf32>
    %270 = math.tanh %269 : vector<2x32xf32>
    %271 = arith.mulf %267, %254 : vector<2x32xf32>
    %272 = arith.mulf %266, %270 : vector<2x32xf32>
    %273 = arith.addf %271, %272 : vector<2x32xf32>
    %274 = math.tanh %273 : vector<2x32xf32>
    %275 = arith.mulf %268, %274 : vector<2x32xf32>
    %c20_124 = arith.constant 20 : index
    %c0_125 = arith.constant 0 : index
    %276 = vector.load %arg18[%c20_124, %c0_125] : memref<32x32xf32, #tpu.memory_space<vmem>>, vector<2x32xf32>
    tpu.vector_store %arg18[%c20_124, %c0_125], %275 {strides = array<i32>} : memref<32x32xf32, #tpu.memory_space<vmem>>, vector<2x32xf32>,
    %c22 = arith.constant 22 : index
    %c0_126 = arith.constant 0 : index
    %277 = vector.load %arg19[%c22, %c0_126] : memref<32x128xf32, #tpu.memory_space<vmem>>, vector<2x128xf32>
    %cst_127 = arith.constant dense<0.000000e+00> : vector<2x128xf32>
    %278 = tpu.matmul %275, %65, %cst_127 {dimension_numbers = #tpu.dot_dimension_numbers<[1], [0], [0], [1], [0, 0, 1, 1], [], []>} : vector<2x32xf32>, vector<32x128xf32>, vector<2x128xf32> -> vector<2x128xf32>
    %279 = arith.addf %277, %278 : vector<2x128xf32>
    %280 = arith.negf %279 : vector<2x128xf32>
    %281 = math.exp %280 : vector<2x128xf32>
    %cst_128 = arith.constant 1.000000e+00 : f32
    %282 = vector.broadcast %cst_128 : f32 to vector<2x128xf32>
    %283 = arith.addf %282, %281 : vector<2x128xf32>
    %284 = arith.divf %282, %283 : vector<2x128xf32>
    %285 = vector.extract_strided_slice %284 {offsets = [0, 0], sizes = [2, 32], strides = [1, 1]} : vector<2x128xf32> to vector<2x32xf32>
    %286 = vector.extract_strided_slice %284 {offsets = [0, 32], sizes = [2, 32], strides = [1, 1]} : vector<2x128xf32> to vector<2x32xf32>
    %287 = vector.extract_strided_slice %284 {offsets = [0, 96], sizes = [2, 32], strides = [1, 1]} : vector<2x128xf32> to vector<2x32xf32>
    %288 = vector.extract_strided_slice %279 {offsets = [0, 64], sizes = [2, 32], strides = [1, 1]} : vector<2x128xf32> to vector<2x32xf32>
    %289 = math.tanh %288 : vector<2x32xf32>
    %290 = arith.mulf %286, %273 : vector<2x32xf32>
    %291 = arith.mulf %285, %289 : vector<2x32xf32>
    %292 = arith.addf %290, %291 : vector<2x32xf32>
    %293 = math.tanh %292 : vector<2x32xf32>
    %294 = arith.mulf %287, %293 : vector<2x32xf32>
    %c22_129 = arith.constant 22 : index
    %c0_130 = arith.constant 0 : index
    %295 = vector.load %arg18[%c22_129, %c0_130] : memref<32x32xf32, #tpu.memory_space<vmem>>, vector<2x32xf32>
    tpu.vector_store %arg18[%c22_129, %c0_130], %294 {strides = array<i32>} : memref<32x32xf32, #tpu.memory_space<vmem>>, vector<2x32xf32>,
    %c24 = arith.constant 24 : index
    %c0_131 = arith.constant 0 : index
    %296 = vector.load %arg19[%c24, %c0_131] : memref<32x128xf32, #tpu.memory_space<vmem>>, vector<2x128xf32>
    %cst_132 = arith.constant dense<0.000000e+00> : vector<2x128xf32>
    %297 = tpu.matmul %294, %65, %cst_132 {dimension_numbers = #tpu.dot_dimension_numbers<[1], [0], [0], [1], [0, 0, 1, 1], [], []>} : vector<2x32xf32>, vector<32x128xf32>, vector<2x128xf32> -> vector<2x128xf32>
    %298 = arith.addf %296, %297 : vector<2x128xf32>
    %299 = arith.negf %298 : vector<2x128xf32>
    %300 = math.exp %299 : vector<2x128xf32>
    %cst_133 = arith.constant 1.000000e+00 : f32
    %301 = vector.broadcast %cst_133 : f32 to vector<2x128xf32>
    %302 = arith.addf %301, %300 : vector<2x128xf32>
    %303 = arith.divf %301, %302 : vector<2x128xf32>
    %304 = vector.extract_strided_slice %303 {offsets = [0, 0], sizes = [2, 32], strides = [1, 1]} : vector<2x128xf32> to vector<2x32xf32>
    %305 = vector.extract_strided_slice %303 {offsets = [0, 32], sizes = [2, 32], strides = [1, 1]} : vector<2x128xf32> to vector<2x32xf32>
    %306 = vector.extract_strided_slice %303 {offsets = [0, 96], sizes = [2, 32], strides = [1, 1]} : vector<2x128xf32> to vector<2x32xf32>
    %307 = vector.extract_strided_slice %298 {offsets = [0, 64], sizes = [2, 32], strides = [1, 1]} : vector<2x128xf32> to vector<2x32xf32>
    %308 = math.tanh %307 : vector<2x32xf32>
    %309 = arith.mulf %305, %292 : vector<2x32xf32>
    %310 = arith.mulf %304, %308 : vector<2x32xf32>
    %311 = arith.addf %309, %310 : vector<2x32xf32>
    %312 = math.tanh %311 : vector<2x32xf32>
    %313 = arith.mulf %306, %312 : vector<2x32xf32>
    %c24_134 = arith.constant 24 : index
    %c0_135 = arith.constant 0 : index
    %314 = vector.load %arg18[%c24_134, %c0_135] : memref<32x32xf32, #tpu.memory_space<vmem>>, vector<2x32xf32>
    tpu.vector_store %arg18[%c24_134, %c0_135], %313 {strides = array<i32>} : memref<32x32xf32, #tpu.memory_space<vmem>>, vector<2x32xf32>,
    %c26 = arith.constant 26 : index
    %c0_136 = arith.constant 0 : index
    %315 = vector.load %arg19[%c26, %c0_136] : memref<32x128xf32, #tpu.memory_space<vmem>>, vector<2x128xf32>
    %cst_137 = arith.constant dense<0.000000e+00> : vector<2x128xf32>
    %316 = tpu.matmul %313, %65, %cst_137 {dimension_numbers = #tpu.dot_dimension_numbers<[1], [0], [0], [1], [0, 0, 1, 1], [], []>} : vector<2x32xf32>, vector<32x128xf32>, vector<2x128xf32> -> vector<2x128xf32>
    %317 = arith.addf %315, %316 : vector<2x128xf32>
    %318 = arith.negf %317 : vector<2x128xf32>
    %319 = math.exp %318 : vector<2x128xf32>
    %cst_138 = arith.constant 1.000000e+00 : f32
    %320 = vector.broadcast %cst_138 : f32 to vector<2x128xf32>
    %321 = arith.addf %320, %319 : vector<2x128xf32>
    %322 = arith.divf %320, %321 : vector<2x128xf32>
    %323 = vector.extract_strided_slice %322 {offsets = [0, 0], sizes = [2, 32], strides = [1, 1]} : vector<2x128xf32> to vector<2x32xf32>
    %324 = vector.extract_strided_slice %322 {offsets = [0, 32], sizes = [2, 32], strides = [1, 1]} : vector<2x128xf32> to vector<2x32xf32>
    %325 = vector.extract_strided_slice %322 {offsets = [0, 96], sizes = [2, 32], strides = [1, 1]} : vector<2x128xf32> to vector<2x32xf32>
    %326 = vector.extract_strided_slice %317 {offsets = [0, 64], sizes = [2, 32], strides = [1, 1]} : vector<2x128xf32> to vector<2x32xf32>
    %327 = math.tanh %326 : vector<2x32xf32>
    %328 = arith.mulf %324, %311 : vector<2x32xf32>
    %329 = arith.mulf %323, %327 : vector<2x32xf32>
    %330 = arith.addf %328, %329 : vector<2x32xf32>
    %331 = math.tanh %330 : vector<2x32xf32>
    %332 = arith.mulf %325, %331 : vector<2x32xf32>
    %c26_139 = arith.constant 26 : index
    %c0_140 = arith.constant 0 : index
    %333 = vector.load %arg18[%c26_139, %c0_140] : memref<32x32xf32, #tpu.memory_space<vmem>>, vector<2x32xf32>
    tpu.vector_store %arg18[%c26_139, %c0_140], %332 {strides = array<i32>} : memref<32x32xf32, #tpu.memory_space<vmem>>, vector<2x32xf32>,
    %c28 = arith.constant 28 : index
    %c0_141 = arith.constant 0 : index
    %334 = vector.load %arg19[%c28, %c0_141] : memref<32x128xf32, #tpu.memory_space<vmem>>, vector<2x128xf32>
    %cst_142 = arith.constant dense<0.000000e+00> : vector<2x128xf32>
    %335 = tpu.matmul %332, %65, %cst_142 {dimension_numbers = #tpu.dot_dimension_numbers<[1], [0], [0], [1], [0, 0, 1, 1], [], []>} : vector<2x32xf32>, vector<32x128xf32>, vector<2x128xf32> -> vector<2x128xf32>
    %336 = arith.addf %334, %335 : vector<2x128xf32>
    %337 = arith.negf %336 : vector<2x128xf32>
    %338 = math.exp %337 : vector<2x128xf32>
    %cst_143 = arith.constant 1.000000e+00 : f32
    %339 = vector.broadcast %cst_143 : f32 to vector<2x128xf32>
    %340 = arith.addf %339, %338 : vector<2x128xf32>
    %341 = arith.divf %339, %340 : vector<2x128xf32>
    %342 = vector.extract_strided_slice %341 {offsets = [0, 0], sizes = [2, 32], strides = [1, 1]} : vector<2x128xf32> to vector<2x32xf32>
    %343 = vector.extract_strided_slice %341 {offsets = [0, 32], sizes = [2, 32], strides = [1, 1]} : vector<2x128xf32> to vector<2x32xf32>
    %344 = vector.extract_strided_slice %341 {offsets = [0, 96], sizes = [2, 32], strides = [1, 1]} : vector<2x128xf32> to vector<2x32xf32>
    %345 = vector.extract_strided_slice %336 {offsets = [0, 64], sizes = [2, 32], strides = [1, 1]} : vector<2x128xf32> to vector<2x32xf32>
    %346 = math.tanh %345 : vector<2x32xf32>
    %347 = arith.mulf %343, %330 : vector<2x32xf32>
    %348 = arith.mulf %342, %346 : vector<2x32xf32>
    %349 = arith.addf %347, %348 : vector<2x32xf32>
    %350 = math.tanh %349 : vector<2x32xf32>
    %351 = arith.mulf %344, %350 : vector<2x32xf32>
    %c28_144 = arith.constant 28 : index
    %c0_145 = arith.constant 0 : index
    %352 = vector.load %arg18[%c28_144, %c0_145] : memref<32x32xf32, #tpu.memory_space<vmem>>, vector<2x32xf32>
    tpu.vector_store %arg18[%c28_144, %c0_145], %351 {strides = array<i32>} : memref<32x32xf32, #tpu.memory_space<vmem>>, vector<2x32xf32>,
    %c30 = arith.constant 30 : index
    %c0_146 = arith.constant 0 : index
    %353 = vector.load %arg19[%c30, %c0_146] : memref<32x128xf32, #tpu.memory_space<vmem>>, vector<2x128xf32>
    %cst_147 = arith.constant dense<0.000000e+00> : vector<2x128xf32>
    %354 = tpu.matmul %351, %65, %cst_147 {dimension_numbers = #tpu.dot_dimension_numbers<[1], [0], [0], [1], [0, 0, 1, 1], [], []>} : vector<2x32xf32>, vector<32x128xf32>, vector<2x128xf32> -> vector<2x128xf32>
    %355 = arith.addf %353, %354 : vector<2x128xf32>
    %356 = arith.negf %355 : vector<2x128xf32>
    %357 = math.exp %356 : vector<2x128xf32>
    %cst_148 = arith.constant 1.000000e+00 : f32
    %358 = vector.broadcast %cst_148 : f32 to vector<2x128xf32>
    %359 = arith.addf %358, %357 : vector<2x128xf32>
    %360 = arith.divf %358, %359 : vector<2x128xf32>
    %361 = vector.extract_strided_slice %360 {offsets = [0, 0], sizes = [2, 32], strides = [1, 1]} : vector<2x128xf32> to vector<2x32xf32>
    %362 = vector.extract_strided_slice %360 {offsets = [0, 32], sizes = [2, 32], strides = [1, 1]} : vector<2x128xf32> to vector<2x32xf32>
    %363 = vector.extract_strided_slice %360 {offsets = [0, 96], sizes = [2, 32], strides = [1, 1]} : vector<2x128xf32> to vector<2x32xf32>
    %364 = vector.extract_strided_slice %355 {offsets = [0, 64], sizes = [2, 32], strides = [1, 1]} : vector<2x128xf32> to vector<2x32xf32>
    %365 = math.tanh %364 : vector<2x32xf32>
    %366 = arith.mulf %362, %349 : vector<2x32xf32>
    %367 = arith.mulf %361, %365 : vector<2x32xf32>
    %368 = arith.addf %366, %367 : vector<2x32xf32>
    %369 = math.tanh %368 : vector<2x32xf32>
    %370 = arith.mulf %363, %369 : vector<2x32xf32>
    %c30_149 = arith.constant 30 : index
    %c0_150 = arith.constant 0 : index
    %371 = vector.load %arg18[%c30_149, %c0_150] : memref<32x32xf32, #tpu.memory_space<vmem>>, vector<2x32xf32>
    tpu.vector_store %arg18[%c30_149, %c0_150], %370 {strides = array<i32>} : memref<32x32xf32, #tpu.memory_space<vmem>>, vector<2x32xf32>,
    %c0_151 = arith.constant 0 : index
    %c0_152 = arith.constant 0 : index
    %372 = vector.load %arg18[%c0_151, %c0_152] : memref<32x32xf32, #tpu.memory_space<vmem>>, vector<32x32xf32>
    %c1_153 = arith.constant 1 : index
    %c0_154 = arith.constant 0 : index
    %c0_155 = arith.constant 0 : index
    %373 = vector.load %arg7[%c1_153, %c0_154, %c0_155] : memref<2x32x128xf32, #tpu.memory_space<vmem>>, vector<1x32x128xf32>
    %374 = vector.shape_cast %373 : vector<1x32x128xf32> to vector<32x128xf32>
    %cst_156 = arith.constant dense<0.000000e+00> : vector<32x128xf32>
    %375 = tpu.matmul %372, %374, %cst_156 {dimension_numbers = #tpu.dot_dimension_numbers<[1], [0], [0], [1], [0, 0, 1, 1], [], []>} : vector<32x32xf32>, vector<32x128xf32>, vector<32x128xf32> -> vector<32x128xf32>
    %c1_157 = arith.constant 1 : index
    %c0_158 = arith.constant 0 : index
    %c0_159 = arith.constant 0 : index
    %376 = vector.load %arg9[%c1_157, %c0_158, %c0_159] : memref<2x1x128xf32, #tpu.memory_space<vmem>>, vector<1x1x128xf32>
    %377 = vector.shape_cast %376 : vector<1x1x128xf32> to vector<1x128xf32>
    %378 = vector.broadcast %377 : vector<1x128xf32> to vector<32x128xf32>
    %379 = arith.addf %375, %378 : vector<32x128xf32>
    %c0_160 = arith.constant 0 : index
    %c0_161 = arith.constant 0 : index
    %380 = vector.load %arg19[%c0_160, %c0_161] : memref<32x128xf32, #tpu.memory_space<vmem>>, vector<32x128xf32>
    tpu.vector_store %arg19[%c0_160, %c0_161], %379 {strides = array<i32>} : memref<32x128xf32, #tpu.memory_space<vmem>>, vector<32x128xf32>,
    %c1_162 = arith.constant 1 : index
    %c0_163 = arith.constant 0 : index
    %c0_164 = arith.constant 0 : index
    %381 = vector.load %arg8[%c1_162, %c0_163, %c0_164] : memref<2x32x128xf32, #tpu.memory_space<vmem>>, vector<1x32x128xf32>
    %382 = vector.shape_cast %381 : vector<1x32x128xf32> to vector<32x128xf32>
    %cst_165 = arith.constant 0.000000e+00 : f32
    %383 = vector.broadcast %cst_165 : f32 to vector<2x32xf32>
    %cst_166 = arith.constant 0.000000e+00 : f32
    %384 = vector.broadcast %cst_166 : f32 to vector<2x32xf32>
    %c0_167 = arith.constant 0 : index
    %c0_168 = arith.constant 0 : index
    %385 = vector.load %arg19[%c0_167, %c0_168] : memref<32x128xf32, #tpu.memory_space<vmem>>, vector<2x128xf32>
    %cst_169 = arith.constant dense<0.000000e+00> : vector<2x128xf32>
    %386 = tpu.matmul %383, %382, %cst_169 {dimension_numbers = #tpu.dot_dimension_numbers<[1], [0], [0], [1], [0, 0, 1, 1], [], []>} : vector<2x32xf32>, vector<32x128xf32>, vector<2x128xf32> -> vector<2x128xf32>
    %387 = arith.addf %385, %386 : vector<2x128xf32>
    %388 = arith.negf %387 : vector<2x128xf32>
    %389 = math.exp %388 : vector<2x128xf32>
    %cst_170 = arith.constant 1.000000e+00 : f32
    %390 = vector.broadcast %cst_170 : f32 to vector<2x128xf32>
    %391 = arith.addf %390, %389 : vector<2x128xf32>
    %392 = arith.divf %390, %391 : vector<2x128xf32>
    %393 = vector.extract_strided_slice %392 {offsets = [0, 0], sizes = [2, 32], strides = [1, 1]} : vector<2x128xf32> to vector<2x32xf32>
    %394 = vector.extract_strided_slice %392 {offsets = [0, 32], sizes = [2, 32], strides = [1, 1]} : vector<2x128xf32> to vector<2x32xf32>
    %395 = vector.extract_strided_slice %392 {offsets = [0, 96], sizes = [2, 32], strides = [1, 1]} : vector<2x128xf32> to vector<2x32xf32>
    %396 = vector.extract_strided_slice %387 {offsets = [0, 64], sizes = [2, 32], strides = [1, 1]} : vector<2x128xf32> to vector<2x32xf32>
    %397 = math.tanh %396 : vector<2x32xf32>
    %398 = arith.mulf %394, %384 : vector<2x32xf32>
    %399 = arith.mulf %393, %397 : vector<2x32xf32>
    %400 = arith.addf %398, %399 : vector<2x32xf32>
    %401 = math.tanh %400 : vector<2x32xf32>
    %402 = arith.mulf %395, %401 : vector<2x32xf32>
    %c0_171 = arith.constant 0 : index
    %c0_172 = arith.constant 0 : index
    %403 = vector.load %arg18[%c0_171, %c0_172] : memref<32x32xf32, #tpu.memory_space<vmem>>, vector<2x32xf32>
    tpu.vector_store %arg18[%c0_171, %c0_172], %402 {strides = array<i32>} : memref<32x32xf32, #tpu.memory_space<vmem>>, vector<2x32xf32>,
    %c2_173 = arith.constant 2 : index
    %c0_174 = arith.constant 0 : index
    %404 = vector.load %arg19[%c2_173, %c0_174] : memref<32x128xf32, #tpu.memory_space<vmem>>, vector<2x128xf32>
    %cst_175 = arith.constant dense<0.000000e+00> : vector<2x128xf32>
    %405 = tpu.matmul %402, %382, %cst_175 {dimension_numbers = #tpu.dot_dimension_numbers<[1], [0], [0], [1], [0, 0, 1, 1], [], []>} : vector<2x32xf32>, vector<32x128xf32>, vector<2x128xf32> -> vector<2x128xf32>
    %406 = arith.addf %404, %405 : vector<2x128xf32>
    %407 = arith.negf %406 : vector<2x128xf32>
    %408 = math.exp %407 : vector<2x128xf32>
    %cst_176 = arith.constant 1.000000e+00 : f32
    %409 = vector.broadcast %cst_176 : f32 to vector<2x128xf32>
    %410 = arith.addf %409, %408 : vector<2x128xf32>
    %411 = arith.divf %409, %410 : vector<2x128xf32>
    %412 = vector.extract_strided_slice %411 {offsets = [0, 0], sizes = [2, 32], strides = [1, 1]} : vector<2x128xf32> to vector<2x32xf32>
    %413 = vector.extract_strided_slice %411 {offsets = [0, 32], sizes = [2, 32], strides = [1, 1]} : vector<2x128xf32> to vector<2x32xf32>
    %414 = vector.extract_strided_slice %411 {offsets = [0, 96], sizes = [2, 32], strides = [1, 1]} : vector<2x128xf32> to vector<2x32xf32>
    %415 = vector.extract_strided_slice %406 {offsets = [0, 64], sizes = [2, 32], strides = [1, 1]} : vector<2x128xf32> to vector<2x32xf32>
    %416 = math.tanh %415 : vector<2x32xf32>
    %417 = arith.mulf %413, %400 : vector<2x32xf32>
    %418 = arith.mulf %412, %416 : vector<2x32xf32>
    %419 = arith.addf %417, %418 : vector<2x32xf32>
    %420 = math.tanh %419 : vector<2x32xf32>
    %421 = arith.mulf %414, %420 : vector<2x32xf32>
    %c2_177 = arith.constant 2 : index
    %c0_178 = arith.constant 0 : index
    %422 = vector.load %arg18[%c2_177, %c0_178] : memref<32x32xf32, #tpu.memory_space<vmem>>, vector<2x32xf32>
    tpu.vector_store %arg18[%c2_177, %c0_178], %421 {strides = array<i32>} : memref<32x32xf32, #tpu.memory_space<vmem>>, vector<2x32xf32>,
    %c4_179 = arith.constant 4 : index
    %c0_180 = arith.constant 0 : index
    %423 = vector.load %arg19[%c4_179, %c0_180] : memref<32x128xf32, #tpu.memory_space<vmem>>, vector<2x128xf32>
    %cst_181 = arith.constant dense<0.000000e+00> : vector<2x128xf32>
    %424 = tpu.matmul %421, %382, %cst_181 {dimension_numbers = #tpu.dot_dimension_numbers<[1], [0], [0], [1], [0, 0, 1, 1], [], []>} : vector<2x32xf32>, vector<32x128xf32>, vector<2x128xf32> -> vector<2x128xf32>
    %425 = arith.addf %423, %424 : vector<2x128xf32>
    %426 = arith.negf %425 : vector<2x128xf32>
    %427 = math.exp %426 : vector<2x128xf32>
    %cst_182 = arith.constant 1.000000e+00 : f32
    %428 = vector.broadcast %cst_182 : f32 to vector<2x128xf32>
    %429 = arith.addf %428, %427 : vector<2x128xf32>
    %430 = arith.divf %428, %429 : vector<2x128xf32>
    %431 = vector.extract_strided_slice %430 {offsets = [0, 0], sizes = [2, 32], strides = [1, 1]} : vector<2x128xf32> to vector<2x32xf32>
    %432 = vector.extract_strided_slice %430 {offsets = [0, 32], sizes = [2, 32], strides = [1, 1]} : vector<2x128xf32> to vector<2x32xf32>
    %433 = vector.extract_strided_slice %430 {offsets = [0, 96], sizes = [2, 32], strides = [1, 1]} : vector<2x128xf32> to vector<2x32xf32>
    %434 = vector.extract_strided_slice %425 {offsets = [0, 64], sizes = [2, 32], strides = [1, 1]} : vector<2x128xf32> to vector<2x32xf32>
    %435 = math.tanh %434 : vector<2x32xf32>
    %436 = arith.mulf %432, %419 : vector<2x32xf32>
    %437 = arith.mulf %431, %435 : vector<2x32xf32>
    %438 = arith.addf %436, %437 : vector<2x32xf32>
    %439 = math.tanh %438 : vector<2x32xf32>
    %440 = arith.mulf %433, %439 : vector<2x32xf32>
    %c4_183 = arith.constant 4 : index
    %c0_184 = arith.constant 0 : index
    %441 = vector.load %arg18[%c4_183, %c0_184] : memref<32x32xf32, #tpu.memory_space<vmem>>, vector<2x32xf32>
    tpu.vector_store %arg18[%c4_183, %c0_184], %440 {strides = array<i32>} : memref<32x32xf32, #tpu.memory_space<vmem>>, vector<2x32xf32>,
    %c6_185 = arith.constant 6 : index
    %c0_186 = arith.constant 0 : index
    %442 = vector.load %arg19[%c6_185, %c0_186] : memref<32x128xf32, #tpu.memory_space<vmem>>, vector<2x128xf32>
    %cst_187 = arith.constant dense<0.000000e+00> : vector<2x128xf32>
    %443 = tpu.matmul %440, %382, %cst_187 {dimension_numbers = #tpu.dot_dimension_numbers<[1], [0], [0], [1], [0, 0, 1, 1], [], []>} : vector<2x32xf32>, vector<32x128xf32>, vector<2x128xf32> -> vector<2x128xf32>
    %444 = arith.addf %442, %443 : vector<2x128xf32>
    %445 = arith.negf %444 : vector<2x128xf32>
    %446 = math.exp %445 : vector<2x128xf32>
    %cst_188 = arith.constant 1.000000e+00 : f32
    %447 = vector.broadcast %cst_188 : f32 to vector<2x128xf32>
    %448 = arith.addf %447, %446 : vector<2x128xf32>
    %449 = arith.divf %447, %448 : vector<2x128xf32>
    %450 = vector.extract_strided_slice %449 {offsets = [0, 0], sizes = [2, 32], strides = [1, 1]} : vector<2x128xf32> to vector<2x32xf32>
    %451 = vector.extract_strided_slice %449 {offsets = [0, 32], sizes = [2, 32], strides = [1, 1]} : vector<2x128xf32> to vector<2x32xf32>
    %452 = vector.extract_strided_slice %449 {offsets = [0, 96], sizes = [2, 32], strides = [1, 1]} : vector<2x128xf32> to vector<2x32xf32>
    %453 = vector.extract_strided_slice %444 {offsets = [0, 64], sizes = [2, 32], strides = [1, 1]} : vector<2x128xf32> to vector<2x32xf32>
    %454 = math.tanh %453 : vector<2x32xf32>
    %455 = arith.mulf %451, %438 : vector<2x32xf32>
    %456 = arith.mulf %450, %454 : vector<2x32xf32>
    %457 = arith.addf %455, %456 : vector<2x32xf32>
    %458 = math.tanh %457 : vector<2x32xf32>
    %459 = arith.mulf %452, %458 : vector<2x32xf32>
    %c6_189 = arith.constant 6 : index
    %c0_190 = arith.constant 0 : index
    %460 = vector.load %arg18[%c6_189, %c0_190] : memref<32x32xf32, #tpu.memory_space<vmem>>, vector<2x32xf32>
    tpu.vector_store %arg18[%c6_189, %c0_190], %459 {strides = array<i32>} : memref<32x32xf32, #tpu.memory_space<vmem>>, vector<2x32xf32>,
    %c8_191 = arith.constant 8 : index
    %c0_192 = arith.constant 0 : index
    %461 = vector.load %arg19[%c8_191, %c0_192] : memref<32x128xf32, #tpu.memory_space<vmem>>, vector<2x128xf32>
    %cst_193 = arith.constant dense<0.000000e+00> : vector<2x128xf32>
    %462 = tpu.matmul %459, %382, %cst_193 {dimension_numbers = #tpu.dot_dimension_numbers<[1], [0], [0], [1], [0, 0, 1, 1], [], []>} : vector<2x32xf32>, vector<32x128xf32>, vector<2x128xf32> -> vector<2x128xf32>
    %463 = arith.addf %461, %462 : vector<2x128xf32>
    %464 = arith.negf %463 : vector<2x128xf32>
    %465 = math.exp %464 : vector<2x128xf32>
    %cst_194 = arith.constant 1.000000e+00 : f32
    %466 = vector.broadcast %cst_194 : f32 to vector<2x128xf32>
    %467 = arith.addf %466, %465 : vector<2x128xf32>
    %468 = arith.divf %466, %467 : vector<2x128xf32>
    %469 = vector.extract_strided_slice %468 {offsets = [0, 0], sizes = [2, 32], strides = [1, 1]} : vector<2x128xf32> to vector<2x32xf32>
    %470 = vector.extract_strided_slice %468 {offsets = [0, 32], sizes = [2, 32], strides = [1, 1]} : vector<2x128xf32> to vector<2x32xf32>
    %471 = vector.extract_strided_slice %468 {offsets = [0, 96], sizes = [2, 32], strides = [1, 1]} : vector<2x128xf32> to vector<2x32xf32>
    %472 = vector.extract_strided_slice %463 {offsets = [0, 64], sizes = [2, 32], strides = [1, 1]} : vector<2x128xf32> to vector<2x32xf32>
    %473 = math.tanh %472 : vector<2x32xf32>
    %474 = arith.mulf %470, %457 : vector<2x32xf32>
    %475 = arith.mulf %469, %473 : vector<2x32xf32>
    %476 = arith.addf %474, %475 : vector<2x32xf32>
    %477 = math.tanh %476 : vector<2x32xf32>
    %478 = arith.mulf %471, %477 : vector<2x32xf32>
    %c8_195 = arith.constant 8 : index
    %c0_196 = arith.constant 0 : index
    %479 = vector.load %arg18[%c8_195, %c0_196] : memref<32x32xf32, #tpu.memory_space<vmem>>, vector<2x32xf32>
    tpu.vector_store %arg18[%c8_195, %c0_196], %478 {strides = array<i32>} : memref<32x32xf32, #tpu.memory_space<vmem>>, vector<2x32xf32>,
    %c10_197 = arith.constant 10 : index
    %c0_198 = arith.constant 0 : index
    %480 = vector.load %arg19[%c10_197, %c0_198] : memref<32x128xf32, #tpu.memory_space<vmem>>, vector<2x128xf32>
    %cst_199 = arith.constant dense<0.000000e+00> : vector<2x128xf32>
    %481 = tpu.matmul %478, %382, %cst_199 {dimension_numbers = #tpu.dot_dimension_numbers<[1], [0], [0], [1], [0, 0, 1, 1], [], []>} : vector<2x32xf32>, vector<32x128xf32>, vector<2x128xf32> -> vector<2x128xf32>
    %482 = arith.addf %480, %481 : vector<2x128xf32>
    %483 = arith.negf %482 : vector<2x128xf32>
    %484 = math.exp %483 : vector<2x128xf32>
    %cst_200 = arith.constant 1.000000e+00 : f32
    %485 = vector.broadcast %cst_200 : f32 to vector<2x128xf32>
    %486 = arith.addf %485, %484 : vector<2x128xf32>
    %487 = arith.divf %485, %486 : vector<2x128xf32>
    %488 = vector.extract_strided_slice %487 {offsets = [0, 0], sizes = [2, 32], strides = [1, 1]} : vector<2x128xf32> to vector<2x32xf32>
    %489 = vector.extract_strided_slice %487 {offsets = [0, 32], sizes = [2, 32], strides = [1, 1]} : vector<2x128xf32> to vector<2x32xf32>
    %490 = vector.extract_strided_slice %487 {offsets = [0, 96], sizes = [2, 32], strides = [1, 1]} : vector<2x128xf32> to vector<2x32xf32>
    %491 = vector.extract_strided_slice %482 {offsets = [0, 64], sizes = [2, 32], strides = [1, 1]} : vector<2x128xf32> to vector<2x32xf32>
    %492 = math.tanh %491 : vector<2x32xf32>
    %493 = arith.mulf %489, %476 : vector<2x32xf32>
    %494 = arith.mulf %488, %492 : vector<2x32xf32>
    %495 = arith.addf %493, %494 : vector<2x32xf32>
    %496 = math.tanh %495 : vector<2x32xf32>
    %497 = arith.mulf %490, %496 : vector<2x32xf32>
    %c10_201 = arith.constant 10 : index
    %c0_202 = arith.constant 0 : index
    %498 = vector.load %arg18[%c10_201, %c0_202] : memref<32x32xf32, #tpu.memory_space<vmem>>, vector<2x32xf32>
    tpu.vector_store %arg18[%c10_201, %c0_202], %497 {strides = array<i32>} : memref<32x32xf32, #tpu.memory_space<vmem>>, vector<2x32xf32>,
    %c12_203 = arith.constant 12 : index
    %c0_204 = arith.constant 0 : index
    %499 = vector.load %arg19[%c12_203, %c0_204] : memref<32x128xf32, #tpu.memory_space<vmem>>, vector<2x128xf32>
    %cst_205 = arith.constant dense<0.000000e+00> : vector<2x128xf32>
    %500 = tpu.matmul %497, %382, %cst_205 {dimension_numbers = #tpu.dot_dimension_numbers<[1], [0], [0], [1], [0, 0, 1, 1], [], []>} : vector<2x32xf32>, vector<32x128xf32>, vector<2x128xf32> -> vector<2x128xf32>
    %501 = arith.addf %499, %500 : vector<2x128xf32>
    %502 = arith.negf %501 : vector<2x128xf32>
    %503 = math.exp %502 : vector<2x128xf32>
    %cst_206 = arith.constant 1.000000e+00 : f32
    %504 = vector.broadcast %cst_206 : f32 to vector<2x128xf32>
    %505 = arith.addf %504, %503 : vector<2x128xf32>
    %506 = arith.divf %504, %505 : vector<2x128xf32>
    %507 = vector.extract_strided_slice %506 {offsets = [0, 0], sizes = [2, 32], strides = [1, 1]} : vector<2x128xf32> to vector<2x32xf32>
    %508 = vector.extract_strided_slice %506 {offsets = [0, 32], sizes = [2, 32], strides = [1, 1]} : vector<2x128xf32> to vector<2x32xf32>
    %509 = vector.extract_strided_slice %506 {offsets = [0, 96], sizes = [2, 32], strides = [1, 1]} : vector<2x128xf32> to vector<2x32xf32>
    %510 = vector.extract_strided_slice %501 {offsets = [0, 64], sizes = [2, 32], strides = [1, 1]} : vector<2x128xf32> to vector<2x32xf32>
    %511 = math.tanh %510 : vector<2x32xf32>
    %512 = arith.mulf %508, %495 : vector<2x32xf32>
    %513 = arith.mulf %507, %511 : vector<2x32xf32>
    %514 = arith.addf %512, %513 : vector<2x32xf32>
    %515 = math.tanh %514 : vector<2x32xf32>
    %516 = arith.mulf %509, %515 : vector<2x32xf32>
    %c12_207 = arith.constant 12 : index
    %c0_208 = arith.constant 0 : index
    %517 = vector.load %arg18[%c12_207, %c0_208] : memref<32x32xf32, #tpu.memory_space<vmem>>, vector<2x32xf32>
    tpu.vector_store %arg18[%c12_207, %c0_208], %516 {strides = array<i32>} : memref<32x32xf32, #tpu.memory_space<vmem>>, vector<2x32xf32>,
    %c14_209 = arith.constant 14 : index
    %c0_210 = arith.constant 0 : index
    %518 = vector.load %arg19[%c14_209, %c0_210] : memref<32x128xf32, #tpu.memory_space<vmem>>, vector<2x128xf32>
    %cst_211 = arith.constant dense<0.000000e+00> : vector<2x128xf32>
    %519 = tpu.matmul %516, %382, %cst_211 {dimension_numbers = #tpu.dot_dimension_numbers<[1], [0], [0], [1], [0, 0, 1, 1], [], []>} : vector<2x32xf32>, vector<32x128xf32>, vector<2x128xf32> -> vector<2x128xf32>
    %520 = arith.addf %518, %519 : vector<2x128xf32>
    %521 = arith.negf %520 : vector<2x128xf32>
    %522 = math.exp %521 : vector<2x128xf32>
    %cst_212 = arith.constant 1.000000e+00 : f32
    %523 = vector.broadcast %cst_212 : f32 to vector<2x128xf32>
    %524 = arith.addf %523, %522 : vector<2x128xf32>
    %525 = arith.divf %523, %524 : vector<2x128xf32>
    %526 = vector.extract_strided_slice %525 {offsets = [0, 0], sizes = [2, 32], strides = [1, 1]} : vector<2x128xf32> to vector<2x32xf32>
    %527 = vector.extract_strided_slice %525 {offsets = [0, 32], sizes = [2, 32], strides = [1, 1]} : vector<2x128xf32> to vector<2x32xf32>
    %528 = vector.extract_strided_slice %525 {offsets = [0, 96], sizes = [2, 32], strides = [1, 1]} : vector<2x128xf32> to vector<2x32xf32>
    %529 = vector.extract_strided_slice %520 {offsets = [0, 64], sizes = [2, 32], strides = [1, 1]} : vector<2x128xf32> to vector<2x32xf32>
    %530 = math.tanh %529 : vector<2x32xf32>
    %531 = arith.mulf %527, %514 : vector<2x32xf32>
    %532 = arith.mulf %526, %530 : vector<2x32xf32>
    %533 = arith.addf %531, %532 : vector<2x32xf32>
    %534 = math.tanh %533 : vector<2x32xf32>
    %535 = arith.mulf %528, %534 : vector<2x32xf32>
    %c14_213 = arith.constant 14 : index
    %c0_214 = arith.constant 0 : index
    %536 = vector.load %arg18[%c14_213, %c0_214] : memref<32x32xf32, #tpu.memory_space<vmem>>, vector<2x32xf32>
    tpu.vector_store %arg18[%c14_213, %c0_214], %535 {strides = array<i32>} : memref<32x32xf32, #tpu.memory_space<vmem>>, vector<2x32xf32>,
    %c16_215 = arith.constant 16 : index
    %c0_216 = arith.constant 0 : index
    %537 = vector.load %arg19[%c16_215, %c0_216] : memref<32x128xf32, #tpu.memory_space<vmem>>, vector<2x128xf32>
    %cst_217 = arith.constant dense<0.000000e+00> : vector<2x128xf32>
    %538 = tpu.matmul %535, %382, %cst_217 {dimension_numbers = #tpu.dot_dimension_numbers<[1], [0], [0], [1], [0, 0, 1, 1], [], []>} : vector<2x32xf32>, vector<32x128xf32>, vector<2x128xf32> -> vector<2x128xf32>
    %539 = arith.addf %537, %538 : vector<2x128xf32>
    %540 = arith.negf %539 : vector<2x128xf32>
    %541 = math.exp %540 : vector<2x128xf32>
    %cst_218 = arith.constant 1.000000e+00 : f32
    %542 = vector.broadcast %cst_218 : f32 to vector<2x128xf32>
    %543 = arith.addf %542, %541 : vector<2x128xf32>
    %544 = arith.divf %542, %543 : vector<2x128xf32>
    %545 = vector.extract_strided_slice %544 {offsets = [0, 0], sizes = [2, 32], strides = [1, 1]} : vector<2x128xf32> to vector<2x32xf32>
    %546 = vector.extract_strided_slice %544 {offsets = [0, 32], sizes = [2, 32], strides = [1, 1]} : vector<2x128xf32> to vector<2x32xf32>
    %547 = vector.extract_strided_slice %544 {offsets = [0, 96], sizes = [2, 32], strides = [1, 1]} : vector<2x128xf32> to vector<2x32xf32>
    %548 = vector.extract_strided_slice %539 {offsets = [0, 64], sizes = [2, 32], strides = [1, 1]} : vector<2x128xf32> to vector<2x32xf32>
    %549 = math.tanh %548 : vector<2x32xf32>
    %550 = arith.mulf %546, %533 : vector<2x32xf32>
    %551 = arith.mulf %545, %549 : vector<2x32xf32>
    %552 = arith.addf %550, %551 : vector<2x32xf32>
    %553 = math.tanh %552 : vector<2x32xf32>
    %554 = arith.mulf %547, %553 : vector<2x32xf32>
    %c16_219 = arith.constant 16 : index
    %c0_220 = arith.constant 0 : index
    %555 = vector.load %arg18[%c16_219, %c0_220] : memref<32x32xf32, #tpu.memory_space<vmem>>, vector<2x32xf32>
    tpu.vector_store %arg18[%c16_219, %c0_220], %554 {strides = array<i32>} : memref<32x32xf32, #tpu.memory_space<vmem>>, vector<2x32xf32>,
    %c18_221 = arith.constant 18 : index
    %c0_222 = arith.constant 0 : index
    %556 = vector.load %arg19[%c18_221, %c0_222] : memref<32x128xf32, #tpu.memory_space<vmem>>, vector<2x128xf32>
    %cst_223 = arith.constant dense<0.000000e+00> : vector<2x128xf32>
    %557 = tpu.matmul %554, %382, %cst_223 {dimension_numbers = #tpu.dot_dimension_numbers<[1], [0], [0], [1], [0, 0, 1, 1], [], []>} : vector<2x32xf32>, vector<32x128xf32>, vector<2x128xf32> -> vector<2x128xf32>
    %558 = arith.addf %556, %557 : vector<2x128xf32>
    %559 = arith.negf %558 : vector<2x128xf32>
    %560 = math.exp %559 : vector<2x128xf32>
    %cst_224 = arith.constant 1.000000e+00 : f32
    %561 = vector.broadcast %cst_224 : f32 to vector<2x128xf32>
    %562 = arith.addf %561, %560 : vector<2x128xf32>
    %563 = arith.divf %561, %562 : vector<2x128xf32>
    %564 = vector.extract_strided_slice %563 {offsets = [0, 0], sizes = [2, 32], strides = [1, 1]} : vector<2x128xf32> to vector<2x32xf32>
    %565 = vector.extract_strided_slice %563 {offsets = [0, 32], sizes = [2, 32], strides = [1, 1]} : vector<2x128xf32> to vector<2x32xf32>
    %566 = vector.extract_strided_slice %563 {offsets = [0, 96], sizes = [2, 32], strides = [1, 1]} : vector<2x128xf32> to vector<2x32xf32>
    %567 = vector.extract_strided_slice %558 {offsets = [0, 64], sizes = [2, 32], strides = [1, 1]} : vector<2x128xf32> to vector<2x32xf32>
    %568 = math.tanh %567 : vector<2x32xf32>
    %569 = arith.mulf %565, %552 : vector<2x32xf32>
    %570 = arith.mulf %564, %568 : vector<2x32xf32>
    %571 = arith.addf %569, %570 : vector<2x32xf32>
    %572 = math.tanh %571 : vector<2x32xf32>
    %573 = arith.mulf %566, %572 : vector<2x32xf32>
    %c18_225 = arith.constant 18 : index
    %c0_226 = arith.constant 0 : index
    %574 = vector.load %arg18[%c18_225, %c0_226] : memref<32x32xf32, #tpu.memory_space<vmem>>, vector<2x32xf32>
    tpu.vector_store %arg18[%c18_225, %c0_226], %573 {strides = array<i32>} : memref<32x32xf32, #tpu.memory_space<vmem>>, vector<2x32xf32>,
    %c20_227 = arith.constant 20 : index
    %c0_228 = arith.constant 0 : index
    %575 = vector.load %arg19[%c20_227, %c0_228] : memref<32x128xf32, #tpu.memory_space<vmem>>, vector<2x128xf32>
    %cst_229 = arith.constant dense<0.000000e+00> : vector<2x128xf32>
    %576 = tpu.matmul %573, %382, %cst_229 {dimension_numbers = #tpu.dot_dimension_numbers<[1], [0], [0], [1], [0, 0, 1, 1], [], []>} : vector<2x32xf32>, vector<32x128xf32>, vector<2x128xf32> -> vector<2x128xf32>
    %577 = arith.addf %575, %576 : vector<2x128xf32>
    %578 = arith.negf %577 : vector<2x128xf32>
    %579 = math.exp %578 : vector<2x128xf32>
    %cst_230 = arith.constant 1.000000e+00 : f32
    %580 = vector.broadcast %cst_230 : f32 to vector<2x128xf32>
    %581 = arith.addf %580, %579 : vector<2x128xf32>
    %582 = arith.divf %580, %581 : vector<2x128xf32>
    %583 = vector.extract_strided_slice %582 {offsets = [0, 0], sizes = [2, 32], strides = [1, 1]} : vector<2x128xf32> to vector<2x32xf32>
    %584 = vector.extract_strided_slice %582 {offsets = [0, 32], sizes = [2, 32], strides = [1, 1]} : vector<2x128xf32> to vector<2x32xf32>
    %585 = vector.extract_strided_slice %582 {offsets = [0, 96], sizes = [2, 32], strides = [1, 1]} : vector<2x128xf32> to vector<2x32xf32>
    %586 = vector.extract_strided_slice %577 {offsets = [0, 64], sizes = [2, 32], strides = [1, 1]} : vector<2x128xf32> to vector<2x32xf32>
    %587 = math.tanh %586 : vector<2x32xf32>
    %588 = arith.mulf %584, %571 : vector<2x32xf32>
    %589 = arith.mulf %583, %587 : vector<2x32xf32>
    %590 = arith.addf %588, %589 : vector<2x32xf32>
    %591 = math.tanh %590 : vector<2x32xf32>
    %592 = arith.mulf %585, %591 : vector<2x32xf32>
    %c20_231 = arith.constant 20 : index
    %c0_232 = arith.constant 0 : index
    %593 = vector.load %arg18[%c20_231, %c0_232] : memref<32x32xf32, #tpu.memory_space<vmem>>, vector<2x32xf32>
    tpu.vector_store %arg18[%c20_231, %c0_232], %592 {strides = array<i32>} : memref<32x32xf32, #tpu.memory_space<vmem>>, vector<2x32xf32>,
    %c22_233 = arith.constant 22 : index
    %c0_234 = arith.constant 0 : index
    %594 = vector.load %arg19[%c22_233, %c0_234] : memref<32x128xf32, #tpu.memory_space<vmem>>, vector<2x128xf32>
    %cst_235 = arith.constant dense<0.000000e+00> : vector<2x128xf32>
    %595 = tpu.matmul %592, %382, %cst_235 {dimension_numbers = #tpu.dot_dimension_numbers<[1], [0], [0], [1], [0, 0, 1, 1], [], []>} : vector<2x32xf32>, vector<32x128xf32>, vector<2x128xf32> -> vector<2x128xf32>
    %596 = arith.addf %594, %595 : vector<2x128xf32>
    %597 = arith.negf %596 : vector<2x128xf32>
    %598 = math.exp %597 : vector<2x128xf32>
    %cst_236 = arith.constant 1.000000e+00 : f32
    %599 = vector.broadcast %cst_236 : f32 to vector<2x128xf32>
    %600 = arith.addf %599, %598 : vector<2x128xf32>
    %601 = arith.divf %599, %600 : vector<2x128xf32>
    %602 = vector.extract_strided_slice %601 {offsets = [0, 0], sizes = [2, 32], strides = [1, 1]} : vector<2x128xf32> to vector<2x32xf32>
    %603 = vector.extract_strided_slice %601 {offsets = [0, 32], sizes = [2, 32], strides = [1, 1]} : vector<2x128xf32> to vector<2x32xf32>
    %604 = vector.extract_strided_slice %601 {offsets = [0, 96], sizes = [2, 32], strides = [1, 1]} : vector<2x128xf32> to vector<2x32xf32>
    %605 = vector.extract_strided_slice %596 {offsets = [0, 64], sizes = [2, 32], strides = [1, 1]} : vector<2x128xf32> to vector<2x32xf32>
    %606 = math.tanh %605 : vector<2x32xf32>
    %607 = arith.mulf %603, %590 : vector<2x32xf32>
    %608 = arith.mulf %602, %606 : vector<2x32xf32>
    %609 = arith.addf %607, %608 : vector<2x32xf32>
    %610 = math.tanh %609 : vector<2x32xf32>
    %611 = arith.mulf %604, %610 : vector<2x32xf32>
    %c22_237 = arith.constant 22 : index
    %c0_238 = arith.constant 0 : index
    %612 = vector.load %arg18[%c22_237, %c0_238] : memref<32x32xf32, #tpu.memory_space<vmem>>, vector<2x32xf32>
    tpu.vector_store %arg18[%c22_237, %c0_238], %611 {strides = array<i32>} : memref<32x32xf32, #tpu.memory_space<vmem>>, vector<2x32xf32>,
    %c24_239 = arith.constant 24 : index
    %c0_240 = arith.constant 0 : index
    %613 = vector.load %arg19[%c24_239, %c0_240] : memref<32x128xf32, #tpu.memory_space<vmem>>, vector<2x128xf32>
    %cst_241 = arith.constant dense<0.000000e+00> : vector<2x128xf32>
    %614 = tpu.matmul %611, %382, %cst_241 {dimension_numbers = #tpu.dot_dimension_numbers<[1], [0], [0], [1], [0, 0, 1, 1], [], []>} : vector<2x32xf32>, vector<32x128xf32>, vector<2x128xf32> -> vector<2x128xf32>
    %615 = arith.addf %613, %614 : vector<2x128xf32>
    %616 = arith.negf %615 : vector<2x128xf32>
    %617 = math.exp %616 : vector<2x128xf32>
    %cst_242 = arith.constant 1.000000e+00 : f32
    %618 = vector.broadcast %cst_242 : f32 to vector<2x128xf32>
    %619 = arith.addf %618, %617 : vector<2x128xf32>
    %620 = arith.divf %618, %619 : vector<2x128xf32>
    %621 = vector.extract_strided_slice %620 {offsets = [0, 0], sizes = [2, 32], strides = [1, 1]} : vector<2x128xf32> to vector<2x32xf32>
    %622 = vector.extract_strided_slice %620 {offsets = [0, 32], sizes = [2, 32], strides = [1, 1]} : vector<2x128xf32> to vector<2x32xf32>
    %623 = vector.extract_strided_slice %620 {offsets = [0, 96], sizes = [2, 32], strides = [1, 1]} : vector<2x128xf32> to vector<2x32xf32>
    %624 = vector.extract_strided_slice %615 {offsets = [0, 64], sizes = [2, 32], strides = [1, 1]} : vector<2x128xf32> to vector<2x32xf32>
    %625 = math.tanh %624 : vector<2x32xf32>
    %626 = arith.mulf %622, %609 : vector<2x32xf32>
    %627 = arith.mulf %621, %625 : vector<2x32xf32>
    %628 = arith.addf %626, %627 : vector<2x32xf32>
    %629 = math.tanh %628 : vector<2x32xf32>
    %630 = arith.mulf %623, %629 : vector<2x32xf32>
    %c24_243 = arith.constant 24 : index
    %c0_244 = arith.constant 0 : index
    %631 = vector.load %arg18[%c24_243, %c0_244] : memref<32x32xf32, #tpu.memory_space<vmem>>, vector<2x32xf32>
    tpu.vector_store %arg18[%c24_243, %c0_244], %630 {strides = array<i32>} : memref<32x32xf32, #tpu.memory_space<vmem>>, vector<2x32xf32>,
    %c26_245 = arith.constant 26 : index
    %c0_246 = arith.constant 0 : index
    %632 = vector.load %arg19[%c26_245, %c0_246] : memref<32x128xf32, #tpu.memory_space<vmem>>, vector<2x128xf32>
    %cst_247 = arith.constant dense<0.000000e+00> : vector<2x128xf32>
    %633 = tpu.matmul %630, %382, %cst_247 {dimension_numbers = #tpu.dot_dimension_numbers<[1], [0], [0], [1], [0, 0, 1, 1], [], []>} : vector<2x32xf32>, vector<32x128xf32>, vector<2x128xf32> -> vector<2x128xf32>
    %634 = arith.addf %632, %633 : vector<2x128xf32>
    %635 = arith.negf %634 : vector<2x128xf32>
    %636 = math.exp %635 : vector<2x128xf32>
    %cst_248 = arith.constant 1.000000e+00 : f32
    %637 = vector.broadcast %cst_248 : f32 to vector<2x128xf32>
    %638 = arith.addf %637, %636 : vector<2x128xf32>
    %639 = arith.divf %637, %638 : vector<2x128xf32>
    %640 = vector.extract_strided_slice %639 {offsets = [0, 0], sizes = [2, 32], strides = [1, 1]} : vector<2x128xf32> to vector<2x32xf32>
    %641 = vector.extract_strided_slice %639 {offsets = [0, 32], sizes = [2, 32], strides = [1, 1]} : vector<2x128xf32> to vector<2x32xf32>
    %642 = vector.extract_strided_slice %639 {offsets = [0, 96], sizes = [2, 32], strides = [1, 1]} : vector<2x128xf32> to vector<2x32xf32>
    %643 = vector.extract_strided_slice %634 {offsets = [0, 64], sizes = [2, 32], strides = [1, 1]} : vector<2x128xf32> to vector<2x32xf32>
    %644 = math.tanh %643 : vector<2x32xf32>
    %645 = arith.mulf %641, %628 : vector<2x32xf32>
    %646 = arith.mulf %640, %644 : vector<2x32xf32>
    %647 = arith.addf %645, %646 : vector<2x32xf32>
    %648 = math.tanh %647 : vector<2x32xf32>
    %649 = arith.mulf %642, %648 : vector<2x32xf32>
    %c26_249 = arith.constant 26 : index
    %c0_250 = arith.constant 0 : index
    %650 = vector.load %arg18[%c26_249, %c0_250] : memref<32x32xf32, #tpu.memory_space<vmem>>, vector<2x32xf32>
    tpu.vector_store %arg18[%c26_249, %c0_250], %649 {strides = array<i32>} : memref<32x32xf32, #tpu.memory_space<vmem>>, vector<2x32xf32>,
    %c28_251 = arith.constant 28 : index
    %c0_252 = arith.constant 0 : index
    %651 = vector.load %arg19[%c28_251, %c0_252] : memref<32x128xf32, #tpu.memory_space<vmem>>, vector<2x128xf32>
    %cst_253 = arith.constant dense<0.000000e+00> : vector<2x128xf32>
    %652 = tpu.matmul %649, %382, %cst_253 {dimension_numbers = #tpu.dot_dimension_numbers<[1], [0], [0], [1], [0, 0, 1, 1], [], []>} : vector<2x32xf32>, vector<32x128xf32>, vector<2x128xf32> -> vector<2x128xf32>
    %653 = arith.addf %651, %652 : vector<2x128xf32>
    %654 = arith.negf %653 : vector<2x128xf32>
    %655 = math.exp %654 : vector<2x128xf32>
    %cst_254 = arith.constant 1.000000e+00 : f32
    %656 = vector.broadcast %cst_254 : f32 to vector<2x128xf32>
    %657 = arith.addf %656, %655 : vector<2x128xf32>
    %658 = arith.divf %656, %657 : vector<2x128xf32>
    %659 = vector.extract_strided_slice %658 {offsets = [0, 0], sizes = [2, 32], strides = [1, 1]} : vector<2x128xf32> to vector<2x32xf32>
    %660 = vector.extract_strided_slice %658 {offsets = [0, 32], sizes = [2, 32], strides = [1, 1]} : vector<2x128xf32> to vector<2x32xf32>
    %661 = vector.extract_strided_slice %658 {offsets = [0, 96], sizes = [2, 32], strides = [1, 1]} : vector<2x128xf32> to vector<2x32xf32>
    %662 = vector.extract_strided_slice %653 {offsets = [0, 64], sizes = [2, 32], strides = [1, 1]} : vector<2x128xf32> to vector<2x32xf32>
    %663 = math.tanh %662 : vector<2x32xf32>
    %664 = arith.mulf %660, %647 : vector<2x32xf32>
    %665 = arith.mulf %659, %663 : vector<2x32xf32>
    %666 = arith.addf %664, %665 : vector<2x32xf32>
    %667 = math.tanh %666 : vector<2x32xf32>
    %668 = arith.mulf %661, %667 : vector<2x32xf32>
    %c28_255 = arith.constant 28 : index
    %c0_256 = arith.constant 0 : index
    %669 = vector.load %arg18[%c28_255, %c0_256] : memref<32x32xf32, #tpu.memory_space<vmem>>, vector<2x32xf32>
    tpu.vector_store %arg18[%c28_255, %c0_256], %668 {strides = array<i32>} : memref<32x32xf32, #tpu.memory_space<vmem>>, vector<2x32xf32>,
    %c30_257 = arith.constant 30 : index
    %c0_258 = arith.constant 0 : index
    %670 = vector.load %arg19[%c30_257, %c0_258] : memref<32x128xf32, #tpu.memory_space<vmem>>, vector<2x128xf32>
    %cst_259 = arith.constant dense<0.000000e+00> : vector<2x128xf32>
    %671 = tpu.matmul %668, %382, %cst_259 {dimension_numbers = #tpu.dot_dimension_numbers<[1], [0], [0], [1], [0, 0, 1, 1], [], []>} : vector<2x32xf32>, vector<32x128xf32>, vector<2x128xf32> -> vector<2x128xf32>
    %672 = arith.addf %670, %671 : vector<2x128xf32>
    %673 = arith.negf %672 : vector<2x128xf32>
    %674 = math.exp %673 : vector<2x128xf32>
    %cst_260 = arith.constant 1.000000e+00 : f32
    %675 = vector.broadcast %cst_260 : f32 to vector<2x128xf32>
    %676 = arith.addf %675, %674 : vector<2x128xf32>
    %677 = arith.divf %675, %676 : vector<2x128xf32>
    %678 = vector.extract_strided_slice %677 {offsets = [0, 0], sizes = [2, 32], strides = [1, 1]} : vector<2x128xf32> to vector<2x32xf32>
    %679 = vector.extract_strided_slice %677 {offsets = [0, 32], sizes = [2, 32], strides = [1, 1]} : vector<2x128xf32> to vector<2x32xf32>
    %680 = vector.extract_strided_slice %677 {offsets = [0, 96], sizes = [2, 32], strides = [1, 1]} : vector<2x128xf32> to vector<2x32xf32>
    %681 = vector.extract_strided_slice %672 {offsets = [0, 64], sizes = [2, 32], strides = [1, 1]} : vector<2x128xf32> to vector<2x32xf32>
    %682 = math.tanh %681 : vector<2x32xf32>
    %683 = arith.mulf %679, %666 : vector<2x32xf32>
    %684 = arith.mulf %678, %682 : vector<2x32xf32>
    %685 = arith.addf %683, %684 : vector<2x32xf32>
    %686 = math.tanh %685 : vector<2x32xf32>
    %687 = arith.mulf %680, %686 : vector<2x32xf32>
    %c30_261 = arith.constant 30 : index
    %c0_262 = arith.constant 0 : index
    %688 = vector.load %arg18[%c30_261, %c0_262] : memref<32x32xf32, #tpu.memory_space<vmem>>, vector<2x32xf32>
    tpu.vector_store %arg18[%c30_261, %c0_262], %687 {strides = array<i32>} : memref<32x32xf32, #tpu.memory_space<vmem>>, vector<2x32xf32>,
    %c2_i32 = arith.constant 2 : i32
    %689 = arith.muli %arg0, %c2_i32 : i32
    %c0_i32 = arith.constant 0 : i32
    %690 = vector.broadcast %c0_i32 : i32 to vector<32x32xi32>
    %c0_263 = arith.constant 0 : index
    %c0_264 = arith.constant 0 : index
    %691 = vector.load %arg11[%c0_263, %c0_264] : memref<32x32xi32, #tpu.memory_space<vmem>>, vector<32x32xi32>
    %c0_i32_265 = arith.constant 0 : i32
    %692 = vector.broadcast %c0_i32_265 : i32 to vector<32x32xi32>
    %693 = arith.cmpi eq, %691, %692 : vector<32x32xi32>
    %c0_i32_266 = arith.constant 0 : i32
    %694 = arith.addi %689, %c0_i32_266 : i32
    %695 = arith.index_cast %694 : i32 to index
    %696 = memref.load %arg1[%695] : memref<2xi32, #tpu.memory_space<smem>>
    %c0_i32_267 = arith.constant 0 : i32
    %697 = vector.broadcast %696 : i32 to vector<32x32xi32>
    %698 = vector.broadcast %c0_i32_267 : i32 to vector<32x32xi32>
    %699 = arith.select %693, %697, %698 : vector<32x32xi1>, vector<32x32xi32>
    %700 = arith.addi %690, %699 : vector<32x32xi32>
    %c0_268 = arith.constant 0 : index
    %c0_269 = arith.constant 0 : index
    %701 = vector.load %arg11[%c0_268, %c0_269] : memref<32x32xi32, #tpu.memory_space<vmem>>, vector<32x32xi32>
    %c1_i32 = arith.constant 1 : i32
    %702 = vector.broadcast %c1_i32 : i32 to vector<32x32xi32>
    %703 = arith.cmpi eq, %701, %702 : vector<32x32xi32>
    %c1_i32_270 = arith.constant 1 : i32
    %704 = arith.addi %689, %c1_i32_270 : i32
    %705 = arith.index_cast %704 : i32 to index
    %706 = memref.load %arg1[%705] : memref<2xi32, #tpu.memory_space<smem>>
    %c0_i32_271 = arith.constant 0 : i32
    %707 = vector.broadcast %706 : i32 to vector<32x32xi32>
    %708 = vector.broadcast %c0_i32_271 : i32 to vector<32x32xi32>
    %709 = arith.select %703, %707, %708 : vector<32x32xi1>, vector<32x32xi32>
    %710 = arith.addi %700, %709 : vector<32x32xi32>
    %c0_272 = arith.constant 0 : index
    %c0_273 = arith.constant 0 : index
    %711 = vector.load %arg10[%c0_272, %c0_273] : memref<32x32xi32, #tpu.memory_space<vmem>>, vector<32x32xi32>
    %712 = arith.cmpi slt, %711, %710 : vector<32x32xi32>
    %c0_274 = arith.constant 0 : index
    %c0_275 = arith.constant 0 : index
    %713 = vector.load %arg18[%c0_274, %c0_275] : memref<32x32xf32, #tpu.memory_space<vmem>>, vector<32x32xf32>
    %cst_276 = arith.constant 0.000000e+00 : f32
    %714 = vector.broadcast %cst_276 : f32 to vector<32x32xf32>
    %715 = arith.select %712, %713, %714 : vector<32x32xi1>, vector<32x32xf32>
    %c0_277 = arith.constant 0 : index
    %c0_278 = arith.constant 0 : index
    %716 = vector.load %arg12[%c0_277, %c0_278] : memref<32x32xf32, #tpu.memory_space<vmem>>, vector<32x32xf32>
    %cst_279 = arith.constant dense<0.000000e+00> : vector<32x32xf32>
    %717 = tpu.matmul %715, %716, %cst_279 {dimension_numbers = #tpu.dot_dimension_numbers<[1], [0], [0], [1], [0, 0, 1, 1], [], []>} : vector<32x32xf32>, vector<32x32xf32>, vector<32x32xf32> -> vector<32x32xf32>
    %c0_280 = arith.constant 0 : index
    %c0_281 = arith.constant 0 : index
    %718 = vector.load %arg14[%c0_280, %c0_281] : memref<1x32xf32, #tpu.memory_space<vmem>>, vector<1x32xf32>
    %719 = vector.broadcast %718 : vector<1x32xf32> to vector<32x32xf32>
    %720 = arith.addf %717, %719 : vector<32x32xf32>
    %cst_282 = arith.constant 0.000000e+00 : f32
    %721 = vector.broadcast %cst_282 : f32 to vector<32x32xf32>
    %722 = arith.maximumf %720, %721 : vector<32x32xf32>
    %c0_283 = arith.constant 0 : index
    %c0_284 = arith.constant 0 : index
    %723 = vector.load %arg13[%c0_283, %c0_284] : memref<32x128xf32, #tpu.memory_space<vmem>>, vector<32x128xf32>
    %cst_285 = arith.constant dense<0.000000e+00> : vector<32x128xf32>
    %724 = tpu.matmul %722, %723, %cst_285 {dimension_numbers = #tpu.dot_dimension_numbers<[1], [0], [0], [1], [0, 0, 1, 1], [], []>} : vector<32x32xf32>, vector<32x128xf32>, vector<32x128xf32> -> vector<32x128xf32>
    %c0_286 = arith.constant 0 : index
    %c0_287 = arith.constant 0 : index
    %725 = vector.load %arg15[%c0_286, %c0_287] : memref<1x128xf32, #tpu.memory_space<vmem>>, vector<1x128xf32>
    %726 = vector.broadcast %725 : vector<1x128xf32> to vector<32x128xf32>
    %727 = arith.addf %724, %726 : vector<32x128xf32>
    %c0_288 = arith.constant 0 : index
    %c0_289 = arith.constant 0 : index
    %c0_290 = arith.constant 0 : index
    %728 = vector.load %arg16[%c0_288, %c0_289, %c0_290] : memref<1x32x128xf32, #tpu.memory_space<vmem>>, vector<1x32x128xf32>
    %729 = vector.shape_cast %728 : vector<1x32x128xf32> to vector<32x128xf32>
    %730 = vector.shape_cast %727 : vector<32x128xf32> to vector<1x32x128xf32>
    tpu.vector_store %arg16[%c0_288, %c0_289, %c0_290], %730 {strides = array<i32>} : memref<1x32x128xf32, #tpu.memory_space<vmem>>, vector<1x32x128xf32>,
    return
  }
  func.func @transform_0(%arg0: i32, %arg1: memref<2xi32, #tpu.memory_space<smem>>) -> (i32, i32, i32) {
    %c0_i32 = arith.constant 0 : i32
    %c0_i32_0 = arith.constant 0 : i32
    %c0_i32_1 = arith.constant 0 : i32
    return %arg0, %c0_i32, %c0_i32_0 : i32, i32, i32
  }
  func.func @transform_1(%arg0: i32, %arg1: memref<2xi32, #tpu.memory_space<smem>>) -> (i32, i32, i32) {
    %c0_i32 = arith.constant 0 : i32
    %c0_i32_0 = arith.constant 0 : i32
    %c0_i32_1 = arith.constant 0 : i32
    %c0_i32_2 = arith.constant 0 : i32
    return %c0_i32, %c0_i32_0, %c0_i32_1 : i32, i32, i32
  }
  func.func @transform_2(%arg0: i32, %arg1: memref<2xi32, #tpu.memory_space<smem>>) -> (i32, i32, i32) {
    %c0_i32 = arith.constant 0 : i32
    %c0_i32_0 = arith.constant 0 : i32
    %c0_i32_1 = arith.constant 0 : i32
    %c0_i32_2 = arith.constant 0 : i32
    return %c0_i32, %c0_i32_0, %c0_i32_1 : i32, i32, i32
  }
  func.func @transform_3(%arg0: i32, %arg1: memref<2xi32, #tpu.memory_space<smem>>) -> (i32, i32) {
    %c0_i32 = arith.constant 0 : i32
    %c0_i32_0 = arith.constant 0 : i32
    %c0_i32_1 = arith.constant 0 : i32
    return %c0_i32, %c0_i32_0 : i32, i32
  }
  func.func @transform_4(%arg0: i32, %arg1: memref<2xi32, #tpu.memory_space<smem>>) -> (i32, i32) {
    %c0_i32 = arith.constant 0 : i32
    %c0_i32_0 = arith.constant 0 : i32
    %c0_i32_1 = arith.constant 0 : i32
    return %c0_i32, %c0_i32_0 : i32, i32
  }
  func.func @transform_5(%arg0: i32, %arg1: memref<2xi32, #tpu.memory_space<smem>>) -> (i32, i32, i32) {
    %c0_i32 = arith.constant 0 : i32
    %c0_i32_0 = arith.constant 0 : i32
    %c0_i32_1 = arith.constant 0 : i32
    %c0_i32_2 = arith.constant 0 : i32
    return %c0_i32, %c0_i32_0, %c0_i32_1 : i32, i32, i32
  }
  func.func @transform_6(%arg0: i32, %arg1: memref<2xi32, #tpu.memory_space<smem>>) -> (i32, i32, i32) {
    %c0_i32 = arith.constant 0 : i32
    %c0_i32_0 = arith.constant 0 : i32
    %c0_i32_1 = arith.constant 0 : i32
    %c0_i32_2 = arith.constant 0 : i32
    return %c0_i32, %c0_i32_0, %c0_i32_1 : i32, i32, i32
  }
  func.func @transform_7(%arg0: i32, %arg1: memref<2xi32, #tpu.memory_space<smem>>) -> (i32, i32, i32) {
    %c0_i32 = arith.constant 0 : i32
    %c0_i32_0 = arith.constant 0 : i32
    %c0_i32_1 = arith.constant 0 : i32
    %c0_i32_2 = arith.constant 0 : i32
    return %c0_i32, %c0_i32_0, %c0_i32_1 : i32, i32, i32
  }
  func.func @transform_8(%arg0: i32, %arg1: memref<2xi32, #tpu.memory_space<smem>>) -> (i32, i32) {
    %c0_i32 = arith.constant 0 : i32
    %c0_i32_0 = arith.constant 0 : i32
    %c0_i32_1 = arith.constant 0 : i32
    return %c0_i32, %c0_i32_0 : i32, i32
  }
  func.func @transform_9(%arg0: i32, %arg1: memref<2xi32, #tpu.memory_space<smem>>) -> (i32, i32) {
    %c0_i32 = arith.constant 0 : i32
    %c0_i32_0 = arith.constant 0 : i32
    %c0_i32_1 = arith.constant 0 : i32
    return %c0_i32, %c0_i32_0 : i32, i32
  }
  func.func @transform_10(%arg0: i32, %arg1: memref<2xi32, #tpu.memory_space<smem>>) -> (i32, i32) {
    %c0_i32 = arith.constant 0 : i32
    %c0_i32_0 = arith.constant 0 : i32
    %c0_i32_1 = arith.constant 0 : i32
    return %c0_i32, %c0_i32_0 : i32, i32
  }
  func.func @transform_11(%arg0: i32, %arg1: memref<2xi32, #tpu.memory_space<smem>>) -> (i32, i32) {
    %c0_i32 = arith.constant 0 : i32
    %c0_i32_0 = arith.constant 0 : i32
    %c0_i32_1 = arith.constant 0 : i32
    return %c0_i32, %c0_i32_0 : i32, i32
  }
  func.func @transform_12(%arg0: i32, %arg1: memref<2xi32, #tpu.memory_space<smem>>) -> (i32, i32) {
    %c0_i32 = arith.constant 0 : i32
    %c0_i32_0 = arith.constant 0 : i32
    %c0_i32_1 = arith.constant 0 : i32
    return %c0_i32, %c0_i32_0 : i32, i32
  }
  func.func @transform_13(%arg0: i32, %arg1: memref<2xi32, #tpu.memory_space<smem>>) -> (i32, i32) {
    %c0_i32 = arith.constant 0 : i32
    %c0_i32_0 = arith.constant 0 : i32
    %c0_i32_1 = arith.constant 0 : i32
    return %c0_i32, %c0_i32_0 : i32, i32
  }
  func.func @transform_14(%arg0: i32, %arg1: memref<2xi32, #tpu.memory_space<smem>>) -> (i32, i32, i32) {
    %c0_i32 = arith.constant 0 : i32
    %c0_i32_0 = arith.constant 0 : i32
    %c0_i32_1 = arith.constant 0 : i32
    return %arg0, %c0_i32, %c0_i32_0 : i32, i32, i32
  }
}

</mosaic_0001>

<bundles_post_ra>
// kernel: tpu_custom_call.1
= control target key start
LH: loop header
LB: loop body
LE: loop exit
PB: predicated region body
PF: predicated region fallthrough
CT: control target
= control target key end

     0   :  { %s7627_s0 = inlined_call_operand.hbm [shape: s32[2], index: 0, kind: input, shape index: {}]   ;;  %s7628_s1 = inlined_call_operand.vmem [shape: f32[1,72,144], index: 1, kind: input, shape index: {}]   ;;  %s7629_s2 = inlined_call_operand.hbm [shape: f32[6,144,128], index: 2, kind: input, shape index: {}]   ;;  %s7630_s3 = inlined_call_operand.vmem [shape: f32[2,1,128], index: 3, kind: input, shape index: {}]   ;;  %s7631_s4 = inlined_call_operand.vmem [shape: f32[256,32], index: 4, kind: input, shape index: {}]   ;;  %s7632_s5 = inlined_call_operand.hbm [shape: f32[1,32], index: 5, kind: input, shape index: {}]   ;;  %s7633_s6 = inlined_call_operand.vmem [shape: f32[2,32,128], index: 6, kind: input, shape index: {}]   ;;  %s7634_s7 = inlined_call_operand.vmem [shape: f32[2,32,128], index: 7, kind: input, shape index: {}]   ;;  %s7635_s8 = inlined_call_operand.vmem [shape: f32[2,1,128], index: 8, kind: input, shape index: {}]   ;;  %s7636_s9 = inlined_call_operand.vmem [shape: s32[32,32], index: 9, kind: input, shape index: {}]   ;;  %s7637_s10 = inlined_call_operand.vmem [shape: s32[32,32], index: 10, kind: input, shape index: {}]   ;;  %s7638_s11 = inlined_call_operand.hbm [shape: f32[32,32], index: 11, kind: input, shape index: {}]   ;;  %s7639_s12 = inlined_call_operand.hbm [shape: f32[32,128], index: 12, kind: input, shape index: {}]   ;;  %s7640_s13 = inlined_call_operand.vmem [shape: f32[1,32], index: 13, kind: input, shape index: {}]   ;;  %s7641_s14 = inlined_call_operand.vmem [shape: f32[1,128], index: 14, kind: input, shape index: {}]   ;;  %s7642_s15 = inlined_call_operand.hbm [shape: f32[1,32,128], index: 15, kind: output, shape index: {}]  }
   0x1   :  { %s6394_s20 = scalar_lea.hbm %s7627_s0, 16 }
   0x2   :  { %p6395_p0 = scmp.ne.s32.totalorder %s7627_s0, %s6394_s20  ;;  %p6398_p1 = scmp.lt.u32.totalorder %s6394_s20, %s7627_s0 }
   0x4   :  { %p6400_p2 = pnand %p6398_p1, %p6395_p0 }
   0x6   :  { %6403 = shalt.err (!%p6400_p2)  }
   0x7   :  { %s6524_s25 = smov [#allocation6]  }
   0x8   :  { %21 = dma.hbm_to_smem %s7627_s0, 16, %s6524_s25, [#allocation5] }
   0x9   :  { %6514 = dma.done.wait [#allocation5], 16 }
   0xa   :  { %6515 = vsyncadd [#allocation5], 4294967280 }
   0xb   :  { %23 = sfence }
   0xc   :  { %24 = vsyncpa [#allocation8], 0 }
   0xd   :  { %25 = vsyncpa [#allocation11], 0 }
   0xe   :  { %26 = vsyncpa [#allocation14], 0 }
   0xf   :  { %27 = vsyncpa [#allocation9], 0  ;;  %s6525_s28 = smov [#allocation10]   ;;  %s6526_s30 = smov [#allocation7]  }
  0x10   :  { %s52_s29 = sshll.u32 %s6525_s28, 4  ;;  %s35_s16 = sshll.u32 %s6526_s30, 4  ;;  %s53_s29 = int_to_ptr.vmem [resolvable:$true] %s52_s29  ;;  %s6629_s16 = int_to_ptr.vmem [resolvable:$true] %s35_s16 }
  0x11   :  { %s6404_s19 = scalar_lea.hbm %s7632_s5, 16 }
  0x12   :  { %p6405_p3 = scmp.ne.s32.totalorder %s7632_s5, %s6404_s19  ;;  %p6408_p4 = scmp.lt.u32.totalorder %s6404_s19, %s7632_s5 }
  0x14   :  { %p6410_p5 = pnand %p6408_p4, %p6405_p3 }
  0x16   :  { %6413 = shalt.err (!%p6410_p5)
}
  0x17   :  { %s6414_s23 = scalar_lea.vmem %s53_s29, 16  ;;  %s6418_s24 = scalar_lea.vmem %s53_s29, 32 }
  0x18   :  { %p6415_p6 = scmp.ne.s32.totalorder %s53_s29, %s6414_s23  ;;  %p6419_p7 = scmp.lt.s32.totalorder %s53_s29, %s53_s29 }
  0x19   :  { %p6420_p8 = scmp.lt.s32.totalorder %s6418_s24, %s6414_s23 }
  0x1b   :  { %p6421_p9 = por %p6420_p8, %p6419_p7 }
  0x1d   :  { %p6422_p10 = pnand %p6421_p9, %p6415_p6 }
  0x1f   :  { %6425 = shalt.err (!%p6422_p10)
}
  0x20   :  { %55 = dma.hbm_to_vmem [thread:$0]  %s7632_s5, 16, %s53_s29, [#allocation11]  }
  0x21   :  { %s6426_s30 = scalar_lea.hbm %s7629_s2, 13824 }
  0x22   :  { %p6427_p11 = scmp.ne.s32.totalorder %s7629_s2, %s6426_s30  ;;  %p6430_p12 = scmp.lt.u32.totalorder %s6426_s30, %s7629_s2 }
  0x24   :  { %p6432_p13 = pnand %p6430_p12, %p6427_p11 }
  0x26   :  { %6435 = shalt.err (!%p6432_p13)
}
  0x27   :  { %s6436_s0 = scalar_lea.vmem %s6629_s16, 13824  ;;  %p6441_p1 = scmp.lt.s32.totalorder %s6629_s16, %s6629_s16 }
  0x28   :  { %p6437_p0 = scmp.ne.s32.totalorder %s6629_s16, %s6436_s0  ;;  %p6442_p2 = scmp.lt.s32.totalorder %s6436_s0, %s6436_s0 }
  0x2a   :  { %p6443_p3 = por %p6442_p2, %p6441_p1 }
  0x2c   :  { %p6444_p4 = pnand %p6443_p3, %p6437_p0 }
  0x2e   :  { %6447 = shalt.err (!%p6444_p4)
}
  0x2f   :  { %s6527_s5 = smov 128   ;;  %s6528_s29 = smov 8  }
  0x30   :  { %41 = dma.hbm_to_vmem [thread:$0]  %s7629_s2, 13824, %s6629_s16, [#allocation8], %s6527_s5, %s6527_s5, %s6528_s29  }
  0x31   :  { %s6529_s23 = smov [#allocation12]   ;;  %s6530_s25 = smov [#allocation13]  }
  0x32   :  { %s71_s24 = sshll.u32 %s6529_s23, 4  ;;  %s83_s26 = sshll.u32 %s6530_s25, 4  ;;  %s72_s24 = int_to_ptr.vmem [resolvable:$true] %s71_s24  ;;  %s6663_s26 = int_to_ptr.vmem [resolvable:$true] %s83_s26 }
  0x33   :  { %s6448_s30 = scalar_lea.hbm %s7638_s11, 512 }
  0x34   :  { %p6449_p5 = scmp.ne.s32.totalorder %s7638_s11, %s6448_s30  ;;  %p6452_p6 = scmp.lt.u32.totalorder %s6448_s30, %s7638_s11 }
  0x36   :  { %p6454_p7 = pnand %p6452_p6, %p6449_p5 }
  0x38   :  { %6457 = shalt.err (!%p6454_p7)
}
  0x39   :  { %s6458_s2 = scalar_lea.vmem %s72_s24, 512  ;;  %p6463_p9 = scmp.lt.s32.totalorder %s72_s24, %s72_s24 }
  0x3a   :  { %p6459_p8 = scmp.ne.s32.totalorder %s72_s24, %s6458_s2  ;;  %p6464_p10 = scmp.lt.s32.totalorder %s6458_s2, %s6458_s2 }
  0x3c   :  { %p6465_p11 = por %p6464_p10, %p6463_p9 }
  0x3e   :  { %p6466_p12 = pnand %p6465_p11, %p6459_p8 }
  0x40   :  { %6469 = shalt.err (!%p6466_p12)
}
  0x41   :  { %77 = dma.hbm_to_vmem [thread:$0]  %s7638_s11, 512, %s72_s24, [#allocation11], %s6527_s5, %s6527_s5, %s6528_s29  }
  0x42   :  { %s6470_s23 = scalar_lea.hbm %s7639_s12, 512 }
  0x43   :  { %p6471_p13 = scmp.ne.s32.totalorder %s7639_s12, %s6470_s23  ;;  %p6474_p0 = scmp.lt.u32.totalorder %s6470_s23, %s7639_s12 }
  0x45   :  { %p6476_p1 = pnand %p6474_p0, %p6471_p13 }
  0x47   :  { %6479 = shalt.err (!%p6476_p1)
}
  0x48   :  { %s6480_s17 = scalar_lea.vmem %s6663_s26, 512  ;;  %p6485_p3 = scmp.lt.s32.totalorder %s6663_s26, %s6663_s26 }
  0x49   :  { %p6481_p2 = scmp.ne.s32.totalorder %s6663_s26, %s6480_s17  ;;  %p6486_p4 = scmp.lt.s32.totalorder %s6480_s17, %s6480_s17 }
  0x4b   :  { %p6487_p5 = por %p6486_p4, %p6485_p3 }
  0x4d   :  { %p6488_p6 = pnand %p6487_p5, %p6481_p2 }
  0x4f   :  { %6491 = shalt.err (!%p6488_p6)
}
  0x50   :  { %89 = dma.hbm_to_vmem [thread:$0]  %s7639_s12, 512, %s6663_s26, [#allocation14], %s6527_s5, %s6527_s5, %s6528_s29  }
  0x51   :  { %6516 = dma.done.wait [#allocation8], 13824  }
  0x52   :  { %6517 = vsyncadd [#allocation8], 4294953472 }
  0x53   :  { %6518 = dma.done.wait [#allocation11], 528  }
  0x54   :  { %6519 = vsyncadd [#allocation11], 4294966768 }
  0x55   :  { %6520 = dma.done.wait [#allocation14], 512  }
  0x56   :  { %6521 = vsyncadd [#allocation14], 4294966784  ;;  %v6531_v0 = vmov 0.0|0.0   ;;  %v137_v1 = vld [vmem:[#allocation7 + $0x90] sm:$0xff]  ;;  %v138_v2 = vld [vmem:[#allocation7 + $0x98] sm:$0xff]  ;;  %vm188_vm0 = vcmask 130048  }
  0x57   :  { %5707 = vmatprep.subr.bf16.mxu0 %v6531_v0  ;;  %5734 = vmatprep.subr.bf16.mxu1 %v6531_v0  ;;  %v114_v3 = vld [vmem:[#allocation7] sm:$0xff]  ;;  %v5708_v4 = vpack.c.bf16 %v138_v2, %v137_v1  ;;  %v115_v5 = vld [vmem:[#allocation7 + $0x8] sm:$0xff]  ;;  %v116_v9 = vld [vmem:[#allocation7 + $0x10] sm:$0xff]  ;;  %vm165_vm1 = vcmask 1045504   ;;  %vm403_vm2 = vcmask 1043456   ;;  %vm604_vm3 = vcmask 1041408  }
  0x58   :  { %v139_v6 = vld [vmem:[#allocation7 + $0xa0] sm:$0xff]  ;;  %v140_v7 = vld [vmem:[#allocation7 + $0xa8] sm:$0xff]  ;;  %v5735_v8 = vpack.c.bf16 %v115_v5, %v114_v3  ;;  %v117_v10 = vld [vmem:[#allocation7 + $0x18] sm:$0xff]  ;;  %vm6532_vm4 = vmmov 0   ;;  %vm1110_vm5 = vcmask 261120   ;;  %s6534_s24 = smov 64  }
  0x59   :  { %5709 = vmatpush1.bf16.msra.mxu0 %v5708_v4  ;;  %v5711_v11 = vpack.c.bf16 %v140_v7, %v139_v6  ;;  %v5738_v12 = vpack.c.bf16 %v117_v10, %v116_v9  ;;  %v141_v13 = vld [vmem:[#allocation7 + $0xb0] sm:$0xff]  ;;  %v142_v14 = vld [vmem:[#allocation7 + $0xb8] sm:$0xff]  ;;  %v118_v15 = vld [vmem:[#allocation7 + $0x20] sm:$0xff]  ;;  %vm1338_vm6 = vcmask 254976   ;;  %s5052_s17 = sld [smem:[#allocation6 + $0x1]] }
  0x5a   :  { %5736 = vmatpush1.bf16.msra.mxu1 %v5735_v8  ;;  %5710 = vmatprep.subr.bf16.mxu0 %v6531_v0  ;;  %v119_v16 = vld [vmem:[#allocation7 + $0x28] sm:$0xff]  ;;  %v5714_v17 = vpack.c.bf16 %v142_v14, %v141_v13  ;;  %v143_v19 = vld [vmem:[#allocation7 + $0xc0] sm:$0xff]  ;;  %v120_v21 = vld [vmem:[#allocation7 + $0x30] sm:$0xff] }
  0x5b   :  { %5737 = vmatprep.subr.bf16.mxu1 %v6531_v0  ;;  %v5741_v18 = vpack.c.bf16 %v119_v16, %v118_v15  ;;  %v144_v20 = vld [vmem:[#allocation7 + $0xc8] sm:$0xff]  ;;  %v121_v22 = vld [vmem:[#allocation7 + $0x38] sm:$0xff]  ;;  %v145_v24 = vld [vmem:[#allocation7 + $0xd0] sm:$0xff] }
  0x5c   :  { %v5717_v23 = vpack.c.bf16 %v144_v20, %v143_v19  ;;  %v5744_v25 = vpack.c.bf16 %v121_v22, %v120_v21  ;;  %v146_v26 = vld [vmem:[#allocation7 + $0xd8] sm:$0xff]  ;;  %v133_v28 = vld [vmem:[%s7628_s1 + $0x8] sm:$0xfc]  ;;  %v122_v29 = vld [vmem:[#allocation7 + $0x40] sm:$0xff] }
  0x5d   :  { %5712 = vmatpush1.bf16.msra.mxu0 %v5711_v11  ;;  %v6710_v27 = vld [vmem:[%s7628_s1 + $0x18] sm:$0xff]  ;;  %v123_v30 = vld [vmem:[#allocation7 + $0x48] sm:$0xff]  ;;  %v169_v31 = vrot.slane %v133_v28, 2  ;;  %v5720_v34 = vpack.c.bf16 %v146_v26, %v145_v24  ;;  %v147_v37 = vld [vmem:[#allocation7 + $0xe0] sm:$0xff] }
  0x5e   :  { %5739 = vmatpush1.bf16.msra.mxu1 %v5738_v12  ;;  %5713 = vmatprep.subr.bf16.mxu0 %v6531_v0  ;;  %v170_v32 = vrot.slane %v6710_v27, 2  ;;  %v107_v33 = vld [vmem:[%s7628_s1 + $0x8] sm:$0xff]  ;;  %v5747_v36 = vpack.c.bf16 %v123_v30, %v122_v29  ;;  %v124_v39 = vld [vmem:[#allocation7 + $0x50] sm:$0xff]  ;;  %v125_v40 = vld [vmem:[#allocation7 + $0x58] sm:$0xff] }
  0x5f   :  { %5740 = vmatprep.subr.bf16.mxu1 %v6531_v0  ;;  %4947 = vmatprep.mubr.msk.f32.mxu1 %vm188_vm0, %v107_v33  ;;  %v148_v38 = vld [vmem:[#allocation7 + $0xe8] sm:$0xff]  ;;  %v5750_v42 = vpack.c.bf16 %v125_v40, %v124_v39  ;;  %v149_v43 = vld [vmem:[#allocation7 + $0xf0] sm:$0xff]  ;;  %v150_v44 = vld [vmem:[#allocation7 + $0xf8] sm:$0xff] }
  0x60   :  { %v171_v35 = vsel %vm165_vm1, %v169_v31, %v170_v32  ;;  %v5723_v41 = vpack.c.bf16 %v148_v38, %v147_v37  ;;  %v126_v45 = vld [vmem:[#allocation7 + $0x60] sm:$0xff]  ;;  %v127_v46 = vld [vmem:[#allocation7 + $0x68] sm:$0xff]  ;;  %v5726_v47 = vpack.c.bf16 %v150_v44, %v149_v43  ;;  %v128_v51 = vld [vmem:[#allocation7 + $0x70] sm:$0xff] }
  0x61   :  { %5715 = vmatpush1.bf16.msra.mxu0 %v5714_v17  ;;  %4943 = vmatprep.mubr.msk.f32.mxu0 %vm188_vm0, %v171_v35  ;;  %v5753_v48 = vpack.c.bf16 %v127_v46, %v126_v45  ;;  %v151_v49 = vld [vmem:[#allocation7 + $0x100] sm:$0xff]  ;;  %v152_v50 = vld [vmem:[#allocation7 + $0x108] sm:$0xff]  ;;  %v129_v52 = vld [vmem:[#allocation7 + $0x78] sm:$0xff] }
  0x62   :  { %5742 = vmatpush1.bf16.msra.mxu1 %v5741_v18  ;;  %5716 = vmatprep.subr.bf16.mxu0 %v6531_v0  ;;  %v5729_v53 = vpack.c.bf16 %v152_v50, %v151_v49  ;;  %v153_v54 = vld [vmem:[#allocation7 + $0x110] sm:$0xff]  ;;  %v5756_v55 = vpack.c.bf16 %v129_v52, %v128_v51  ;;  %v154_v56 = vld [vmem:[#allocation7 + $0x118] sm:$0xff]  ;;  %v132_v58 = vld [vmem:[%s7628_s1] sm:$0xfc] }
  0x63   :  { %5743 = vmatprep.subr.bf16.mxu1 %v6531_v0  ;;  %v6735_v57 = vld [vmem:[%s7628_s1 + $0x10] sm:$0xff]  ;;  %v130_v59 = vld [vmem:[#allocation7 + $0x80] sm:$0xff]  ;;  %v131_v60 = vld [vmem:[#allocation7 + $0x88] sm:$0xff]  ;;  %v5732_v61 = vpack.c.bf16 %v154_v56, %v153_v54  ;;  %v166_v62 = vrot.slane %v132_v58, 2 }
  0x64   :  { %v167_v63 = vrot.slane %v6735_v57, 2  ;;  %v6745_v1 = vld [vmem:[%s7628_s1 + $0x28] sm:$0xff]  ;;  %v5759_v2 = vpack.c.bf16 %v131_v60, %v130_v59  ;;  %v381_v3 = vld [vmem:[#allocation7 + $0x120] sm:$0xff]  ;;  %v6763_v13 = vld [vmem:[%s7628_s1 + $0x38] sm:$0xff] }
  0x65   :  { %5718 = vmatpush1.bf16.msra.mxu0 %v5717_v23  ;;  %v382_v4 = vld [vmem:[#allocation7 + $0x128] sm:$0xff]  ;;  %v6751_v5 = vld [vmem:[%s7628_s1 + $0x20] sm:$0xff]  ;;  %v174_v8 = vrot.slane %v6745_v1, 2  ;;  %v383_v15 = vld [vmem:[#allocation7 + $0x130] sm:$0xff]  ;;  %v178_v21 = vrot.slane %v6763_v13, 2 }
  0x66   :  { %5745 = vmatpush1.bf16.msra.mxu1 %v5744_v25  ;;  %5719 = vmatprep.subr.bf16.mxu0 %v6531_v0  ;;  %v576_v6 = vld [vmem:[#allocation7 + $0x240] sm:$0xff]  ;;  %v577_v7 = vld [vmem:[#allocation7 + $0x248] sm:$0xff]  ;;  %v168_v9 = vsel %vm165_vm1, %v166_v62, %v167_v63  ;;  %v5762_v11 = vpack.c.bf16 %v382_v4, %v381_v3  ;;  %v172_v12 = vrot.slane %v6751_v5, 2  ;;  %v384_v16 = vld [vmem:[#allocation7 + $0x138] sm:$0xff] }
  0x67   :  { %5746 = vmatprep.subr.bf16.mxu1 %v6531_v0  ;;  %v106_v10 = vld [vmem:[%s7628_s1] sm:$0xff]  ;;  %v5789_v14 = vpack.c.bf16 %v577_v7, %v576_v6  ;;  %v6769_v17 = vld [vmem:[%s7628_s1 + $0x30] sm:$0xff]  ;;  %v579_v19 = vld [vmem:[#allocation7 + $0x258] sm:$0xff]  ;;  %v175_v20 = vsel %vm165_vm1, %v170_v32, %v174_v8  ;;  %v5765_v22 = vpack.c.bf16 %v384_v16, %v383_v15  ;;  %v179_v33 = vsel %vm165_vm1, %v174_v8, %v178_v21 }
  0x68   :  { %v578_v18 = vld [vmem:[#allocation7 + $0x250] sm:$0xff]  ;;  %v173_v23 = vsel %vm165_vm1, %v167_v63, %v172_v12  ;;  %v176_v24 = vrot.slane %v6769_v17, 2  ;;  %v135_v25 = vld [vmem:[%s7628_s1 + $0x48] sm:$0x3]  ;;  %v385_v28 = vld [vmem:[#allocation7 + $0x140] sm:$0xff] }
  0x69   :  { %5721 = vmatpush1.bf16.msra.mxu0 %v5720_v34  ;;  %v5792_v26 = vpack.c.bf16 %v579_v19, %v578_v18  ;;  %v386_v29 = vld [vmem:[#allocation7 + $0x148] sm:$0xff]  ;;  %v134_v30 = vld [vmem:[%s7628_s1 + $0x40] sm:$0x3]  ;;  %v182_v34 = vrot.slane %v135_v25, 2  ;;  %v582_v44 = vld [vmem:[#allocation7 + $0x270] sm:$0xff] }
  0x6a   :  { %5748 = vmatpush1.bf16.msra.mxu1 %v5747_v36  ;;  %5722 = vmatprep.subr.bf16.mxu0 %v6531_v0  ;;  %v580_v31 = vld [vmem:[#allocation7 + $0x260] sm:$0xff]  ;;  %v581_v32 = vld [vmem:[#allocation7 + $0x268] sm:$0xff]  ;;  %v5768_v35 = vpack.c.bf16 %v386_v29, %v385_v28  ;;  %v387_v36 = vld [vmem:[#allocation7 + $0x150] sm:$0xff]  ;;  %v177_v37 = vsel %vm165_vm1, %v172_v12, %v176_v24  ;;  %v180_v38 = vrot.slane %v134_v30, 2 }
  0x6b   :  { %5749 = vmatprep.subr.bf16.mxu1 %v6531_v0  ;;  %v377_v39 = vld [vmem:[%s7628_s1 + $0x8] sm:$0xf0]  ;;  %v5795_v40 = vpack.c.bf16 %v581_v32, %v580_v31  ;;  %v583_v45 = vld [vmem:[#allocation7 + $0x278] sm:$0xff]  ;;  %v183_v46 = vsel %vm165_vm1, %v178_v21, %v182_v34  ;;  %v389_v54 = vld [vmem:[#allocation7 + $0x160] sm:$0xff]  ;;  %v405_v32 = vrot.slane %v6735_v57, 4 }
  0x6c   :  { %v572_v43 = vld [vmem:[%s7628_s1 + $0x48] sm:$0xc0]  ;;  %v181_v50 = vsel %vm165_vm1, %v176_v24, %v180_v38  ;;  %v584_v56 = vld [vmem:[#allocation7 + $0x280] sm:$0xff]  ;;  %v391_v63 = vld [vmem:[#allocation7 + $0x170] sm:$0xff] }
  0x6d   :  { %5724 = vmatpush1.bf16.msra.mxu0 %v5723_v41  ;;  %v388_v41 = vld [vmem:[#allocation7 + $0x158] sm:$0xff]  ;;  %v608_v51 = vrot.slane %v572_v43, 6  ;;  %v585_v58 = vld [vmem:[#allocation7 + $0x288] sm:$0xff]  ;;  %v586_v3 = vld [vmem:[#allocation7 + $0x290] sm:$0xff] }
  0x6e   :  { %5751 = vmatpush1.bf16.msra.mxu1 %v5750_v42  ;;  %5725 = vmatprep.subr.bf16.mxu0 %v6531_v0  ;;  %v6799_v42 = vld [vmem:[%s7628_s1 + $0x58] sm:$0xff]  ;;  %v5771_v49 = vpack.c.bf16 %v388_v41, %v387_v36  ;;  %v5801_v62 = vpack.c.bf16 %v585_v58, %v584_v56  ;;  %v393_v8 = vld [vmem:[#allocation7 + $0x180] sm:$0xff]  ;;  %v395_v15 = vld [vmem:[#allocation7 + $0x190] sm:$0xff] }
  0x6f   :  { %5752 = vmatprep.subr.bf16.mxu1 %v6531_v0  ;;  %v609_v52 = vrot.slane %v6799_v42, 6  ;;  %v587_v4 = vld [vmem:[#allocation7 + $0x298] sm:$0xff]  ;;  %v590_v18 = vld [vmem:[#allocation7 + $0x2b0] sm:$0xff]  ;;  %v397_v21 = vld [vmem:[#allocation7 + $0x1a0] sm:$0xff] }
  0x70   :  { %v5804_v7 = vpack.c.bf16 %v587_v4, %v586_v3  ;;  %v396_v16 = vld [vmem:[#allocation7 + $0x198] sm:$0xff]  ;;  %v592_v24 = vld [vmem:[#allocation7 + $0x2c0] sm:$0xff]  ;;  %v6841_v28 = vld [vmem:[%s7628_s1 + $0x50] sm:$0xff] }
  0x71   :  { %5727 = vmatpush1.bf16.msra.mxu0 %v5726_v47  ;;  %v407_v47 = vrot.slane %v377_v39, 4  ;;  %v591_v19 = vld [vmem:[#allocation7 + $0x2b8] sm:$0xff]  ;;  %v376_v25 = vld [vmem:[%s7628_s1] sm:$0xf0]  ;;  %v553_v34 = vld [vmem:[#allocation7 + $0x1b0] sm:$0xff] }
  0x72   :  { %5754 = vmatpush1.bf16.msra.mxu1 %v5753_v48  ;;  %5728 = vmatprep.subr.bf16.mxu0 %v6531_v0  ;;  %v408_v48 = vrot.slane %v6710_v27, 4  ;;  %v571_v29 = vld [vmem:[%s7628_s1 + $0x40] sm:$0xc0]  ;;  %v404_v31 = vrot.slane %v376_v25, 4  ;;  %v6852_v38 = vld [vmem:[%s7628_s1 + $0x68] sm:$0xff]  ;;  %v842_v39 = vld [vmem:[#allocation7 + $0x2d0] sm:$0xff] }
  0x73   :  { %5755 = vmatprep.subr.bf16.mxu1 %v6531_v0  ;;  %v605_v36 = vrot.slane %v571_v29, 6  ;;  %v379_v56 = vld [vmem:[%s7628_s1 + $0x48] sm:$0xf]  ;;  %v378_v4 = vld [vmem:[%s7628_s1 + $0x40] sm:$0xf] }
  0x74   :  { %v409_v59 = vsel %vm403_vm2, %v407_v47, %v408_v48  ;;  %v406_v41 = vsel %vm403_vm2, %v404_v31, %v405_v32  ;;  %v420_v3 = vrot.slane %v379_v56, 4  ;;  %v848_v25 = vld [vmem:[#allocation7 + $0x300] sm:$0xff] }
  0x75   :  { %5730 = vmatpush1.bf16.msra.mxu0 %v5729_v53  ;;  %v5798_v53 = vpack.c.bf16 %v583_v45, %v582_v44  ;;  %v410_v44 = vrot.slane %v6751_v5, 4  ;;  %v613_v45 = vrot.slane %v6852_v38, 6 }
  0x76   :  { %5757 = vmatpush1.bf16.msra.mxu1 %v5756_v55  ;;  %5731 = vmatprep.subr.bf16.mxu0 %v6531_v0  ;;  %v390_v55 = vld [vmem:[#allocation7 + $0x168] sm:$0xff] }
  0x77   :  { %5758 = vmatprep.subr.bf16.mxu1 %v6531_v0  ;;  %v5774_v60 = vpack.c.bf16 %v390_v55, %v389_v54  ;;  %v844_v54 = vld [vmem:[#allocation7 + $0x2e0] sm:$0xff]  ;;  %v845_v55 = vld [vmem:[#allocation7 + $0x2e8] sm:$0xff] }
  0x79   :  { %5733 = vmatpush1.bf16.msra.mxu0 %v5732_v61  ;;  %v610_v61 = vsel %vm604_vm3, %v608_v51, %v609_v52  ;;  %v416_v51 = vrot.slane %v6763_v13, 4 }
  0x7a   :  { %5760 = vmatpush1.bf16.msra.mxu1 %v5759_v2  ;;  %5761 = vmatprep.subr.bf16.mxu0 %v6531_v0  ;;  %v392_v2 = vld [vmem:[#allocation7 + $0x178] sm:$0xff] }
  0x7b   :  { %5788 = vmatprep.subr.bf16.mxu1 %v6531_v0  ;;  %v5777_v6 = vpack.c.bf16 %v392_v2, %v391_v63  ;;  %v558_v2 = vld [vmem:[#allocation7 + $0x1d8] sm:$0xff] }
  0x7c   :  { %262 = vmatmul.mubr.f32.vlgmr.msra.gmra.mrb[0].mxu0 %v168_v9  ;;  %v394_v9 = vld [vmem:[#allocation7 + $0x188] sm:$0xff] }
  0x7d   :  { %356 = vmatmul.mubr.f32.vlgmr.msra.gmra.mrb[0].mxu1 %v106_v10  ;;  %5763 = vmatpush1.bf16.msra.mxu0 %v5762_v11  ;;  %v588_v10 = vld [vmem:[#allocation7 + $0x2a0] sm:$0xff]  ;;  %v589_v11 = vld [vmem:[#allocation7 + $0x2a8] sm:$0xff]  ;;  %v5780_v12 = vpack.c.bf16 %v394_v9, %v393_v8 }
  0x7e   :  { %5790 = vmatpush1.bf16.msra.mxu1 %v5789_v14  ;;  %5764 = vmatprep.subr.bf16.mxu0 %v6531_v0  ;;  %v5807_v14 = vpack.c.bf16 %v589_v11, %v588_v10  ;;  %v543_v8 = vld [vmem:[%s7628_s1 + $0x48] sm:$0xf0] }
  0x7f   :  { %5791 = vmatprep.subr.bf16.mxu1 %v6531_v0  ;;  %4944 = vmatprep.mubr.msk.f32.mxu0 %vm188_vm0, %v175_v20  ;;  %v5783_v20 = vpack.c.bf16 %v396_v16, %v395_v15 }
  0x80   :  { %267 = vmatmul.mubr.f32.gmra.mrb[2].mxu0 %v173_v23  ;;  %4948 = vmatprep.mubr.msk.f32.mxu1 %vm188_vm0, %v6710_v27  ;;  %v398_v23 = vld [vmem:[#allocation7 + $0x1a8] sm:$0xff]  ;;  %v614_v27 = vsel %vm604_vm3, %v609_v52, %v613_v45 }
  0x81   :  { %5766 = vmatpush1.bf16.msra.mxu0 %v5765_v22  ;;  %361 = vmatmul.mubr.f32.gmra.mrb[2].mxu1 %v6735_v57  ;;  %v5810_v22 = vpack.c.bf16 %v591_v19, %v590_v18  ;;  %v5786_v30 = vpack.c.bf16 %v398_v23, %v397_v21  ;;  %v412_v57 = vrot.slane %v6745_v1, 4  ;;  %v574_v52 = vld [vmem:[%s7628_s1 + $0x88] sm:$0x3f]  ;;  %v573_v18 = vld [vmem:[%s7628_s1 + $0x80] sm:$0x3f]  ;;  %v727_v23 = vrot.slane %v543_v8, 4 }
  0x82   :  { %5793 = vmatpush1.bf16.msra.mxu1 %v5792_v26  ;;  %5767 = vmatprep.subr.bf16.mxu0 %v6531_v0  ;;  %v593_v26 = vld [vmem:[#allocation7 + $0x2c8] sm:$0xff]  ;;  %v621_v16 = vrot.slane %v574_v52, 6  ;;  %v559_v21 = vld [vmem:[#allocation7 + $0x1e0] sm:$0xff] }
  0x83   :  { %5794 = vmatprep.subr.bf16.mxu1 %v6531_v0  ;;  %4945 = vmatprep.mubr.msk.f32.mxu0 %vm188_vm0, %v179_v33  ;;  %v5813_v33 = vpack.c.bf16 %v593_v26, %v592_v24  ;;  %v417_v63 = vsel %vm403_vm2, %v412_v57, %v416_v51  ;;  %v728_v24 = vrot.slane %v6799_v42, 4  ;;  %v849_v26 = vld [vmem:[#allocation7 + $0x308] sm:$0xff] }
  0x84   :  { %272 = vmatmul.mubr.f32.gmra.mrb[4].mxu0 %v177_v37  ;;  %4949 = vmatprep.mubr.msk.f32.mxu1 %vm188_vm0, %v6745_v1  ;;  %v606_v37 = vrot.slane %v6841_v28, 6  ;;  %v555_v1 = vld [vmem:[#allocation7 + $0x1c0] sm:$0xff] }
  0x85   :  { %5769 = vmatpush1.bf16.msra.mxu0 %v5768_v35  ;;  %366 = vmatmul.mubr.f32.gmra.mrb[4].mxu1 %v6751_v5  ;;  %v554_v35 = vld [vmem:[#allocation7 + $0x1b8] sm:$0xff] }
  0x86   :  { %5796 = vmatpush1.bf16.msra.mxu1 %v5795_v40  ;;  %5770 = vmatprep.subr.bf16.mxu0 %v6531_v0  ;;  %v843_v40 = vld [vmem:[#allocation7 + $0x2d8] sm:$0xff]  ;;  %v5816_v43 = vpack.c.bf16 %v554_v35, %v553_v34  ;;  %v607_v47 = vsel %vm604_vm3, %v605_v36, %v606_v37  ;;  %v5852_v34 = vpack.c.bf16 %v849_v26, %v848_v25  ;;  %v561_v35 = vld [vmem:[#allocation7 + $0x1f0] sm:$0xff]  ;;  %v986_v25 = vld [vmem:[%s7631_s4] sm:$0xff] }
  0x87   :  { %5797 = vmatprep.subr.bf16.mxu1 %v6531_v0  ;;  %4946 = vmatprep.mubr.msk.f32.mxu0 %vm188_vm0, %v183_v46  ;;  %v6862_v46 = vld [vmem:[%s7628_s1 + $0x60] sm:$0xff]  ;;  %v6870_v5 = vld [vmem:[%s7628_s1 + $0x78] sm:$0xff]  ;;  %v987_v26 = vld [vmem:[%s7631_s4 + $0x8] sm:$0xff] }
  0x88   :  { %277 = vmatmul.mubr.f32.gmra.mrb[6].mxu0 %v181_v50  ;;  %4950 = vmatprep.mubr.msk.f32.mxu1 %vm188_vm0, %v6763_v13  ;;  %v556_v50 = vld [vmem:[#allocation7 + $0x1c8] sm:$0xff]  ;;  %v414_v13 = vrot.slane %v6769_v17, 4  ;;  %v611_v58 = vrot.slane %v6862_v46, 6  ;;  %v562_v36 = vld [vmem:[#allocation7 + $0x1f8] sm:$0xff] }
  0x89   :  { %5772 = vmatpush1.bf16.msra.mxu0 %v5771_v49  ;;  %371 = vmatmul.mubr.f32.gmra.mrb[6].mxu1 %v6769_v17  ;;  %v5843_v49 = vpack.c.bf16 %v843_v40, %v842_v39  ;;  %v5846_v17 = vpack.c.bf16 %v845_v55, %v844_v54  ;;  %v850_v39 = vld [vmem:[#allocation7 + $0x310] sm:$0xff]  ;;  %v851_v40 = vld [vmem:[#allocation7 + $0x318] sm:$0xff] }
  0x8a   :  { %5799 = vmatpush1.bf16.msra.mxu1 %v5798_v53  ;;  %5773 = vmatprep.subr.bf16.mxu0 %v6531_v0  ;;  %v413_v53 = vsel %vm403_vm2, %v408_v48, %v412_v57  ;;  %v617_v48 = vrot.slane %v6870_v5, 6  ;;  %v415_v9 = vsel %vm403_vm2, %v410_v44, %v414_v13  ;;  %v612_v10 = vsel %vm604_vm3, %v606_v37, %v611_v58  ;;  %v854_v54 = vld [vmem:[#allocation7 + $0x330] sm:$0xff]  ;;  %v855_v55 = vld [vmem:[#allocation7 + $0x338] sm:$0xff] }
  0x8b   :  { %5800 = vmatprep.subr.bf16.mxu1 %v6531_v0  ;;  %4951 = vmatprep.mubr.msk.f32.mxu0 %vm188_vm0, %v409_v59  ;;  %v411_v59 = vsel %vm403_vm2, %v405_v32, %v410_v44  ;;  %v729_v37 = vsel %vm403_vm2, %v727_v23, %v728_v24  ;;  %v563_v44 = vld [vmem:[#allocation7 + $0x200] sm:$0xff] }
  0x8c   :  { %4956 = vmatprep.mubr.msk.f32.mxu1 %vm188_vm0, %v610_v61  ;;  %v557_v61 = vld [vmem:[#allocation7 + $0x1d0] sm:$0xff]  ;;  %v618_v15 = vsel %vm604_vm3, %v613_v45, %v617_v48  ;;  %v564_v45 = vld [vmem:[#allocation7 + $0x208] sm:$0xff]  ;;  %v839_v23 = vld [vmem:[%s7628_s1 + $0x80] sm:$0xff] }
  0x8d   :  { %5775 = vmatpush1.bf16.msra.mxu0 %v5774_v60  ;;  %v5819_v60 = vpack.c.bf16 %v556_v50, %v555_v1  ;;  %v5831_v1 = vpack.c.bf16 %v564_v45, %v563_v44 }
  0x8e   :  { %5802 = vmatpush1.bf16.msra.mxu1 %v5801_v62  ;;  %5776 = vmatprep.subr.bf16.mxu0 %v6531_v0  ;;  %v6889_v62 = vld [vmem:[%s7628_s1 + $0x70] sm:$0xff] }
  0x8f   :  { %5803 = vmatprep.subr.bf16.mxu1 %v6531_v0  ;;  %v615_v11 = vrot.slane %v6889_v62, 6 }
  0x91   :  { %5778 = vmatpush1.bf16.msra.mxu0 %v5777_v6  ;;  %v846_v6 = vld [vmem:[#allocation7 + $0x2f0] sm:$0xff]  ;;  %v616_v29 = vsel %vm604_vm3, %v611_v58, %v615_v11  ;;  %v567_v58 = vld [vmem:[#allocation7 + $0x220] sm:$0xff] }
  0x92   :  { %5805 = vmatpush1.bf16.msra.mxu1 %v5804_v7  ;;  %5779 = vmatprep.subr.bf16.mxu0 %v6531_v0  ;;  %v847_v7 = vld [vmem:[#allocation7 + $0x2f8] sm:$0xff] }
  0x93   :  { %5806 = vmatprep.subr.bf16.mxu1 %v6531_v0  ;;  %v5849_v19 = vpack.c.bf16 %v847_v7, %v846_v6  ;;  %v725_v7 = vrot.slane %v6841_v28, 4 }
  0x95   :  { %5781 = vmatpush1.bf16.msra.mxu0 %v5780_v12  ;;  %v5822_v12 = vpack.c.bf16 %v558_v2, %v557_v61  ;;  %v857_v61 = vld [vmem:[#allocation7 + $0x348] sm:$0xff]  ;;  %v542_v2 = vld [vmem:[%s7628_s1 + $0x40] sm:$0xf0] }
  0x96   :  { %5808 = vmatpush1.bf16.msra.mxu1 %v5807_v14  ;;  %5782 = vmatprep.subr.bf16.mxu0 %v6531_v0  ;;  %v418_v14 = vrot.slane %v378_v4, 4  ;;  %v859_v4 = vld [vmem:[#allocation7 + $0x358] sm:$0xff]  ;;  %v724_v6 = vrot.slane %v542_v2, 4  ;;  %v998_v2 = vld [vmem:[%s7631_s4 + $0x60] sm:$0xff] }
  0x97   :  { %5809 = vmatprep.subr.bf16.mxu1 %v6531_v0 }
  0x98   :  { %v419_v31 = vsel %vm403_vm2, %v414_v13, %v418_v14  ;;  %v5861_v13 = vpack.c.bf16 %v855_v55, %v854_v54  ;;  %v736_v14 = vrot.slane %v6870_v5, 4  ;;  %v994_v54 = vld [vmem:[%s7631_s4 + $0x40] sm:$0xff]  ;;  %v995_v55 = vld [vmem:[%s7631_s4 + $0x48] sm:$0xff] }
  0x99   :  { %5784 = vmatpush1.bf16.msra.mxu0 %v5783_v20  ;;  %v421_v20 = vsel %vm403_vm2, %v416_v51, %v420_v3  ;;  %v565_v51 = vld [vmem:[#allocation7 + $0x210] sm:$0xff] }
  0x9a   :  { %5811 = vmatpush1.bf16.msra.mxu1 %v5810_v22  ;;  %5785 = vmatprep.subr.bf16.mxu0 %v6531_v0  ;;  %v560_v22 = vld [vmem:[#allocation7 + $0x1e8] sm:$0xff]  ;;  %v858_v3 = vld [vmem:[#allocation7 + $0x350] sm:$0xff] }
  0x9b   :  { %5812 = vmatprep.subr.bf16.mxu1 %v6531_v0  ;;  %v5825_v32 = vpack.c.bf16 %v560_v22, %v559_v21  ;;  %v5867_v8 = vpack.c.bf16 %v859_v4, %v858_v3  ;;  %v840_v22 = vld [vmem:[%s7628_s1 + $0x88] sm:$0xff] }
  0x9c   :  { %v999_v3 = vld [vmem:[%s7631_s4 + $0x68] sm:$0xff] }
  0x9d   :  { %5787 = vmatpush1.bf16.msra.mxu0 %v5786_v30  ;;  %v619_v30 = vrot.slane %v573_v18, 6  ;;  %v734_v18 = vrot.slane %v6889_v62, 4  ;;  %v5895_v4 = vpack.c.bf16 %v999_v3, %v998_v2 }
  0x9e   :  { %5814 = vmatpush1.bf16.msra.mxu1 %v5813_v33  ;;  %5815 = vmatprep.subr.bf16.mxu0 %v6531_v0  ;;  %v622_v33 = vsel %vm604_vm3, %v617_v48, %v621_v16 }
  0x9f   :  { %5842 = vmatprep.subr.bf16.mxu1 %v6531_v0  ;;  %v620_v57 = vsel %vm604_vm3, %v615_v11, %v619_v30  ;;  %v730_v11 = vrot.slane %v6862_v46, 4  ;;  %v1004_v30 = vld [vmem:[%s7631_s4 + $0x90] sm:$0xff] }
  0xa0   :  { %499 = vmatmul.mubr.f32.vlgmr.msra.gmra.mrb[8].mxu0 %v406_v41  ;;  %v5828_v41 = vpack.c.bf16 %v562_v36, %v561_v35  ;;  %v1006_v36 = vld [vmem:[%s7631_s4 + $0xa0] sm:$0xff] }
  0xa1   :  { %5817 = vmatpush1.bf16.msra.mxu0 %v5816_v43  ;;  %700 = vmatmul.mubr.f32.vlgmr.msra.gmra.mrb[8].mxu1 %v607_v47  ;;  %v5855_v43 = vpack.c.bf16 %v851_v40, %v850_v39  ;;  %v852_v47 = vld [vmem:[#allocation7 + $0x320] sm:$0xff]  ;;  %v731_v16 = vsel %vm403_vm2, %v725_v7, %v730_v11 }
  0xa2   :  { %5844 = vmatpush1.bf16.msra.mxu1 %v5843_v49  ;;  %4952 = vmatprep.mubr.msk.f32.mxu0 %vm188_vm0, %v413_v53  ;;  %v853_v49 = vld [vmem:[#allocation7 + $0x328] sm:$0xff]  ;;  %v566_v53 = vld [vmem:[#allocation7 + $0x218] sm:$0xff]  ;;  %v990_v39 = vld [vmem:[%s7631_s4 + $0x20] sm:$0xff] }
  0xa3   :  { %5818 = vmatprep.subr.bf16.mxu0 %v6531_v0  ;;  %5845 = vmatprep.subr.bf16.mxu1 %v6531_v0  ;;  %v5858_v50 = vpack.c.bf16 %v853_v49, %v852_v47  ;;  %v5834_v56 = vpack.c.bf16 %v566_v53, %v565_v51  ;;  %v992_v47 = vld [vmem:[%s7631_s4 + $0x30] sm:$0xff]  ;;  %v993_v49 = vld [vmem:[%s7631_s4 + $0x38] sm:$0xff] }
  0xa4   :  { %504 = vmatmul.mubr.f32.gmra.mrb[10].mxu0 %v411_v59  ;;  %4957 = vmatprep.mubr.msk.f32.mxu1 %vm188_vm0, %v614_v27  ;;  %v568_v59 = vld [vmem:[#allocation7 + $0x228] sm:$0xff]  ;;  %v5883_v51 = vpack.c.bf16 %v993_v49, %v992_v47 }
  0xa5   :  { %5820 = vmatpush1.bf16.msra.mxu0 %v5819_v60  ;;  %4953 = vmatprep.mubr.msk.f32.mxu0 %vm188_vm0, %v417_v63  ;;  %v856_v60 = vld [vmem:[#allocation7 + $0x340] sm:$0xff]  ;;  %v5837_v27 = vpack.c.bf16 %v568_v59, %v567_v58  ;;  %v570_v63 = vld [vmem:[#allocation7 + $0x238] sm:$0xff]  ;;  %v5887_v58 = vpack.c.bf16 %v995_v55, %v994_v54 }
  0xa6   :  { %5847 = vmatpush1.bf16.msra.mxu1 %v5846_v17  ;;  %5821 = vmatprep.subr.bf16.mxu0 %v6531_v0  ;;  %v5864_v48 = vpack.c.bf16 %v857_v61, %v856_v60  ;;  %v569_v17 = vld [vmem:[#allocation7 + $0x230] sm:$0xff]  ;;  %v997_v61 = vld [vmem:[%s7631_s4 + $0x58] sm:$0xff] }
  0xa7   :  { %5848 = vmatprep.subr.bf16.mxu1 %v6531_v0  ;;  %705 = vmatmul.mubr.f32.gmra.mrb[10].mxu1 %v612_v10  ;;  %v5840_v52 = vpack.c.bf16 %v570_v63, %v569_v17  ;;  %v726_v10 = vsel %vm403_vm2, %v724_v6, %v725_v7  ;;  %v996_v60 = vld [vmem:[%s7631_s4 + $0x50] sm:$0xff]  ;;  %v1015_v17 = vld [vmem:[%s7631_s4 + $0xe8] sm:$0xff]  ;;  %v1017_v6 = vld [vmem:[%s7631_s4 + $0xf8] sm:$0xff] }
  0xa8   :  { %509 = vmatmul.mubr.f32.gmra.mrb[12].mxu0 %v415_v9  ;;  %4958 = vmatprep.mubr.msk.f32.mxu1 %vm188_vm0, %v618_v15  ;;  %v732_v9 = vrot.slane %v6852_v38, 4  ;;  %v551_v15 = vld [vmem:[%s7628_s1 + $0x88] sm:$0xf] }
  0xa9   :  { %5823 = vmatpush1.bf16.msra.mxu0 %v5822_v12  ;;  %4954 = vmatprep.mubr.msk.f32.mxu0 %vm188_vm0, %v421_v20  ;;  %v550_v20 = vld [vmem:[%s7628_s1 + $0x80] sm:$0xf]  ;;  %s6535_s1 = smov 32  }
  0xaa   :  { %5850 = vmatpush1.bf16.msra.mxu1 %v5849_v19  ;;  %5824 = vmatprep.subr.bf16.mxu0 %v6531_v0  ;;  %v733_v12 = vsel %vm403_vm2, %v728_v24, %v732_v9  ;;  %v740_v19 = vrot.slane %v551_v15, 4  ;;  %v738_v21 = vrot.slane %v550_v20, 4 }
  0xab   :  { %5851 = vmatprep.subr.bf16.mxu1 %v6531_v0  ;;  %710 = vmatmul.mubr.f32.gmra.mrb[12].mxu1 %v616_v29  ;;  %v5871_v29 = vpack.c.bf16 %v987_v26, %v986_v25 }
  0xac   :  { %514 = vmatmul.mubr.f32.gmra.mrb[14].mxu0 %v419_v31  ;;  %4959 = vmatprep.mubr.msk.f32.mxu1 %vm188_vm0, %v622_v33  ;;  %v1005_v31 = vld [vmem:[%s7631_s4 + $0x98] sm:$0xff]  ;;  %v988_v33 = vld [vmem:[%s7631_s4 + $0x10] sm:$0xff] }
  0xad   :  { %5826 = vmatpush1.bf16.msra.mxu0 %v5825_v32  ;;  %4960 = vmatprep.mubr.msk.f32.mxu0 %vm188_vm0, %v729_v37  ;;  %v5873_v32 = vpack.c.bf16 %v1005_v31, %v1004_v30  ;;  %v1007_v37 = vld [vmem:[%s7631_s4 + $0xa8] sm:$0xff] }
  0xae   :  { %5853 = vmatpush1.bf16.msra.mxu1 %v5852_v34  ;;  %5827 = vmatprep.subr.bf16.mxu0 %v6531_v0  ;;  %v989_v34 = vld [vmem:[%s7631_s4 + $0x18] sm:$0xff]  ;;  %v5877_v40 = vpack.c.bf16 %v1007_v37, %v1006_v36 }
  0xaf   :  { %5854 = vmatprep.subr.bf16.mxu1 %v6531_v0  ;;  %715 = vmatmul.mubr.f32.gmra.mrb[14].mxu1 %v620_v57  ;;  %v5875_v35 = vpack.c.bf16 %v989_v34, %v988_v33  ;;  %v991_v57 = vld [vmem:[%s7631_s4 + $0x28] sm:$0xff] }
  0xb0   :  { %4964 = vmatprep.mubr.msk.f32.mxu1 %vm188_vm0, %v6799_v42  ;;  %v737_v42 = vsel %vm403_vm2, %v732_v9, %v736_v14  ;;  %v5879_v44 = vpack.c.bf16 %v991_v57, %v990_v39  ;;  %v1001_v9 = vld [vmem:[%s7631_s4 + $0x78] sm:$0xff] }
  0xb1   :  { %5829 = vmatpush1.bf16.msra.mxu0 %v5828_v41  ;;  %v1008_v41 = vld [vmem:[%s7631_s4 + $0xb0] sm:$0xff] }
  0xb2   :  { %5856 = vmatpush1.bf16.msra.mxu1 %v5855_v43  ;;  %5830 = vmatprep.subr.bf16.mxu0 %v6531_v0  ;;  %v1009_v43 = vld [vmem:[%s7631_s4 + $0xb8] sm:$0xff] }
  0xb3   :  { %5857 = vmatprep.subr.bf16.mxu1 %v6531_v0  ;;  %v5881_v45 = vpack.c.bf16 %v1009_v43, %v1008_v41 }
  0xb5   :  { %5832 = vmatpush1.bf16.msra.mxu0 %v5831_v1  ;;  %v1010_v1 = vld [vmem:[%s7631_s4 + $0xc0] sm:$0xff] }
  0xb6   :  { %5859 = vmatpush1.bf16.msra.mxu1 %v5858_v50  ;;  %5833 = vmatprep.subr.bf16.mxu0 %v6531_v0  ;;  %v1011_v50 = vld [vmem:[%s7631_s4 + $0xc8] sm:$0xff] }
  0xb7   :  { %5860 = vmatprep.subr.bf16.mxu1 %v6531_v0  ;;  %v5885_v53 = vpack.c.bf16 %v1011_v50, %v1010_v1 }
  0xb9   :  { %5835 = vmatpush1.bf16.msra.mxu0 %v5834_v56  ;;  %v1012_v56 = vld [vmem:[%s7631_s4 + $0xd0] sm:$0xff] }
  0xba   :  { %5862 = vmatpush1.bf16.msra.mxu1 %v5861_v13  ;;  %5836 = vmatprep.subr.bf16.mxu0 %v6531_v0  ;;  %v1013_v13 = vld [vmem:[%s7631_s4 + $0xd8] sm:$0xff] }
  0xbb   :  { %5863 = vmatprep.subr.bf16.mxu1 %v6531_v0  ;;  %v5889_v59 = vpack.c.bf16 %v1013_v13, %v1012_v56  ;;  %v4969_v13 = vld [vmem:[%s7630_s3 + $0x1] ss:$0 sm:$0xff] }
  0xbd   :  { %5838 = vmatpush1.bf16.msra.mxu0 %v5837_v27  ;;  %v5891_v27 = vpack.c.bf16 %v997_v61, %v996_v60 }
  0xbe   :  { %5865 = vmatpush1.bf16.msra.mxu1 %v5864_v48  ;;  %5839 = vmatprep.subr.bf16.mxu0 %v6531_v0  ;;  %v1014_v48 = vld [vmem:[%s7631_s4 + $0xe0] sm:$0xff] }
  0xbf   :  { %5866 = vmatprep.subr.bf16.mxu1 %v6531_v0  ;;  %v5893_v63 = vpack.c.bf16 %v1015_v17, %v1014_v48 }
  0xc1   :  { %5841 = vmatpush1.bf16.msra.mxu0 %v5840_v52  ;;  %v1016_v52 = vld [vmem:[%s7631_s4 + $0xf0] sm:$0xff] }
  0xc2   :  { %5868 = vmatpush1.bf16.msra.mxu1 %v5867_v8  ;;  %v5897_v7 = vpack.c.bf16 %v1017_v6, %v1016_v52  ;;  %v1000_v8 = vld [vmem:[%s7631_s4 + $0x70] sm:$0xff] }
  0xc4   :  { %819 = vmatmul.mubr.f32.vlgmr.msra.gmra.mrb[16].mxu0 %v726_v10  ;;  %v5899_v10 = vpack.c.bf16 %v1001_v9, %v1000_v8 }
  0xc5   :  { %934 = vmatmul.mubr.f32.vlgmr.msra.gmra.mrb[16].mxu1 %v6841_v28  ;;  %4961 = vmatprep.mubr.msk.f32.mxu0 %vm188_vm0, %v733_v12  ;;  %v735_v28 = vsel %vm403_vm2, %v730_v11, %v734_v18 }
  0xc6   :  { %4965 = vmatprep.mubr.msk.f32.mxu1 %vm188_vm0, %v6852_v38  ;;  %v741_v38 = vsel %vm403_vm2, %v736_v14, %v740_v19 }
  0xc8   :  { %824 = vmatmul.mubr.f32.gmra.mrb[18].mxu0 %v731_v16 }
  0xc9   :  { %939 = vmatmul.mubr.f32.gmra.mrb[18].mxu1 %v6862_v46  ;;  %4962 = vmatprep.mubr.msk.f32.mxu0 %vm188_vm0, %v737_v42  ;;  %v739_v46 = vsel %vm403_vm2, %v734_v18, %v738_v21 }
  0xca   :  { %4966 = vmatprep.mubr.msk.f32.mxu1 %vm188_vm0, %v6870_v5  ;;  %v1002_v5 = vld [vmem:[%s7631_s4 + $0x80] sm:$0xff] }
  0xcc   :  { %829 = vmatmul.mubr.f32.gmra.mrb[20].mxu0 %v735_v28 }
  0xcd   :  { %944 = vmatmul.mubr.f32.gmra.mrb[20].mxu1 %v6889_v62  ;;  %4963 = vmatprep.mubr.msk.f32.mxu0 %vm188_vm0, %v741_v38  ;;  %v1003_v62 = vld [vmem:[%s7631_s4 + $0x88] sm:$0xff] }
  0xce   :  { %4967 = vmatprep.mubr.msk.f32.mxu1 %vm188_vm0, %v840_v22  ;;  %v5869_v24 = vpack.c.bf16 %v1003_v62, %v1002_v5 }
  0xd0   :  { %834 = vmatmul.mubr.f32.gmra.mrb[22].mxu0 %v739_v46  ;;  %5870 = vmatprep.subr.bf16.mxu0 %v5869_v24 }
  0xd1   :  { %949 = vmatmul.mubr.f32.gmra.mrb[22].mxu1 %v839_v23  ;;  %5872 = vmatpush3.bf16.msra.mxu0 %v5871_v29 }
  0xd2   :  { %5874 = vmatprep.subr.bf16.mxu0 %v5873_v32 }
  0xd5   :  { %5876 = vmatpush3.bf16.msra.mxu0 %v5875_v35 }
  0xd6   :  { %5878 = vmatprep.subr.bf16.mxu0 %v5877_v40 }
  0xd9   :  { %5880 = vmatpush3.bf16.msra.mxu0 %v5879_v44 }
  0xda   :  { %5882 = vmatprep.subr.bf16.mxu0 %v5881_v45 }
  0xdd   :  { %5884 = vmatpush3.bf16.msra.mxu0 %v5883_v51 }
  0xde   :  { %5886 = vmatprep.subr.bf16.mxu0 %v5885_v53  ;;  %v4955_v53 = vld [vmem:[%s7630_s3] ss:$0 sm:$0xff] }
  0xe1   :  { %5888 = vmatpush3.bf16.msra.mxu0 %v5887_v58 }
  0xe2   :  { %5890 = vmatprep.subr.bf16.mxu0 %v5889_v59 }
  0xe5   :  { %5892 = vmatpush3.bf16.msra.mxu0 %v5891_v27 }
  0xe6   :  { %5894 = vmatprep.subr.bf16.mxu0 %v5893_v63 }
  0xe9   :  { %5896 = vmatpush3.bf16.msra.mxu0 %v5895_v4 }
  0xea   :  { %5898 = vmatprep.subr.bf16.mxu0 %v5897_v7 }
  0xed   :  { %5900 = vmatpush3.bf16.msra.mxu0 %v5899_v10 }
  0xee   :  { %5927 = vmatprep.subr.bf16.mxu0 %v6531_v0 }
 0x14f   :  { %v263_v11 = vpop.f32.mrb[0].mxu0 }
 0x150   :  { %v265_v12 = vpop.f32.mrb[1].mxu0  ;;  %v357_v14 = vpop.f32.mrb[0].mxu1 }
 0x151   :  { %v358_v15 = vadd.f32 %v357_v14, %v263_v11  ;;  %v359_v16 = vpop.f32.mrb[1].mxu1 }
 0x153   :  { %v268_v18 = vpop.f32.mrb[2].mxu0 }
 0x154   :  { %v270_v42 = vpop.f32.mrb[3].mxu0  ;;  %v362_v19 = vpop.f32.mrb[2].mxu1 }
 0x155   :  { %v363_v20 = vadd.f32 %v362_v19, %v268_v18  ;;  %v364_v28 = vpop.f32.mrb[3].mxu1 }
 0x157   :  { %v273_v21 = vpop.f32.mrb[4].mxu0 }
 0x158   :  { %v275_v38 = vpop.f32.mrb[5].mxu0  ;;  %v367_v22 = vpop.f32.mrb[4].mxu1 }
 0x159   :  { %v368_v46 = vadd.f32 %v367_v22, %v273_v21  ;;  %v369_v23 = vpop.f32.mrb[5].mxu1 }
 0x15b   :  { %v278_v5 = vpop.f32.mrb[6].mxu0 }
 0x15c   :  { %v280_v62 = vpop.f32.mrb[7].mxu0  ;;  %v372_v24 = vpop.f32.mrb[6].mxu1 }
 0x15d   :  { %v373_v25 = vadd.f32 %v372_v24, %v278_v5  ;;  %v374_v26 = vpop.f32.mrb[7].mxu1 }
 0x15e   :  { %v1119_v26 = vld [vmem:[%s7633_s6] sm:$0xff] }
 0x173   :  { %v500_v29 = vpop.f32.mrb[8].mxu0 }
 0x174   :  { %v519_v30 = vadd.f32 %v500_v29, %v358_v15  ;;  %v502_v31 = vpop.f32.mrb[9].mxu0  ;;  %v701_v32 = vpop.f32.mrb[8].mxu1  ;;  %v1120_v29 = vld [vmem:[%s7633_s6 + $0x8] sm:$0xff] }
 0x175   :  { %v703_v33 = vpop.f32.mrb[9].mxu1  ;;  %v1121_v31 = vld [vmem:[%s7633_s6 + $0x10] sm:$0xff] }
 0x176   :  { %v530_v60 = vadd.f32 %v4955_v53, %v519_v30  ;;  %v5901_v30 = vpack.c.bf16 %v1120_v29, %v1119_v26 }
 0x177   :  { %v505_v34 = vpop.f32.mrb[10].mxu0 }
 0x178   :  { %v520_v35 = vadd.f32 %v505_v34, %v363_v20  ;;  %v507_v36 = vpop.f32.mrb[11].mxu0  ;;  %v534_v52 = vmax.f32 %v530_v60, 0.0  ;;  %5902 = vmatprep.subr.bf16.mxu1 %v5901_v30  ;;  %v1231_v34 = vld [vmem:[%s7634_s7] sm:$0xff] }
 0x179   :  { %5904 = vmatpush3.bf16.msra.mxu1 %v5901_v30 }
 0x17a   :  { %v706_v37 = vpop.f32.mrb[10].mxu1  ;;  %v531_v6 = vadd.f32 %v4955_v53, %v520_v35  ;;  %v1232_v35 = vld [vmem:[%s7634_s7 + $0x8] sm:$0xff] }
 0x17b   :  { %v510_v39 = vpop.f32.mrb[12].mxu0  ;;  %v708_v40 = vpop.f32.mrb[11].mxu1  ;;  %v7104_v36 = vpack.c.bf16 %v1232_v35, %v1231_v34 }
 0x17c   :  { %v521_v57 = vadd.f32 %v510_v39, %v368_v46  ;;  %v512_v41 = vpop.f32.mrb[13].mxu0  ;;  %v535_v16 = vmax.f32 %v531_v6, 0.0  ;;  %v1234_v39 = vld [vmem:[%s7634_s7 + $0x18] sm:$0xff] }
 0x17e   :  { %v711_v43 = vpop.f32.mrb[12].mxu1  ;;  %v532_v18 = vadd.f32 %v4955_v53, %v521_v57  ;;  %v6533_v57 = vmov 0.0  }
 0x17f   :  { %v515_v44 = vpop.f32.mrb[14].mxu0  ;;  %v713_v45 = vpop.f32.mrb[13].mxu1 }
 0x180   :  { %v522_v47 = vadd.f32 %v515_v44, %v373_v25  ;;  %v517_v49 = vpop.f32.mrb[15].mxu0  ;;  %v536_v23 = vmax.f32 %v532_v18, 0.0 }
 0x182   :  { %v716_v1 = vpop.f32.mrb[14].mxu1  ;;  %v533_v5 = vadd.f32 %v4955_v53, %v522_v47 }
 0x183   :  { %v718_v50 = vpop.f32.mrb[15].mxu1 }
 0x184   :  { %v537_v25 = vmax.f32 %v533_v5, 0.0 }
 0x197   :  { %v820_v51 = vpop.f32.mrb[16].mxu0 }
 0x198   :  { %v821_v54 = vadd.f32 %v820_v51, %v701_v32  ;;  %v822_v55 = vpop.f32.mrb[17].mxu0  ;;  %v935_v56 = vpop.f32.mrb[16].mxu1  ;;  %v1122_v32 = vld [vmem:[%s7633_s6 + $0x18] sm:$0xff] }
 0x199   :  { %v937_v58 = vpop.f32.mrb[17].mxu1  ;;  %v5905_v33 = vpack.c.bf16 %v1122_v32, %v1121_v31 }
 0x19a   :  { %v954_v59 = vadd.f32 %v935_v56, %v821_v54 }
 0x19b   :  { %v825_v61 = vpop.f32.mrb[18].mxu0  ;;  %5906 = vmatprep.subr.bf16.mxu1 %v5905_v33 }
 0x19c   :  { %v966_v27 = vadd.f32 %v4969_v13, %v954_v59  ;;  %v826_v48 = vadd.f32 %v825_v61, %v706_v37  ;;  %v827_v17 = vpop.f32.mrb[19].mxu0  ;;  %v940_v63 = vpop.f32.mrb[18].mxu1  ;;  %5908 = vmatpush3.bf16.msra.mxu1 %v5905_v33  ;;  %v1233_v37 = vld [vmem:[%s7634_s7 + $0x10] sm:$0xff] }
 0x19d   :  { %v942_v2 = vpop.f32.mrb[19].mxu1  ;;  %5909 = vmatprep.subr.bf16.mxu1 %v6531_v0  ;;  %v7114_v40 = vpack.c.bf16 %v1234_v39, %v1233_v37 }
 0x19e   :  { %v970_v3 = vmax.f32 %v966_v27, 0.0  ;;  %v955_v4 = vadd.f32 %v940_v63, %v826_v48  ;;  %v4971_v63 = vld [vmem:[%s7635_s8] ss:$0 sm:$0xff] }
 0x19f   :  { %v830_v7 = vpop.f32.mrb[20].mxu0 }
 0x1a0   :  { %v967_v8 = vadd.f32 %v4969_v13, %v955_v4  ;;  %v831_v9 = vadd.f32 %v830_v7, %v711_v43  ;;  %v832_v10 = vpop.f32.mrb[21].mxu0  ;;  %v945_v11 = vpop.f32.mrb[20].mxu1  ;;  %1089 = vmatprep.mubr.f32.mxu0 %v970_v3  ;;  %v4970_v43 = vld [vmem:[#allocation10] ss:$0 sm:$0xff] }
 0x1a1   :  { %v947_v12 = vpop.f32.mrb[21].mxu1  ;;  %1090 = vmatmul.mubr.f32.vlgmr.msra.gmra.mrb[24].mxu0 %v534_v52 }
 0x1a2   :  { %v971_v14 = vmax.f32 %v967_v8, 0.0  ;;  %v956_v15 = vadd.f32 %v945_v11, %v831_v9  ;;  %5929 = vmatpush3.bf16.msra.mxu0 %v7104_v36 }
 0x1a3   :  { %v835_v42 = vpop.f32.mrb[22].mxu0  ;;  %5930 = vmatprep.subr.bf16.mxu0 %v6531_v0 }
 0x1a4   :  { %v968_v19 = vadd.f32 %v4969_v13, %v956_v15  ;;  %v836_v20 = vadd.f32 %v835_v42, %v716_v1  ;;  %v837_v28 = vpop.f32.mrb[23].mxu0  ;;  %v950_v21 = vpop.f32.mrb[22].mxu1  ;;  %1094 = vmatprep.mubr.f32.mxu0 %v971_v14 }
 0x1a5   :  { %v952_v38 = vpop.f32.mrb[23].mxu1  ;;  %1095 = vmatmul.mubr.f32.gmra.mrb[26].mxu0 %v535_v16 }
 0x1a6   :  { %v972_v22 = vmax.f32 %v968_v19, 0.0  ;;  %v957_v46 = vadd.f32 %v950_v21, %v836_v20  ;;  %5932 = vmatpush3.bf16.msra.mxu0 %v7114_v40 }
 0x1a7   :  { %5939 = vmatprep.subr.bf16.mxu0 %v6531_v0 }
 0x1a8   :  { %v969_v62 = vadd.f32 %v4969_v13, %v957_v46  ;;  %1099 = vmatprep.mubr.f32.mxu0 %v972_v22 }
 0x1a9   :  { %1100 = vmatmul.mubr.f32.gmra.mrb[28].mxu0 %v536_v23 }
 0x1aa   :  { %v973_v24 = vmax.f32 %v969_v62, 0.0 }
 0x1ac   :  { %1104 = vmatprep.mubr.f32.mxu0 %v973_v24 }
 0x1ad   :  { %1105 = vmatmul.mubr.f32.gmra.mrb[30].mxu0 %v537_v25 }
 0x1ae   :  { %5354 = vmatprep.mubr.msk.f32.mxu0 %vm6532_vm4, %v6533_v57 }
 0x274   :  { %v5095_v41 = vpop.f32.mrb[24].mxu0 }
 0x275   :  { %v5096_v44 = vpop.f32.mrb[25].mxu0 }
 0x276   :  { %v5097_v45 = vadd.f32 %v5096_v44, %v5095_v41 }
 0x278   :  { %v1092_v47 = vadd.f32 %v5097_v45, %v4970_v43  ;;  %v5098_v49 = vpop.f32.mrb[26].mxu0 }
 0x279   :  { %v5099_v1 = vpop.f32.mrb[27].mxu0 }
 0x27a   :  { %1111 = vst.msk [vmem:[#allocation3] sm:$0xff] %vm1110_vm5, %v1092_v47  ;;  %v5100_v50 = vadd.f32 %v5099_v1, %v5098_v49 }
 0x27c   :  { %v1097_v51 = vadd.f32 %v5100_v50, %v4970_v43  ;;  %v5101_v53 = vpop.f32.mrb[28].mxu0 }
 0x27d   :  { %v5102_v54 = vpop.f32.mrb[29].mxu0 }
 0x27e   :  { %1112 = vst.msk [vmem:[#allocation3 + $0x8] sm:$0xff] %vm1110_vm5, %v1097_v51  ;;  %v5103_v55 = vadd.f32 %v5102_v54, %v5101_v53 }
 0x280   :  { %v1102_v56 = vadd.f32 %v5103_v55, %v4970_v43  ;;  %v5104_v13 = vpop.f32.mrb[30].mxu0 }
 0x281   :  { %v5105_v58 = vpop.f32.mrb[31].mxu0  ;;  %v1115_v59 = vld [vmem:[#allocation3] sm:$0xff] }
 0x282   :  { %1113 = vst.msk [vmem:[#allocation3 + $0x10] sm:$0xff] %vm1110_vm5, %v1102_v56  ;;  %v5106_v60 = vadd.f32 %v5105_v58, %v5104_v13  ;;  %5307 = vmatprep.mubr.msk.f32.mxu1 %vm1110_vm5, %v1115_v59 }
 0x284   :  { %v1107_v61 = vadd.f32 %v5106_v60, %v4970_v43 }
 0x285   :  { %v1116_v27 = vld [vmem:[#allocation3 + $0x8] sm:$0xff] }
 0x286   :  { %1114 = vst.msk [vmem:[#allocation3 + $0x18] sm:$0xff] %vm1110_vm5, %v1107_v61  ;;  %5308 = vmatmul.mubr.msk.f32.vlgmr.msra.gmra.mrb[24].mxu1 %vm1110_vm5, %v1116_v27 }
 0x287   :  { %5911 = vmatpush3.bf16.msra.mxu1 %v7104_v36 }
 0x288   :  { %5912 = vmatprep.subr.bf16.mxu1 %v6531_v0 }
 0x289   :  { %v1117_v48 = vld [vmem:[#allocation3 + $0x10] sm:$0xff] }
 0x28a   :  { %5310 = vmatprep.mubr.msk.f32.mxu1 %vm1110_vm5, %v1117_v48 }
 0x28b   :  { %5914 = vmatpush3.bf16.msra.mxu1 %v7114_v40 }
 0x28c   :  { %5915 = vmatprep.subr.bf16.mxu1 %v6531_v0 }
 0x28d   :  { %v1118_v17 = vld [vmem:[#allocation3 + $0x18] sm:$0xff] }
 0x28e   :  { %5311 = vmatmul.mubr.msk.f32.gmra.mrb[26].mxu1 %vm1110_vm5, %v1118_v17 }
 0x28f   :  { %5321 = vmatprep.mubr.msk.f32.mxu1 %vm6532_vm4, %v6533_v57 }
 0x292   :  { %5322 = vmatmul.mubr.f32.vlgmr.msra.gmra.mrb[28].mxu1 %v6533_v57 }
 0x293   :  { %5917 = vmatpush3.bf16.msra.mxu1 %v7104_v36  ;;  %5332 = vmatprep.mubr.msk.f32.mxu1 %vm6532_vm4, %v6533_v57 }
 0x294   :  { %5918 = vmatprep.subr.bf16.mxu1 %v6531_v0 }
 0x297   :  { %5920 = vmatpush3.bf16.msra.mxu1 %v7114_v40 }
 0x298   :  { %5921 = vmatprep.subr.bf16.mxu1 %v6531_v0 }
 0x359   :  { %v5309_v2 = vpop.f32.mrb[24].mxu1 }
 0x35a   :  { %v1214_v3 = vadd.f32 %v5309_v2, %v4971_v63  ;;  %v1208_v4 = vpop.f32.mrb[25].mxu1 }
 0x35b   :  { %v1209_v52 = vadd.f32 %v4971_v63, %v1208_v4 }
 0x35c   :  { %1228 = vst [vmem:[#allocation4 + $0x8] sm:$0xff] %v1214_v3 }
 0x35d   :  { %1227 = vst [vmem:[#allocation4] sm:$0xff] %v1209_v52 }
 0x361   :  { %v5312_v6 = vpop.f32.mrb[26].mxu1 }
 0x362   :  { %v1224_v7 = vadd.f32 %v5312_v6, %v4971_v63  ;;  %v1218_v8 = vpop.f32.mrb[27].mxu1 }
 0x363   :  { %v1219_v9 = vadd.f32 %v4971_v63, %v1218_v8 }
 0x364   :  { %1230 = vst [vmem:[#allocation4 + $0x18] sm:$0xff] %v1224_v7  ;;  %v1235_v10 = vld [vmem:[#allocation4] sm:$0x3]  ;;  %v1340_v24 = vld [vmem:[#allocation4 + $0x2] sm:$0x3] }
 0x365   :  { %1229 = vst [vmem:[#allocation4 + $0x10] sm:$0xff] %v1219_v9  ;;  %v1305_v11 = vpop.f32.mrb[28].mxu1  ;;  %v1443_v1 = vld [vmem:[#allocation4 + $0x4] sm:$0x3]  ;;  %v1546_v4 = vld [vmem:[#allocation4 + $0x6] sm:$0x3] }
 0x366   :  { %v1309_v12 = vadd.f32 %v1305_v11, %v1235_v10  ;;  %v5323_v14 = vpop.f32.mrb[29].mxu1 }
 0x368   :  { %6138 = vtanh.f32 %v1309_v12  ;;  %v4976_v16 = vmul.f32 -1.442695, %v1309_v12 }
 0x36a   :  { %6140 = vpow2.f32 %v4976_v16 }
 0x372   :  { %v6139_v15 = vpop.eup %6138 }
 0x373   :  { %1319 = vrot.lane.b32.xlu0 %v6139_v15, %s6534_s24 }
 0x374   :  { %v6141_v18 = vpop.eup %6140 }
 0x375   :  { %v1313_v42 = vadd.f32 1.0, %v6141_v18 }
 0x377   :  { %6142 = vrcp.f32 %v1313_v42 }
 0x381   :  { %v6143_v19 = vpop.eup %6142 }
 0x382   :  { %v1317_v21 = vmul.f32 0.0, %v6143_v19 }
 0x3e5   :  { %v1320_v20 = vpop.permute.xlu0 %1319 }
 0x3e6   :  { %v1322_v28 = vmul.f32 %v6143_v19, %v1320_v20 }
 0x3e8   :  { %1324 = vrot.lane.b32.xlu0 %v1322_v28, %s6535_s1 }
 0x45a   :  { %v1325_v38 = vpop.permute.xlu0 %1324 }
 0x45b   :  { %v1327_v22 = vadd.f32 %v1325_v38, %v1317_v21  ;;  %v1649_v38 = vld [vmem:[#allocation4 + $0x8] sm:$0x3] }
 0x45d   :  { %6144 = vtanh.f32 %v1327_v22 }
 0x467   :  { %v6145_v46 = vpop.eup %6144 }
 0x468   :  { %1330 = vrot.lane.b32.xlu1 %v6145_v46, %s6534_s24 }
 0x4da   :  { %v1331_v23 = vpop.permute.xlu1 %1330 }
 0x4db   :  { %v1333_v5 = vmul.f32 %v6143_v19, %v1331_v23 }
 0x4dd   :  { %1335 = vrot.lane.b32.xlu1 %v1333_v5, %s6535_s1 }
 0x54f   :  { %v1336_v62 = vpop.permute.xlu1 %1335 }
 0x550   :  { %1339 = vst.msk [vmem:[#allocation3] sm:$0x3] %vm1338_vm6, %v1336_v62  ;;  %5333 = vmatmul.mubr.msk.f32.vlgmr.msra.gmra.mrb[30].mxu1 %vm1110_vm5, %v1336_v62 }
 0x551   :  { %5923 = vmatpush3.bf16.msra.mxu1 %v7104_v36  ;;  %5343 = vmatprep.mubr.msk.f32.mxu1 %vm6532_vm4, %v6533_v57 }
 0x552   :  { %5924 = vmatprep.subr.bf16.mxu1 %v6531_v0 }
 0x555   :  { %5926 = vmatpush3.bf16.msra.mxu1 %v7114_v40 }
 0x556   :  { %5933 = vmatprep.subr.bf16.mxu1 %v6531_v0 }
 0x623   :  { %v1409_v25 = vpop.f32.mrb[30].mxu1 }
 0x624   :  { %v1413_v26 = vadd.f32 %v1409_v25, %v1340_v24  ;;  %v5334_v29 = vpop.f32.mrb[31].mxu1 }
 0x626   :  { %6146 = vtanh.f32 %v1413_v26  ;;  %v4978_v31 = vmul.f32 -1.442695, %v1413_v26 }
 0x628   :  { %6148 = vpow2.f32 %v4978_v31 }
 0x630   :  { %v6147_v30 = vpop.eup %6146 }
 0x631   :  { %1423 = vrot.lane.b32.xlu0 %v6147_v30, %s6534_s24 }
 0x632   :  { %v6149_v32 = vpop.eup %6148 }
 0x633   :  { %v1417_v33 = vadd.f32 1.0, %v6149_v32 }
 0x635   :  { %6150 = vrcp.f32 %v1417_v33 }
 0x63f   :  { %v6151_v34 = vpop.eup %6150 }
 0x640   :  { %v1421_v39 = vmul.f32 %v6151_v34, %v1327_v22 }
 0x6a3   :  { %v1424_v35 = vpop.permute.xlu0 %1423 }
 0x6a4   :  { %v1426_v37 = vmul.f32 %v6151_v34, %v1424_v35 }
 0x6a6   :  { %1428 = vrot.lane.b32.xlu1 %v1426_v37, %s6535_s1 }
 0x718   :  { %v1429_v41 = vpop.permute.xlu1 %1428 }
 0x719   :  { %v1431_v43 = vadd.f32 %v1429_v41, %v1421_v39  ;;  %v1752_v41 = vld [vmem:[#allocation4 + $0xa] sm:$0x3] }
 0x71b   :  { %6152 = vtanh.f32 %v1431_v43 }
 0x725   :  { %v6153_v44 = vpop.eup %6152 }
 0x726   :  { %1434 = vrot.lane.b32.xlu0 %v6153_v44, %s6534_s24 }
 0x798   :  { %v1435_v45 = vpop.permute.xlu0 %1434 }
 0x799   :  { %v1437_v47 = vmul.f32 %v6151_v34, %v1435_v45 }
 0x79b   :  { %1439 = vrot.lane.b32.xlu1 %v1437_v47, %s6535_s1 }
 0x80d   :  { %v1440_v49 = vpop.permute.xlu1 %1439 }
 0x80e   :  { %1442 = vst.msk [vmem:[#allocation3 + $0x2] sm:$0x3] %vm1338_vm6, %v1440_v49  ;;  %5344 = vmatmul.mubr.msk.f32.vlgmr.msra.gmra.mrb[32].mxu1 %vm1110_vm5, %v1440_v49 }
 0x80f   :  { %5935 = vmatpush3.bf16.msra.mxu1 %v7104_v36  ;;  %5365 = vmatprep.mubr.msk.f32.mxu1 %vm6532_vm4, %v6533_v57 }
 0x810   :  { %5936 = vmatprep.subr.bf16.mxu1 %v6531_v0 }
 0x813   :  { %5938 = vmatpush3.bf16.msra.mxu1 %v7114_v40 }
 0x814   :  { %5945 = vmatprep.subr.bf16.mxu1 %v6531_v0 }
 0x8e1   :  { %v1512_v50 = vpop.f32.mrb[32].mxu1 }
 0x8e2   :  { %v1516_v51 = vadd.f32 %v1512_v50, %v1443_v1  ;;  %v5345_v53 = vpop.f32.mrb[33].mxu1 }
 0x8e4   :  { %6154 = vtanh.f32 %v1516_v51  ;;  %v4980_v55 = vmul.f32 -1.442695, %v1516_v51 }
 0x8e6   :  { %6156 = vpow2.f32 %v4980_v55 }
 0x8ee   :  { %v6155_v54 = vpop.eup %6154 }
 0x8ef   :  { %1526 = vrot.lane.b32.xlu0 %v6155_v54, %s6534_s24 }
 0x8f0   :  { %v6157_v56 = vpop.eup %6156 }
 0x8f1   :  { %v1520_v13 = vadd.f32 1.0, %v6157_v56 }
 0x8f3   :  { %6158 = vrcp.f32 %v1520_v13 }
 0x8fd   :  { %v6159_v58 = vpop.eup %6158 }
 0x8fe   :  { %v1524_v61 = vmul.f32 %v6159_v58, %v1431_v43 }
 0x961   :  { %v1527_v59 = vpop.permute.xlu0 %1526 }
 0x962   :  { %v1529_v60 = vmul.f32 %v6159_v58, %v1527_v59 }
 0x964   :  { %1531 = vrot.lane.b32.xlu1 %v1529_v60, %s6535_s1 }
 0x9d6   :  { %v1532_v27 = vpop.permute.xlu1 %1531 }
 0x9d7   :  { %v1534_v48 = vadd.f32 %v1532_v27, %v1524_v61  ;;  %v1855_v27 = vld [vmem:[#allocation4 + $0xc] sm:$0x3] }
 0x9d9   :  { %6160 = vtanh.f32 %v1534_v48 }
 0x9e3   :  { %v6161_v17 = vpop.eup %6160 }
 0x9e4   :  { %1537 = vrot.lane.b32.xlu0 %v6161_v17, %s6534_s24 }
 0xa56   :  { %v1538_v63 = vpop.permute.xlu0 %1537 }
 0xa57   :  { %v1540_v2 = vmul.f32 %v6159_v58, %v1538_v63 }
 0xa59   :  { %1542 = vrot.lane.b32.xlu1 %v1540_v2, %s6535_s1 }
 0xacb   :  { %v1543_v3 = vpop.permute.xlu1 %1542 }
 0xacc   :  { %1545 = vst.msk [vmem:[#allocation3 + $0x4] sm:$0x3] %vm1338_vm6, %v1543_v3  ;;  %5355 = vmatmul.mubr.msk.f32.vlgmr.msra.gmra.mrb[32].mxu0 %vm1110_vm5, %v1543_v3 }
 0xacd   :  { %5941 = vmatpush3.bf16.msra.mxu0 %v7104_v36  ;;  %5376 = vmatprep.mubr.msk.f32.mxu0 %vm6532_vm4, %v6533_v57 }
 0xace   :  { %5942 = vmatprep.subr.bf16.mxu0 %v6531_v0 }
 0xad1   :  { %5944 = vmatpush3.bf16.msra.mxu0 %v7114_v40 }
 0xad2   :  { %5951 = vmatprep.subr.bf16.mxu0 %v6531_v0 }
 0xb9f   :  { %v1615_v52 = vpop.f32.mrb[32].mxu0 }
 0xba0   :  { %v1619_v6 = vadd.f32 %v1615_v52, %v1546_v4  ;;  %v5356_v7 = vpop.f32.mrb[33].mxu0 }
 0xba2   :  { %6162 = vtanh.f32 %v1619_v6  ;;  %v4982_v9 = vmul.f32 -1.442695, %v1619_v6 }
 0xba4   :  { %6164 = vpow2.f32 %v4982_v9 }
 0xbac   :  { %v6163_v8 = vpop.eup %6162 }
 0xbad   :  { %1629 = vrot.lane.b32.xlu0 %v6163_v8, %s6534_s24 }
 0xbae   :  { %v6165_v10 = vpop.eup %6164 }
 0xbaf   :  { %v1623_v11 = vadd.f32 1.0, %v6165_v10 }
 0xbb1   :  { %6166 = vrcp.f32 %v1623_v11 }
 0xbbb   :  { %v6167_v12 = vpop.eup %6166 }
 0xbbc   :  { %v1627_v16 = vmul.f32 %v6167_v12, %v1534_v48 }
 0xc1f   :  { %v1630_v14 = vpop.permute.xlu0 %1629 }
 0xc20   :  { %v1632_v15 = vmul.f32 %v6167_v12, %v1630_v14 }
 0xc22   :  { %1634 = vrot.lane.b32.xlu1 %v1632_v15, %s6535_s1 }
 0xc94   :  { %v1635_v18 = vpop.permute.xlu1 %1634 }
 0xc95   :  { %v1637_v42 = vadd.f32 %v1635_v18, %v1627_v16  ;;  %v1958_v18 = vld [vmem:[#allocation4 + $0xe] sm:$0x3] }
 0xc97   :  { %6168 = vtanh.f32 %v1637_v42 }
 0xca1   :  { %v6169_v19 = vpop.eup %6168 }
 0xca2   :  { %1640 = vrot.lane.b32.xlu0 %v6169_v19, %s6534_s24 }
 0xd14   :  { %v1641_v20 = vpop.permute.xlu0 %1640 }
 0xd15   :  { %v1643_v28 = vmul.f32 %v6167_v12, %v1641_v20 }
 0xd17   :  { %1645 = vrot.lane.b32.xlu1 %v1643_v28, %s6535_s1 }
 0xd89   :  { %v1646_v21 = vpop.permute.xlu1 %1645 }
 0xd8a   :  { %1648 = vst.msk [vmem:[#allocation3 + $0x6] sm:$0x3] %vm1338_vm6, %v1646_v21  ;;  %5366 = vmatmul.mubr.msk.f32.vlgmr.msra.gmra.mrb[34].mxu1 %vm1110_vm5, %v1646_v21 }
 0xd8b   :  { %5947 = vmatpush3.bf16.msra.mxu1 %v7104_v36  ;;  %5387 = vmatprep.mubr.msk.f32.mxu1 %vm6532_vm4, %v6533_v57 }
 0xd8c   :  { %5948 = vmatprep.subr.bf16.mxu1 %v6531_v0 }
 0xd8f   :  { %5950 = vmatpush3.bf16.msra.mxu1 %v7114_v40 }
 0xd90   :  { %5957 = vmatprep.subr.bf16.mxu1 %v6531_v0 }
 0xe5d   :  { %v1718_v22 = vpop.f32.mrb[34].mxu1 }
 0xe5e   :  { %v1722_v46 = vadd.f32 %v1718_v22, %v1649_v38  ;;  %v5367_v23 = vpop.f32.mrb[35].mxu1 }
 0xe60   :  { %6170 = vtanh.f32 %v1722_v46  ;;  %v4984_v62 = vmul.f32 -1.442695, %v1722_v46 }
 0xe62   :  { %6172 = vpow2.f32 %v4984_v62 }
 0xe6a   :  { %v6171_v5 = vpop.eup %6170 }
 0xe6b   :  { %1732 = vrot.lane.b32.xlu0 %v6171_v5, %s6534_s24 }
 0xe6c   :  { %v6173_v24 = vpop.eup %6172 }
 0xe6d   :  { %v1726_v25 = vadd.f32 1.0, %v6173_v24 }
 0xe6f   :  { %6174 = vrcp.f32 %v1726_v25 }
 0xe79   :  { %v6175_v26 = vpop.eup %6174 }
 0xe7a   :  { %v1730_v31 = vmul.f32 %v6175_v26, %v1637_v42 }
 0xedd   :  { %v1733_v29 = vpop.permute.xlu0 %1732 }
 0xede   :  { %v1735_v30 = vmul.f32 %v6175_v26, %v1733_v29 }
 0xee0   :  { %1737 = vrot.lane.b32.xlu1 %v1735_v30, %s6535_s1 }
 0xf52   :  { %v1738_v32 = vpop.permute.xlu1 %1737 }
 0xf53   :  { %v1740_v33 = vadd.f32 %v1738_v32, %v1730_v31  ;;  %v2061_v32 = vld [vmem:[#allocation4 + $0x10] sm:$0x3] }
 0xf55   :  { %6176 = vtanh.f32 %v1740_v33 }
 0xf5f   :  { %v6177_v34 = vpop.eup %6176 }
 0xf60   :  { %1743 = vrot.lane.b32.xlu0 %v6177_v34, %s6534_s24 }
 0xfd2   :  { %v1744_v35 = vpop.permute.xlu0 %1743 }
 0xfd3   :  { %v1746_v37 = vmul.f32 %v6175_v26, %v1744_v35 }
 0xfd5   :  { %1748 = vrot.lane.b32.xlu1 %v1746_v37, %s6535_s1 }
0x1047   :  { %v1749_v39 = vpop.permute.xlu1 %1748 }
0x1048   :  { %1751 = vst.msk [vmem:[#allocation3 + $0x8] sm:$0x3] %vm1338_vm6, %v1749_v39  ;;  %5377 = vmatmul.mubr.msk.f32.vlgmr.msra.gmra.mrb[34].mxu0 %vm1110_vm5, %v1749_v39 }
0x1049   :  { %5953 = vmatpush3.bf16.msra.mxu0 %v7104_v36  ;;  %5398 = vmatprep.mubr.msk.f32.mxu0 %vm6532_vm4, %v6533_v57 }
0x104a   :  { %5954 = vmatprep.subr.bf16.mxu0 %v6531_v0 }
0x104d   :  { %5956 = vmatpush3.bf16.msra.mxu0 %v7114_v40 }
0x104e   :  { %5963 = vmatprep.subr.bf16.mxu0 %v6531_v0 }
0x111b   :  { %v1821_v43 = vpop.f32.mrb[34].mxu0 }
0x111c   :  { %v1825_v44 = vadd.f32 %v1821_v43, %v1752_v41  ;;  %v5378_v45 = vpop.f32.mrb[35].mxu0 }
0x111e   :  { %6178 = vtanh.f32 %v1825_v44  ;;  %v4986_v49 = vmul.f32 -1.442695, %v1825_v44 }
0x1120   :  { %6180 = vpow2.f32 %v4986_v49 }
0x1128   :  { %v6179_v47 = vpop.eup %6178 }
0x1129   :  { %1835 = vrot.lane.b32.xlu0 %v6179_v47, %s6534_s24 }
0x112a   :  { %v6181_v1 = vpop.eup %6180 }
0x112b   :  { %v1829_v50 = vadd.f32 1.0, %v6181_v1 }
0x112d   :  { %6182 = vrcp.f32 %v1829_v50 }
0x1137   :  { %v6183_v51 = vpop.eup %6182 }
0x1138   :  { %v1833_v55 = vmul.f32 %v6183_v51, %v1740_v33 }
0x119b   :  { %v1836_v53 = vpop.permute.xlu0 %1835 }
0x119c   :  { %v1838_v54 = vmul.f32 %v6183_v51, %v1836_v53 }
0x119e   :  { %1840 = vrot.lane.b32.xlu1 %v1838_v54, %s6535_s1 }
0x1210   :  { %v1841_v56 = vpop.permute.xlu1 %1840 }
0x1211   :  { %v1843_v13 = vadd.f32 %v1841_v56, %v1833_v55  ;;  %v2164_v56 = vld [vmem:[#allocation4 + $0x12] sm:$0x3] }
0x1213   :  { %6184 = vtanh.f32 %v1843_v13 }
0x121d   :  { %v6185_v58 = vpop.eup %6184 }
0x121e   :  { %1846 = vrot.lane.b32.xlu0 %v6185_v58, %s6534_s24 }
0x1290   :  { %v1847_v59 = vpop.permute.xlu0 %1846 }
0x1291   :  { %v1849_v60 = vmul.f32 %v6183_v51, %v1847_v59 }
0x1293   :  { %1851 = vrot.lane.b32.xlu1 %v1849_v60, %s6535_s1 }
0x1305   :  { %v1852_v61 = vpop.permute.xlu1 %1851 }
0x1306   :  { %1854 = vst.msk [vmem:[#allocation3 + $0xa] sm:$0x3] %vm1338_vm6, %v1852_v61  ;;  %5388 = vmatmul.mubr.msk.f32.vlgmr.msra.gmra.mrb[36].mxu1 %vm1110_vm5, %v1852_v61 }
0x1307   :  { %5959 = vmatpush3.bf16.msra.mxu1 %v7104_v36  ;;  %5409 = vmatprep.mubr.msk.f32.mxu1 %vm6532_vm4, %v6533_v57 }
0x1308   :  { %5960 = vmatprep.subr.bf16.mxu1 %v6531_v0 }
0x130b   :  { %5962 = vmatpush3.bf16.msra.mxu1 %v7114_v40 }
0x130c   :  { %5969 = vmatprep.subr.bf16.mxu1 %v6531_v0 }
0x13d9   :  { %v1924_v48 = vpop.f32.mrb[36].mxu1 }
0x13da   :  { %v1928_v17 = vadd.f32 %v1924_v48, %v1855_v27  ;;  %v5389_v63 = vpop.f32.mrb[37].mxu1 }
0x13dc   :  { %6186 = vtanh.f32 %v1928_v17  ;;  %v4988_v3 = vmul.f32 -1.442695, %v1928_v17 }
0x13de   :  { %6188 = vpow2.f32 %v4988_v3 }
0x13e6   :  { %v6187_v2 = vpop.eup %6186 }
0x13e7   :  { %1938 = vrot.lane.b32.xlu0 %v6187_v2, %s6534_s24 }
0x13e8   :  { %v6189_v4 = vpop.eup %6188 }
0x13e9   :  { %v1932_v52 = vadd.f32 1.0, %v6189_v4 }
0x13eb   :  { %6190 = vrcp.f32 %v1932_v52 }
0x13f5   :  { %v6191_v6 = vpop.eup %6190 }
0x13f6   :  { %v1936_v9 = vmul.f32 %v6191_v6, %v1843_v13 }
0x1459   :  { %v1939_v7 = vpop.permute.xlu0 %1938 }
0x145a   :  { %v1941_v8 = vmul.f32 %v6191_v6, %v1939_v7 }
0x145c   :  { %1943 = vrot.lane.b32.xlu1 %v1941_v8, %s6535_s1 }
0x14ce   :  { %v1944_v10 = vpop.permute.xlu1 %1943 }
0x14cf   :  { %v1946_v11 = vadd.f32 %v1944_v10, %v1936_v9  ;;  %v2267_v10 = vld [vmem:[#allocation4 + $0x14] sm:$0x3] }
0x14d1   :  { %6192 = vtanh.f32 %v1946_v11 }
0x14db   :  { %v6193_v12 = vpop.eup %6192 }
0x14dc   :  { %1949 = vrot.lane.b32.xlu0 %v6193_v12, %s6534_s24 }
0x154e   :  { %v1950_v14 = vpop.permute.xlu0 %1949 }
0x154f   :  { %v1952_v15 = vmul.f32 %v6191_v6, %v1950_v14 }
0x1551   :  { %1954 = vrot.lane.b32.xlu1 %v1952_v15, %s6535_s1 }
0x15c3   :  { %v1955_v16 = vpop.permute.xlu1 %1954 }
0x15c4   :  { %1957 = vst.msk [vmem:[#allocation3 + $0xc] sm:$0x3] %vm1338_vm6, %v1955_v16  ;;  %5399 = vmatmul.mubr.msk.f32.vlgmr.msra.gmra.mrb[36].mxu0 %vm1110_vm5, %v1955_v16 }
0x15c5   :  { %5965 = vmatpush3.bf16.msra.mxu0 %v7104_v36  ;;  %5420 = vmatprep.mubr.msk.f32.mxu0 %vm6532_vm4, %v6533_v57 }
0x15c6   :  { %5966 = vmatprep.subr.bf16.mxu0 %v6531_v0 }
0x15c9   :  { %5968 = vmatpush3.bf16.msra.mxu0 %v7114_v40 }
0x15ca   :  { %5975 = vmatprep.subr.bf16.mxu0 %v6531_v0 }
0x1697   :  { %v2027_v42 = vpop.f32.mrb[36].mxu0 }
0x1698   :  { %v2031_v19 = vadd.f32 %v2027_v42, %v1958_v18  ;;  %v5400_v20 = vpop.f32.mrb[37].mxu0 }
0x169a   :  { %6194 = vtanh.f32 %v2031_v19  ;;  %v4990_v21 = vmul.f32 -1.442695, %v2031_v19 }
0x169c   :  { %6196 = vpow2.f32 %v4990_v21 }
0x16a4   :  { %v6195_v28 = vpop.eup %6194 }
0x16a5   :  { %2041 = vrot.lane.b32.xlu0 %v6195_v28, %s6534_s24 }
0x16a6   :  { %v6197_v38 = vpop.eup %6196 }
0x16a7   :  { %v2035_v22 = vadd.f32 1.0, %v6197_v38 }
0x16a9   :  { %6198 = vrcp.f32 %v2035_v22 }
0x16b3   :  { %v6199_v46 = vpop.eup %6198 }
0x16b4   :  { %v2039_v62 = vmul.f32 %v6199_v46, %v1946_v11 }
0x1717   :  { %v2042_v23 = vpop.permute.xlu0 %2041 }
0x1718   :  { %v2044_v5 = vmul.f32 %v6199_v46, %v2042_v23 }
0x171a   :  { %2046 = vrot.lane.b32.xlu1 %v2044_v5, %s6535_s1 }
0x178c   :  { %v2047_v24 = vpop.permute.xlu1 %2046 }
0x178d   :  { %v2049_v25 = vadd.f32 %v2047_v24, %v2039_v62  ;;  %v2370_v24 = vld [vmem:[#allocation4 + $0x16] sm:$0x3] }
0x178f   :  { %6200 = vtanh.f32 %v2049_v25 }
0x1799   :  { %v6201_v26 = vpop.eup %6200 }
0x179a   :  { %2052 = vrot.lane.b32.xlu0 %v6201_v26, %s6534_s24 }
0x180c   :  { %v2053_v29 = vpop.permute.xlu0 %2052 }
0x180d   :  { %v2055_v30 = vmul.f32 %v6199_v46, %v2053_v29 }
0x180f   :  { %2057 = vrot.lane.b32.xlu1 %v2055_v30, %s6535_s1 }
0x1881   :  { %v2058_v31 = vpop.permute.xlu1 %2057 }
0x1882   :  { %2060 = vst.msk [vmem:[#allocation3 + $0xe] sm:$0x3] %vm1338_vm6, %v2058_v31  ;;  %5410 = vmatmul.mubr.msk.f32.vlgmr.msra.gmra.mrb[38].mxu1 %vm1110_vm5, %v2058_v31 }
0x1883   :  { %5971 = vmatpush3.bf16.msra.mxu1 %v7104_v36  ;;  %5431 = vmatprep.mubr.msk.f32.mxu1 %vm6532_vm4, %v6533_v57 }
0x1884   :  { %5972 = vmatprep.subr.bf16.mxu1 %v6531_v0 }
0x1887   :  { %5974 = vmatpush3.bf16.msra.mxu1 %v7114_v40 }
0x1888   :  { %5981 = vmatprep.subr.bf16.mxu1 %v6531_v0 }
0x1955   :  { %v2130_v33 = vpop.f32.mrb[38].mxu1 }
0x1956   :  { %v2134_v34 = vadd.f32 %v2130_v33, %v2061_v32  ;;  %v5411_v35 = vpop.f32.mrb[39].mxu1 }
0x1958   :  { %6202 = vtanh.f32 %v2134_v34  ;;  %v4992_v39 = vmul.f32 -1.442695, %v2134_v34 }
0x195a   :  { %6204 = vpow2.f32 %v4992_v39 }
0x1962   :  { %v6203_v37 = vpop.eup %6202 }
0x1963   :  { %2144 = vrot.lane.b32.xlu0 %v6203_v37, %s6534_s24 }
0x1964   :  { %v6205_v41 = vpop.eup %6204 }
0x1965   :  { %v2138_v43 = vadd.f32 1.0, %v6205_v41 }
0x1967   :  { %6206 = vrcp.f32 %v2138_v43 }
0x1971   :  { %v6207_v44 = vpop.eup %6206 }
0x1972   :  { %v2142_v49 = vmul.f32 %v6207_v44, %v2049_v25 }
0x19d5   :  { %v2145_v45 = vpop.permute.xlu0 %2144 }
0x19d6   :  { %v2147_v47 = vmul.f32 %v6207_v44, %v2145_v45 }
0x19d8   :  { %2149 = vrot.lane.b32.xlu1 %v2147_v47, %s6535_s1 }
0x1a4a   :  { %v2150_v1 = vpop.permute.xlu1 %2149 }
0x1a4b   :  { %v2152_v50 = vadd.f32 %v2150_v1, %v2142_v49  ;;  %v2473_v1 = vld [vmem:[#allocation4 + $0x18] sm:$0x3] }
0x1a4d   :  { %6208 = vtanh.f32 %v2152_v50 }
0x1a57   :  { %v6209_v51 = vpop.eup %6208 }
0x1a58   :  { %2155 = vrot.lane.b32.xlu0 %v6209_v51, %s6534_s24 }
0x1aca   :  { %v2156_v53 = vpop.permute.xlu0 %2155 }
0x1acb   :  { %v2158_v54 = vmul.f32 %v6207_v44, %v2156_v53 }
0x1acd   :  { %2160 = vrot.lane.b32.xlu1 %v2158_v54, %s6535_s1 }
0x1b3f   :  { %v2161_v55 = vpop.permute.xlu1 %2160 }
0x1b40   :  { %2163 = vst.msk [vmem:[#allocation3 + $0x10] sm:$0x3] %vm1338_vm6, %v2161_v55  ;;  %5421 = vmatmul.mubr.msk.f32.vlgmr.msra.gmra.mrb[38].mxu0 %vm1110_vm5, %v2161_v55 }
0x1b41   :  { %5977 = vmatpush3.bf16.msra.mxu0 %v7104_v36  ;;  %5442 = vmatprep.mubr.msk.f32.mxu0 %vm6532_vm4, %v6533_v57 }
0x1b42   :  { %5978 = vmatprep.subr.bf16.mxu0 %v6531_v0 }
0x1b45   :  { %5980 = vmatpush3.bf16.msra.mxu0 %v7114_v40 }
0x1b46   :  { %5987 = vmatprep.subr.bf16.mxu0 %v6531_v0 }
0x1c13   :  { %v2233_v13 = vpop.f32.mrb[38].mxu0 }
0x1c14   :  { %v2237_v58 = vadd.f32 %v2233_v13, %v2164_v56  ;;  %v5422_v59 = vpop.f32.mrb[39].mxu0 }
0x1c16   :  { %6210 = vtanh.f32 %v2237_v58  ;;  %v4994_v61 = vmul.f32 -1.442695, %v2237_v58 }
0x1c18   :  { %6212 = vpow2.f32 %v4994_v61 }
0x1c20   :  { %v6211_v60 = vpop.eup %6210 }
0x1c21   :  { %2247 = vrot.lane.b32.xlu0 %v6211_v60, %s6534_s24 }
0x1c22   :  { %v6213_v27 = vpop.eup %6212 }
0x1c23   :  { %v2241_v48 = vadd.f32 1.0, %v6213_v27 }
0x1c25   :  { %6214 = vrcp.f32 %v2241_v48 }
0x1c2f   :  { %v6215_v17 = vpop.eup %6214 }
0x1c30   :  { %v2245_v3 = vmul.f32 %v6215_v17, %v2152_v50 }
0x1c93   :  { %v2248_v63 = vpop.permute.xlu0 %2247 }
0x1c94   :  { %v2250_v2 = vmul.f32 %v6215_v17, %v2248_v63 }
0x1c96   :  { %2252 = vrot.lane.b32.xlu1 %v2250_v2, %s6535_s1 }
0x1d08   :  { %v2253_v4 = vpop.permute.xlu1 %2252 }
0x1d09   :  { %v2255_v52 = vadd.f32 %v2253_v4, %v2245_v3  ;;  %v2576_v4 = vld [vmem:[#allocation4 + $0x1a] sm:$0x3] }
0x1d0b   :  { %6216 = vtanh.f32 %v2255_v52 }
0x1d15   :  { %v6217_v6 = vpop.eup %6216 }
0x1d16   :  { %2258 = vrot.lane.b32.xlu0 %v6217_v6, %s6534_s24 }
0x1d88   :  { %v2259_v7 = vpop.permute.xlu0 %2258 }
0x1d89   :  { %v2261_v8 = vmul.f32 %v6215_v17, %v2259_v7 }
0x1d8b   :  { %2263 = vrot.lane.b32.xlu1 %v2261_v8, %s6535_s1 }
0x1dfd   :  { %v2264_v9 = vpop.permute.xlu1 %2263 }
0x1dfe   :  { %2266 = vst.msk [vmem:[#allocation3 + $0x12] sm:$0x3] %vm1338_vm6, %v2264_v9  ;;  %5432 = vmatmul.mubr.msk.f32.vlgmr.msra.gmra.mrb[40].mxu1 %vm1110_vm5, %v2264_v9 }
0x1dff   :  { %5983 = vmatpush3.bf16.msra.mxu1 %v7104_v36  ;;  %5453 = vmatprep.mubr.msk.f32.mxu1 %vm6532_vm4, %v6533_v57 }
0x1e00   :  { %5984 = vmatprep.subr.bf16.mxu1 %v6531_v0 }
0x1e03   :  { %5986 = vmatpush3.bf16.msra.mxu1 %v7114_v40 }
0x1e04   :  { %5993 = vmatprep.subr.bf16.mxu1 %v6531_v0 }
0x1ed1   :  { %v2336_v11 = vpop.f32.mrb[40].mxu1 }
0x1ed2   :  { %v2340_v12 = vadd.f32 %v2336_v11, %v2267_v10  ;;  %v5433_v14 = vpop.f32.mrb[41].mxu1 }
0x1ed4   :  { %6218 = vtanh.f32 %v2340_v12  ;;  %v4996_v16 = vmul.f32 -1.442695, %v2340_v12 }
0x1ed6   :  { %6220 = vpow2.f32 %v4996_v16 }
0x1ede   :  { %v6219_v15 = vpop.eup %6218 }
0x1edf   :  { %2350 = vrot.lane.b32.xlu0 %v6219_v15, %s6534_s24 }
0x1ee0   :  { %v6221_v18 = vpop.eup %6220 }
0x1ee1   :  { %v2344_v42 = vadd.f32 1.0, %v6221_v18  ;;  %v5007_v18 = vld [vmem:[%s7633_s6 + $0x20] sm:$0xff] }
0x1ee3   :  { %6222 = vrcp.f32 %v2344_v42  ;;  %v5008_v42 = vld [vmem:[%s7633_s6 + $0x28] sm:$0xff] }
0x1eed   :  { %v6223_v19 = vpop.eup %6222 }
0x1eee   :  { %v2348_v21 = vmul.f32 %v6223_v19, %v2255_v52 }
0x1f51   :  { %v2351_v20 = vpop.permute.xlu0 %2350 }
0x1f52   :  { %v2353_v28 = vmul.f32 %v6223_v19, %v2351_v20 }
0x1f54   :  { %2355 = vrot.lane.b32.xlu1 %v2353_v28, %s6535_s1 }
0x1fc6   :  { %v2356_v38 = vpop.permute.xlu1 %2355 }
0x1fc7   :  { %v2358_v22 = vadd.f32 %v2356_v38, %v2348_v21  ;;  %v5009_v38 = vld [vmem:[%s7633_s6 + $0x30] sm:$0xff] }
0x1fc9   :  { %6224 = vtanh.f32 %v2358_v22 }
0x1fd3   :  { %v6225_v46 = vpop.eup %6224 }
0x1fd4   :  { %2361 = vrot.lane.b32.xlu0 %v6225_v46, %s6534_s24 }
0x2046   :  { %v2362_v23 = vpop.permute.xlu0 %2361 }
0x2047   :  { %v2364_v5 = vmul.f32 %v6223_v19, %v2362_v23  ;;  %v6005_v19 = vpack.c.bf16 %v5008_v42, %v5007_v18 }
0x2049   :  { %2366 = vrot.lane.b32.xlu1 %v2364_v5, %s6535_s1  ;;  %v2885_v5 = vld [vmem:[#allocation3] sm:$0xff] }
0x20bb   :  { %v2367_v62 = vpop.permute.xlu1 %2366 }
0x20bc   :  { %2369 = vst.msk [vmem:[#allocation3 + $0x14] sm:$0x3] %vm1338_vm6, %v2367_v62  ;;  %5443 = vmatmul.mubr.msk.f32.vlgmr.msra.gmra.mrb[40].mxu0 %vm1110_vm5, %v2367_v62  ;;  %v2886_v62 = vld [vmem:[#allocation3 + $0x8] sm:$0xff] }
0x20bd   :  { %5989 = vmatpush3.bf16.msra.mxu0 %v7104_v36  ;;  %5464 = vmatprep.mubr.msk.f32.mxu0 %vm6532_vm4, %v6533_v57 }
0x20be   :  { %5990 = vmatprep.subr.bf16.mxu0 %v6531_v0 }
0x20c1   :  { %5992 = vmatpush3.bf16.msra.mxu0 %v7114_v40 }
0x20c2   :  { %5999 = vmatprep.subr.bf16.mxu0 %v6531_v0 }
0x218f   :  { %v2439_v25 = vpop.f32.mrb[40].mxu0 }
0x2190   :  { %v2443_v26 = vadd.f32 %v2439_v25, %v2370_v24  ;;  %v5444_v29 = vpop.f32.mrb[41].mxu0  ;;  %v2679_v25 = vld [vmem:[#allocation4 + $0x1c] sm:$0x3] }
0x2192   :  { %6226 = vtanh.f32 %v2443_v26  ;;  %v4998_v31 = vmul.f32 -1.442695, %v2443_v26 }
0x2194   :  { %6228 = vpow2.f32 %v4998_v31  ;;  %v7324_v31 = vld [vmem:[%s7635_s8 + $0x1] ss:$0 sm:$0xff] }
0x219c   :  { %v6227_v30 = vpop.eup %6226 }
0x219d   :  { %2453 = vrot.lane.b32.xlu0 %v6227_v30, %s6534_s24 }
0x219e   :  { %v6229_v32 = vpop.eup %6228 }
0x219f   :  { %v2447_v33 = vadd.f32 1.0, %v6229_v32 }
0x21a1   :  { %6230 = vrcp.f32 %v2447_v33 }
0x21ab   :  { %v6231_v34 = vpop.eup %6230 }
0x21ac   :  { %v2451_v39 = vmul.f32 %v6231_v34, %v2358_v22  ;;  %v5010_v22 = vld [vmem:[%s7633_s6 + $0x38] sm:$0xff] }
0x21ad   :  { %v6009_v46 = vpack.c.bf16 %v5010_v22, %v5009_v38 }
0x220f   :  { %v2454_v35 = vpop.permute.xlu0 %2453 }
0x2210   :  { %v2456_v37 = vmul.f32 %v6231_v34, %v2454_v35 }
0x2212   :  { %2458 = vrot.lane.b32.xlu1 %v2456_v37, %s6535_s1 }
0x2284   :  { %v2459_v41 = vpop.permute.xlu1 %2458 }
0x2285   :  { %v2461_v43 = vadd.f32 %v2459_v41, %v2451_v39 }
0x2287   :  { %6232 = vtanh.f32 %v2461_v43 }
0x2291   :  { %v6233_v44 = vpop.eup %6232 }
0x2292   :  { %2464 = vrot.lane.b32.xlu0 %v6233_v44, %s6534_s24 }
0x2304   :  { %v2465_v45 = vpop.permute.xlu0 %2464 }
0x2305   :  { %v2467_v47 = vmul.f32 %v6231_v34, %v2465_v45 }
0x2307   :  { %2469 = vrot.lane.b32.xlu1 %v2467_v47, %s6535_s1 }
0x2379   :  { %v2470_v49 = vpop.permute.xlu1 %2469 }
0x237a   :  { %2472 = vst.msk [vmem:[#allocation3 + $0x16] sm:$0x3] %vm1338_vm6, %v2470_v49  ;;  %5454 = vmatmul.mubr.msk.f32.vlgmr.msra.gmra.mrb[42].mxu1 %vm1110_vm5, %v2470_v49 }
0x237b   :  { %5995 = vmatpush3.bf16.msra.mxu1 %v7104_v36  ;;  %5475 = vmatprep.mubr.msk.f32.mxu1 %vm6532_vm4, %v6533_v57 }
0x237c   :  { %5996 = vmatprep.subr.bf16.mxu1 %v6531_v0 }
0x237f   :  { %5998 = vmatpush3.bf16.msra.mxu1 %v7114_v40 }
0x2380   :  { %6006 = vmatprep.subr.bf16.mxu1 %v6005_v19 }
0x2381   :  { %v2887_v24 = vld [vmem:[#allocation3 + $0x10] sm:$0xff] }
0x244d   :  { %v2542_v50 = vpop.f32.mrb[42].mxu1 }
0x244e   :  { %v2546_v51 = vadd.f32 %v2542_v50, %v2473_v1  ;;  %v5455_v53 = vpop.f32.mrb[43].mxu1 }
0x244f   :  { %v5017_v53 = vld [vmem:[%s7634_s7 + $0x20] sm:$0xff] }
0x2450   :  { %6234 = vtanh.f32 %v2546_v51  ;;  %v5000_v55 = vmul.f32 -1.442695, %v2546_v51 }
0x2452   :  { %6236 = vpow2.f32 %v5000_v55 }
0x245a   :  { %v6235_v54 = vpop.eup %6234 }
0x245b   :  { %2556 = vrot.lane.b32.xlu0 %v6235_v54, %s6534_s24  ;;  %v5018_v54 = vld [vmem:[%s7634_s7 + $0x28] sm:$0xff] }
0x245c   :  { %v6237_v56 = vpop.eup %6236  ;;  %v7340_v55 = vpack.c.bf16 %v5018_v54, %v5017_v53 }
0x245d   :  { %v2550_v13 = vadd.f32 1.0, %v6237_v56  ;;  %v5019_v56 = vld [vmem:[%s7634_s7 + $0x30] sm:$0xff] }
0x245f   :  { %6238 = vrcp.f32 %v2550_v13  ;;  %v5020_v13 = vld [vmem:[%s7634_s7 + $0x38] sm:$0xff]  ;;  %s4663_s7 = sld [smem:[#allocation6]] }
0x2469   :  { %v6239_v58 = vpop.eup %6238 }
0x246a   :  { %v2554_v61 = vmul.f32 %v6239_v58, %v2461_v43 }
0x24cd   :  { %v2557_v59 = vpop.permute.xlu0 %2556 }
0x24ce   :  { %v2559_v60 = vmul.f32 %v6239_v58, %v2557_v59 }
0x24d0   :  { %2561 = vrot.lane.b32.xlu1 %v2559_v60, %s6535_s1 }
0x2542   :  { %v2562_v27 = vpop.permute.xlu1 %2561 }
0x2543   :  { %v2564_v48 = vadd.f32 %v2562_v27, %v2554_v61  ;;  %v2782_v27 = vld [vmem:[#allocation4 + $0x1e] sm:$0x3] }
0x2545   :  { %6240 = vtanh.f32 %v2564_v48 }
0x254f   :  { %v6241_v17 = vpop.eup %6240 }
0x2550   :  { %2567 = vrot.lane.b32.xlu0 %v6241_v17, %s6534_s24 }
0x25c2   :  { %v2568_v63 = vpop.permute.xlu0 %2567 }
0x25c3   :  { %v2570_v2 = vmul.f32 %v6239_v58, %v2568_v63  ;;  %v7350_v58 = vpack.c.bf16 %v5020_v13, %v5019_v56 }
0x25c5   :  { %2572 = vrot.lane.b32.xlu1 %v2570_v2, %s6535_s1 }
0x2637   :  { %v2573_v3 = vpop.permute.xlu1 %2572 }
0x2638   :  { %2575 = vst.msk [vmem:[#allocation3 + $0x18] sm:$0x3] %vm1338_vm6, %v2573_v3  ;;  %5465 = vmatmul.mubr.msk.f32.vlgmr.msra.gmra.mrb[42].mxu0 %vm1110_vm5, %v2573_v3 }
0x2639   :  { %6001 = vmatpush3.bf16.msra.mxu0 %v7104_v36  ;;  %5486 = vmatprep.mubr.msk.f32.mxu0 %vm6532_vm4, %v6533_v57 }
0x263a   :  { %6002 = vmatprep.subr.bf16.mxu0 %v6531_v0 }
0x263d   :  { %6004 = vmatpush3.bf16.msra.mxu0 %v7114_v40 }
0x263e   :  { %6013 = vmatprep.subr.bf16.mxu0 %v6531_v0 }
0x270b   :  { %v2645_v52 = vpop.f32.mrb[42].mxu0 }
0x270c   :  { %v2649_v6 = vadd.f32 %v2645_v52, %v2576_v4  ;;  %v5466_v7 = vpop.f32.mrb[43].mxu0 }
0x270e   :  { %6242 = vtanh.f32 %v2649_v6  ;;  %v5002_v9 = vmul.f32 -1.442695, %v2649_v6 }
0x2710   :  { %6244 = vpow2.f32 %v5002_v9 }
0x2718   :  { %v6243_v8 = vpop.eup %6242 }
0x2719   :  { %2659 = vrot.lane.b32.xlu0 %v6243_v8, %s6534_s24 }
0x271a   :  { %v6245_v36 = vpop.eup %6244 }
0x271b   :  { %v2653_v10 = vadd.f32 1.0, %v6245_v36 }
0x271d   :  { %6246 = vrcp.f32 %v2653_v10 }
0x2727   :  { %v6247_v11 = vpop.eup %6246 }
0x2728   :  { %v2657_v40 = vmul.f32 %v6247_v11, %v2564_v48 }
0x278b   :  { %v2660_v12 = vpop.permute.xlu0 %2659 }
0x278c   :  { %v2662_v14 = vmul.f32 %v6247_v11, %v2660_v12 }
0x278e   :  { %2664 = vrot.lane.b32.xlu1 %v2662_v14, %s6535_s1 }
0x2800   :  { %v2665_v15 = vpop.permute.xlu1 %2664 }
0x2801   :  { %v2667_v16 = vadd.f32 %v2665_v15, %v2657_v40 }
0x2803   :  { %6248 = vtanh.f32 %v2667_v16 }
0x280d   :  { %v6249_v20 = vpop.eup %6248 }
0x280e   :  { %2670 = vrot.lane.b32.xlu0 %v6249_v20, %s6534_s24 }
0x2880   :  { %v2671_v28 = vpop.permute.xlu0 %2670 }
0x2881   :  { %v2673_v21 = vmul.f32 %v6247_v11, %v2671_v28 }
0x2883   :  { %2675 = vrot.lane.b32.xlu1 %v2673_v21, %s6535_s1 }
0x28f5   :  { %v2676_v23 = vpop.permute.xlu1 %2675 }
0x28f6   :  { %2678 = vst.msk [vmem:[#allocation3 + $0x1a] sm:$0x3] %vm1338_vm6, %v2676_v23  ;;  %5476 = vmatmul.mubr.msk.f32.vlgmr.msra.gmra.mrb[44].mxu1 %vm1110_vm5, %v2676_v23 }
0x28f7   :  { %6008 = vmatpush3.bf16.msra.mxu1 %v6005_v19  ;;  %5497 = vmatprep.mubr.msk.f32.mxu1 %vm1110_vm5, %v2885_v5 }
0x28f8   :  { %6010 = vmatprep.subr.bf16.mxu1 %v6009_v46 }
0x28fb   :  { %6012 = vmatpush3.bf16.msra.mxu1 %v6009_v46 }
0x28fc   :  { %6019 = vmatprep.subr.bf16.mxu1 %v6531_v0 }
0x28fe   :  { %5498 = vmatmul.mubr.msk.f32.vlgmr.msra.gmra.mrb[46].mxu1 %vm1110_vm5, %v2886_v62 }
0x28ff   :  { %5500 = vmatprep.mubr.msk.f32.mxu1 %vm1110_vm5, %v2887_v24  ;;  %6021 = vmatpush3.bf16.msra.mxu1 %v7340_v55 }
0x2900   :  { %6022 = vmatprep.subr.bf16.mxu1 %v6531_v0 }
0x2903   :  { %6024 = vmatpush3.bf16.msra.mxu1 %v7350_v58 }
0x2904   :  { %6031 = vmatprep.subr.bf16.mxu1 %v6531_v0 }
0x29c9   :  { %v2748_v26 = vpop.f32.mrb[44].mxu1 }
0x29ca   :  { %v2752_v29 = vadd.f32 %v2748_v26, %v2679_v25  ;;  %v5477_v30 = vpop.f32.mrb[45].mxu1 }
0x29cc   :  { %6250 = vtanh.f32 %v2752_v29  ;;  %v5004_v39 = vmul.f32 -1.442695, %v2752_v29 }
0x29ce   :  { %6252 = vpow2.f32 %v5004_v39 }
0x29d1   :  { %v5499_v32 = vpop.f32.mrb[46].mxu1 }
0x29d2   :  { %v2986_v33 = vadd.f32 %v5499_v32, %v7324_v31  ;;  %v2980_v34 = vpop.f32.mrb[47].mxu1 }
0x29d3   :  { %v2981_v35 = vadd.f32 %v7324_v31, %v2980_v34 }
0x29d4   :  { %3000 = vst [vmem:[#allocation4 + $0x8] sm:$0xff] %v2986_v33 }
0x29d5   :  { %2999 = vst [vmem:[#allocation4] sm:$0xff] %v2981_v35 }
0x29d6   :  { %v6251_v37 = vpop.eup %6250 }
0x29d7   :  { %2762 = vrot.lane.b32.xlu0 %v6251_v37, %s6534_s24 }
0x29d8   :  { %v6253_v41 = vpop.eup %6252 }
0x29d9   :  { %v2756_v43 = vadd.f32 1.0, %v6253_v41 }
0x29db   :  { %6254 = vrcp.f32 %v2756_v43 }
0x29dc   :  { %v3008_v2 = vld [vmem:[#allocation4] sm:$0x3]  ;;  %v3109_v37 = vld [vmem:[#allocation4 + $0x2] sm:$0x3] }
0x29e5   :  { %v6255_v44 = vpop.eup %6254 }
0x29e6   :  { %v2760_v49 = vmul.f32 %v6255_v44, %v2667_v16 }
0x2a49   :  { %v2763_v45 = vpop.permute.xlu0 %2762 }
0x2a4a   :  { %v2765_v47 = vmul.f32 %v6255_v44, %v2763_v45 }
0x2a4c   :  { %2767 = vrot.lane.b32.xlu1 %v2765_v47, %s6535_s1 }
0x2abe   :  { %v2768_v1 = vpop.permute.xlu1 %2767 }
0x2abf   :  { %v7330_v50 = vadd.f32 %v2768_v1, %v2760_v49 }
0x2ac1   :  { %6256 = vtanh.f32 %v7330_v50 }
0x2acb   :  { %v6257_v51 = vpop.eup %6256 }
0x2acc   :  { %2773 = vrot.lane.b32.xlu0 %v6257_v51, %s6534_s24 }
0x2b3e   :  { %v2774_v59 = vpop.permute.xlu0 %2773 }
0x2b3f   :  { %v2776_v60 = vmul.f32 %v6255_v44, %v2774_v59 }
0x2b41   :  { %2778 = vrot.lane.b32.xlu1 %v2776_v60, %s6535_s1 }
0x2bb3   :  { %v2779_v61 = vpop.permute.xlu1 %2778 }
0x2bb4   :  { %2781 = vst.msk [vmem:[#allocation3 + $0x1c] sm:$0x3] %vm1338_vm6, %v2779_v61  ;;  %5487 = vmatmul.mubr.msk.f32.vlgmr.msra.gmra.mrb[44].mxu0 %vm1110_vm5, %v2779_v61  ;;  %v3212_v61 = vld [vmem:[#allocation4 + $0x4] sm:$0x3] }
0x2bb5   :  { %6015 = vmatpush3.bf16.msra.mxu0 %v7340_v55  ;;  %5511 = vmatprep.mubr.msk.f32.mxu0 %vm6532_vm4, %v6533_v57 }
0x2bb6   :  { %6016 = vmatprep.subr.bf16.mxu0 %v6531_v0 }
0x2bb9   :  { %6018 = vmatpush3.bf16.msra.mxu0 %v7350_v58 }
0x2bba   :  { %6025 = vmatprep.subr.bf16.mxu0 %v6531_v0 }
0x2bbc   :  { %5512 = vmatmul.mubr.f32.vlgmr.msra.gmra.mrb[46].mxu0 %v6533_v57 }
0x2bbd   :  { %6027 = vmatpush3.bf16.msra.mxu0 %v7340_v55  ;;  %5533 = vmatprep.mubr.msk.f32.mxu0 %vm6532_vm4, %v6533_v57 }
0x2bbe   :  { %6028 = vmatprep.subr.bf16.mxu0 %v6531_v0 }
0x2bc1   :  { %6030 = vmatpush3.bf16.msra.mxu0 %v7350_v58 }
0x2bc2   :  { %6037 = vmatprep.subr.bf16.mxu0 %v6531_v0 }
0x2c87   :  { %v2851_v48 = vpop.f32.mrb[44].mxu0 }
0x2c88   :  { %v2855_v17 = vadd.f32 %v2851_v48, %v2782_v27  ;;  %v5488_v63 = vpop.f32.mrb[45].mxu0 }
0x2c8a   :  { %6258 = vtanh.f32 %v2855_v17  ;;  %v5006_v8 = vmul.f32 -1.442695, %v2855_v17 }
0x2c8f   :  { %v3075_v3 = vpop.f32.mrb[46].mxu0 }
0x2c90   :  { %v3079_v4 = vadd.f32 %v3075_v3, %v3008_v2  ;;  %v5513_v52 = vpop.f32.mrb[47].mxu0 }
0x2c92   :  { %6260 = vtanh.f32 %v3079_v4  ;;  %v5021_v9 = vmul.f32 -1.442695, %v3079_v4 }
0x2c93   :  { %6262 = vpow2.f32 %v5006_v8 }
0x2c94   :  { %v6259_v6 = vpop.eup %6258  ;;  %6264 = vpow2.f32 %v5021_v9 }
0x2c95   :  { %2865 = vrot.lane.b32.xlu0 %v6259_v6, %s6534_s24 }
0x2c9c   :  { %v6261_v7 = vpop.eup %6260 }
0x2c9d   :  { %3089 = vrot.lane.b32.xlu1 %v6261_v7, %s6534_s24  ;;  %v6263_v36 = vpop.eup %6262 }
0x2c9e   :  { %v2859_v10 = vadd.f32 1.0, %v6263_v36  ;;  %v6265_v11 = vpop.eup %6264 }
0x2c9f   :  { %v3083_v12 = vadd.f32 1.0, %v6265_v11 }
0x2ca0   :  { %6266 = vrcp.f32 %v2859_v10 }
0x2ca1   :  { %6268 = vrcp.f32 %v3083_v12 }
0x2caa   :  { %v6267_v14 = vpop.eup %6266 }
0x2cab   :  { %v6269_v16 = vpop.eup %6268  ;;  %v2863_v19 = vmul.f32 %v6267_v14, %v7330_v50 }
0x2cac   :  { %v3087_v21 = vmul.f32 0.0, %v6269_v16 }
0x2d07   :  { %v2866_v40 = vpop.permute.xlu0 %2865 }
0x2d08   :  { %v2868_v15 = vmul.f32 %v6267_v14, %v2866_v40  ;;  %v3315_v40 = vld [vmem:[#allocation4 + $0x6] sm:$0x3] }
0x2d0a   :  { %2870 = vrot.lane.b32.xlu0 %v2868_v15, %s6535_s1 }
0x2d0f   :  { %v3090_v18 = vpop.permute.xlu1 %3089 }
0x2d10   :  { %v3092_v42 = vmul.f32 %v6269_v16, %v3090_v18 }
0x2d12   :  { %3094 = vrot.lane.b32.xlu1 %v3092_v42, %s6535_s1 }
0x2d7c   :  { %v2871_v20 = vpop.permute.xlu0 %2870 }
0x2d7d   :  { %v2873_v28 = vadd.f32 %v2871_v20, %v2863_v19 }
0x2d7f   :  { %6270 = vtanh.f32 %v2873_v28 }
0x2d84   :  { %v3095_v38 = vpop.permute.xlu1 %3094 }
0x2d85   :  { %v3097_v22 = vadd.f32 %v3095_v38, %v3087_v21 }
0x2d87   :  { %6272 = vtanh.f32 %v3097_v22 }
0x2d89   :  { %v6271_v46 = vpop.eup %6270 }
0x2d8a   :  { %2876 = vrot.lane.b32.xlu0 %v6271_v46, %s6534_s24 }
0x2d91   :  { %v6273_v23 = vpop.eup %6272 }
0x2d92   :  { %3100 = vrot.lane.b32.xlu1 %v6273_v23, %s6534_s24 }
0x2dfc   :  { %v2877_v5 = vpop.permute.xlu0 %2876 }
0x2dfd   :  { %v2879_v62 = vmul.f32 %v6267_v14, %v2877_v5 }
0x2dff   :  { %2881 = vrot.lane.b32.xlu0 %v2879_v62, %s6535_s1 }
0x2e04   :  { %v3101_v24 = vpop.permute.xlu1 %3100 }
0x2e05   :  { %v3103_v25 = vmul.f32 %v6269_v16, %v3101_v24 }
0x2e07   :  { %3105 = vrot.lane.b32.xlu1 %v3103_v25, %s6535_s1 }
0x2e71   :  { %v2882_v26 = vpop.permute.xlu0 %2881 }
0x2e72   :  { %2884 = vst.msk [vmem:[#allocation3 + $0x1e] sm:$0x3] %vm1338_vm6, %v2882_v26 }
0x2e79   :  { %v3106_v29 = vpop.permute.xlu1 %3105  ;;  %v2888_v30 = vld [vmem:[#allocation3 + $0x18] sm:$0xff] }
0x2e7a   :  { %3108 = vst.msk [vmem:[#allocation3] sm:$0x3] %vm1338_vm6, %v3106_v29  ;;  %5501 = vmatmul.mubr.msk.f32.gmra.mrb[48].mxu1 %vm1110_vm5, %v2888_v30 }
0x2e7b   :  { %5522 = vmatprep.mubr.msk.f32.mxu1 %vm6532_vm4, %v6533_v57 }
0x2e7e   :  { %5523 = vmatmul.mubr.msk.f32.vlgmr.msra.gmra.mrb[50].mxu1 %vm1110_vm5, %v3106_v29  ;;  %v3418_v29 = vld [vmem:[#allocation4 + $0x8] sm:$0x3] }
0x2e7f   :  { %6033 = vmatpush3.bf16.msra.mxu1 %v7340_v55  ;;  %5544 = vmatprep.mubr.msk.f32.mxu1 %vm6532_vm4, %v6533_v57 }
0x2e80   :  { %6034 = vmatprep.subr.bf16.mxu1 %v6531_v0 }
0x2e83   :  { %6036 = vmatpush3.bf16.msra.mxu1 %v7350_v58 }
0x2e84   :  { %6043 = vmatprep.subr.bf16.mxu1 %v6531_v0 }
0x2f4d   :  { %v5502_v32 = vpop.f32.mrb[48].mxu1 }
0x2f4e   :  { %v2996_v33 = vadd.f32 %v5502_v32, %v7324_v31  ;;  %v2990_v34 = vpop.f32.mrb[49].mxu1 }
0x2f4f   :  { %v2991_v35 = vadd.f32 %v7324_v31, %v2990_v34 }
0x2f50   :  { %3002 = vst [vmem:[#allocation4 + $0x18] sm:$0xff] %v2996_v33 }
0x2f51   :  { %3001 = vst [vmem:[#allocation4 + $0x10] sm:$0xff] %v2991_v35  ;;  %v3178_v39 = vpop.f32.mrb[50].mxu1 }
0x2f52   :  { %v3182_v41 = vadd.f32 %v3178_v39, %v3109_v37  ;;  %v5524_v43 = vpop.f32.mrb[51].mxu1 }
0x2f54   :  { %6274 = vtanh.f32 %v3182_v41  ;;  %v5023_v45 = vmul.f32 -1.442695, %v3182_v41 }
0x2f56   :  { %6276 = vpow2.f32 %v5023_v45 }
0x2f5e   :  { %v6275_v44 = vpop.eup %6274 }
0x2f5f   :  { %3192 = vrot.lane.b32.xlu0 %v6275_v44, %s6534_s24 }
0x2f60   :  { %v6277_v47 = vpop.eup %6276 }
0x2f61   :  { %v3186_v49 = vadd.f32 1.0, %v6277_v47 }
0x2f63   :  { %6278 = vrcp.f32 %v3186_v49 }
0x2f6d   :  { %v6279_v1 = vpop.eup %6278 }
0x2f6e   :  { %v3190_v31 = vmul.f32 %v6279_v1, %v3097_v22 }
0x2fd1   :  { %v3193_v50 = vpop.permute.xlu0 %3192 }
0x2fd2   :  { %v3195_v51 = vmul.f32 %v6279_v1, %v3193_v50 }
0x2fd4   :  { %3197 = vrot.lane.b32.xlu1 %v3195_v51, %s6535_s1 }
0x3046   :  { %v3198_v53 = vpop.permute.xlu1 %3197 }
0x3047   :  { %v3200_v54 = vadd.f32 %v3198_v53, %v3190_v31  ;;  %v3521_v53 = vld [vmem:[#allocation4 + $0xa] sm:$0x3] }
0x3049   :  { %6280 = vtanh.f32 %v3200_v54 }
0x3053   :  { %v6281_v56 = vpop.eup %6280 }
0x3054   :  { %3203 = vrot.lane.b32.xlu0 %v6281_v56, %s6534_s24 }
0x30c6   :  { %v3204_v13 = vpop.permute.xlu0 %3203 }
0x30c7   :  { %v3206_v59 = vmul.f32 %v6279_v1, %v3204_v13 }
0x30c9   :  { %3208 = vrot.lane.b32.xlu1 %v3206_v59, %s6535_s1 }
0x313b   :  { %v3209_v60 = vpop.permute.xlu1 %3208 }
0x313c   :  { %3211 = vst.msk [vmem:[#allocation3 + $0x2] sm:$0x3] %vm1338_vm6, %v3209_v60  ;;  %5534 = vmatmul.mubr.msk.f32.vlgmr.msra.gmra.mrb[48].mxu0 %vm1110_vm5, %v3209_v60 }
0x313d   :  { %6039 = vmatpush3.bf16.msra.mxu0 %v7340_v55  ;;  %5555 = vmatprep.mubr.msk.f32.mxu0 %vm6532_vm4, %v6533_v57 }
0x313e   :  { %6040 = vmatprep.subr.bf16.mxu0 %v6531_v0 }
0x3141   :  { %6042 = vmatpush3.bf16.msra.mxu0 %v7350_v58 }
0x3142   :  { %6049 = vmatprep.subr.bf16.mxu0 %v6531_v0 }
0x320f   :  { %v3281_v27 = vpop.f32.mrb[48].mxu0 }
0x3210   :  { %v3285_v48 = vadd.f32 %v3281_v27, %v3212_v61  ;;  %v5535_v17 = vpop.f32.mrb[49].mxu0 }
0x3212   :  { %6282 = vtanh.f32 %v3285_v48  ;;  %v5025_v2 = vmul.f32 -1.442695, %v3285_v48 }
0x3214   :  { %6284 = vpow2.f32 %v5025_v2 }
0x321c   :  { %v6283_v63 = vpop.eup %6282 }
0x321d   :  { %3295 = vrot.lane.b32.xlu0 %v6283_v63, %s6534_s24 }
0x321e   :  { %v6285_v3 = vpop.eup %6284 }
0x321f   :  { %v3289_v4 = vadd.f32 1.0, %v6285_v3 }
0x3221   :  { %6286 = vrcp.f32 %v3289_v4 }
0x322b   :  { %v6287_v52 = vpop.eup %6286 }
0x322c   :  { %v3293_v8 = vmul.f32 %v6287_v52, %v3200_v54 }
0x328f   :  { %v3296_v6 = vpop.permute.xlu0 %3295 }
0x3290   :  { %v3298_v7 = vmul.f32 %v6287_v52, %v3296_v6 }
0x3292   :  { %3300 = vrot.lane.b32.xlu1 %v3298_v7, %s6535_s1 }
0x3304   :  { %v3301_v9 = vpop.permute.xlu1 %3300 }
0x3305   :  { %v3303_v36 = vadd.f32 %v3301_v9, %v3293_v8  ;;  %v3624_v9 = vld [vmem:[#allocation4 + $0xc] sm:$0x3] }
0x3307   :  { %6288 = vtanh.f32 %v3303_v36 }
0x3311   :  { %v6289_v10 = vpop.eup %6288 }
0x3312   :  { %3306 = vrot.lane.b32.xlu0 %v6289_v10, %s6534_s24 }
0x3384   :  { %v3307_v11 = vpop.permute.xlu0 %3306 }
0x3385   :  { %v3309_v12 = vmul.f32 %v6287_v52, %v3307_v11 }
0x3387   :  { %3311 = vrot.lane.b32.xlu1 %v3309_v12, %s6535_s1 }
0x33f9   :  { %v3312_v14 = vpop.permute.xlu1 %3311 }
0x33fa   :  { %3314 = vst.msk [vmem:[#allocation3 + $0x4] sm:$0x3] %vm1338_vm6, %v3312_v14  ;;  %5545 = vmatmul.mubr.msk.f32.vlgmr.msra.gmra.mrb[52].mxu1 %vm1110_vm5, %v3312_v14 }
0x33fb   :  { %6045 = vmatpush3.bf16.msra.mxu1 %v7340_v55  ;;  %5566 = vmatprep.mubr.msk.f32.mxu1 %vm6532_vm4, %v6533_v57 }
0x33fc   :  { %6046 = vmatprep.subr.bf16.mxu1 %v6531_v0 }
0x33ff   :  { %6048 = vmatpush3.bf16.msra.mxu1 %v7350_v58 }
0x3400   :  { %6055 = vmatprep.subr.bf16.mxu1 %v6531_v0 }
0x34cd   :  { %v3384_v15 = vpop.f32.mrb[52].mxu1 }
0x34ce   :  { %v3388_v16 = vadd.f32 %v3384_v15, %v3315_v40  ;;  %v5546_v18 = vpop.f32.mrb[53].mxu1 }
0x34d0   :  { %6290 = vtanh.f32 %v3388_v16  ;;  %v5027_v19 = vmul.f32 -1.442695, %v3388_v16 }
0x34d2   :  { %6292 = vpow2.f32 %v5027_v19 }
0x34da   :  { %v6291_v42 = vpop.eup %6290 }
0x34db   :  { %3398 = vrot.lane.b32.xlu0 %v6291_v42, %s6534_s24 }
0x34dc   :  { %v6293_v20 = vpop.eup %6292 }
0x34dd   :  { %v3392_v28 = vadd.f32 1.0, %v6293_v20 }
0x34df   :  { %6294 = vrcp.f32 %v3392_v28 }
0x34e9   :  { %v6295_v21 = vpop.eup %6294 }
0x34ea   :  { %v3396_v46 = vmul.f32 %v6295_v21, %v3303_v36 }
0x354d   :  { %v3399_v38 = vpop.permute.xlu0 %3398 }
0x354e   :  { %v3401_v22 = vmul.f32 %v6295_v21, %v3399_v38 }
0x3550   :  { %3403 = vrot.lane.b32.xlu1 %v3401_v22, %s6535_s1 }
0x35c2   :  { %v3404_v23 = vpop.permute.xlu1 %3403 }
0x35c3   :  { %v3406_v5 = vadd.f32 %v3404_v23, %v3396_v46  ;;  %v3727_v23 = vld [vmem:[#allocation4 + $0xe] sm:$0x3] }
0x35c5   :  { %6296 = vtanh.f32 %v3406_v5 }
0x35cf   :  { %v6297_v62 = vpop.eup %6296 }
0x35d0   :  { %3409 = vrot.lane.b32.xlu0 %v6297_v62, %s6534_s24 }
0x3642   :  { %v3410_v24 = vpop.permute.xlu0 %3409 }
0x3643   :  { %v3412_v25 = vmul.f32 %v6295_v21, %v3410_v24 }
0x3645   :  { %3414 = vrot.lane.b32.xlu1 %v3412_v25, %s6535_s1 }
0x36b7   :  { %v3415_v26 = vpop.permute.xlu1 %3414 }
0x36b8   :  { %3417 = vst.msk [vmem:[#allocation3 + $0x6] sm:$0x3] %vm1338_vm6, %v3415_v26  ;;  %5556 = vmatmul.mubr.msk.f32.vlgmr.msra.gmra.mrb[50].mxu0 %vm1110_vm5, %v3415_v26 }
0x36b9   :  { %6051 = vmatpush3.bf16.msra.mxu0 %v7340_v55  ;;  %5577 = vmatprep.mubr.msk.f32.mxu0 %vm6532_vm4, %v6533_v57 }
0x36ba   :  { %6052 = vmatprep.subr.bf16.mxu0 %v6531_v0 }
0x36bd   :  { %6054 = vmatpush3.bf16.msra.mxu0 %v7350_v58 }
0x36be   :  { %6061 = vmatprep.subr.bf16.mxu0 %v6531_v0 }
0x378b   :  { %v3487_v30 = vpop.f32.mrb[50].mxu0 }
0x378c   :  { %v3491_v32 = vadd.f32 %v3487_v30, %v3418_v29  ;;  %v5557_v33 = vpop.f32.mrb[51].mxu0 }
0x378e   :  { %6298 = vtanh.f32 %v3491_v32  ;;  %v5029_v35 = vmul.f32 -1.442695, %v3491_v32 }
0x3790   :  { %6300 = vpow2.f32 %v5029_v35 }
0x3798   :  { %v6299_v34 = vpop.eup %6298 }
0x3799   :  { %3501 = vrot.lane.b32.xlu0 %v6299_v34, %s6534_s24 }
0x379a   :  { %v6301_v37 = vpop.eup %6300 }
0x379b   :  { %v3495_v39 = vadd.f32 1.0, %v6301_v37 }
0x379d   :  { %6302 = vrcp.f32 %v3495_v39 }
0x37a7   :  { %v6303_v41 = vpop.eup %6302 }
0x37a8   :  { %v3499_v45 = vmul.f32 %v6303_v41, %v3406_v5 }
0x380b   :  { %v3502_v43 = vpop.permute.xlu0 %3501 }
0x380c   :  { %v3504_v44 = vmul.f32 %v6303_v41, %v3502_v43 }
0x380e   :  { %3506 = vrot.lane.b32.xlu1 %v3504_v44, %s6535_s1 }
0x3880   :  { %v3507_v47 = vpop.permute.xlu1 %3506 }
0x3881   :  { %v3509_v49 = vadd.f32 %v3507_v47, %v3499_v45  ;;  %v3830_v47 = vld [vmem:[#allocation4 + $0x10] sm:$0x3] }
0x3883   :  { %6304 = vtanh.f32 %v3509_v49 }
0x388d   :  { %v6305_v1 = vpop.eup %6304 }
0x388e   :  { %3512 = vrot.lane.b32.xlu0 %v6305_v1, %s6534_s24 }
0x3900   :  { %v3513_v50 = vpop.permute.xlu0 %3512 }
0x3901   :  { %v3515_v51 = vmul.f32 %v6303_v41, %v3513_v50 }
0x3903   :  { %3517 = vrot.lane.b32.xlu1 %v3515_v51, %s6535_s1 }
0x3975   :  { %v3518_v31 = vpop.permute.xlu1 %3517 }
0x3976   :  { %3520 = vst.msk [vmem:[#allocation3 + $0x8] sm:$0x3] %vm1338_vm6, %v3518_v31  ;;  %5567 = vmatmul.mubr.msk.f32.vlgmr.msra.gmra.mrb[54].mxu1 %vm1110_vm5, %v3518_v31 }
0x3977   :  { %6057 = vmatpush3.bf16.msra.mxu1 %v7340_v55  ;;  %5588 = vmatprep.mubr.msk.f32.mxu1 %vm6532_vm4, %v6533_v57 }
0x3978   :  { %6058 = vmatprep.subr.bf16.mxu1 %v6531_v0 }
0x397b   :  { %6060 = vmatpush3.bf16.msra.mxu1 %v7350_v58 }
0x397c   :  { %6067 = vmatprep.subr.bf16.mxu1 %v6531_v0 }
0x3a49   :  { %v3590_v54 = vpop.f32.mrb[54].mxu1 }
0x3a4a   :  { %v3594_v56 = vadd.f32 %v3590_v54, %v3521_v53  ;;  %v5568_v13 = vpop.f32.mrb[55].mxu1 }
0x3a4c   :  { %6306 = vtanh.f32 %v3594_v56  ;;  %v5031_v60 = vmul.f32 -1.442695, %v3594_v56 }
0x3a4e   :  { %6308 = vpow2.f32 %v5031_v60 }
0x3a56   :  { %v6307_v59 = vpop.eup %6306 }
0x3a57   :  { %3604 = vrot.lane.b32.xlu0 %v6307_v59, %s6534_s24 }
0x3a58   :  { %v6309_v61 = vpop.eup %6308 }
0x3a59   :  { %v3598_v27 = vadd.f32 1.0, %v6309_v61 }
0x3a5b   :  { %6310 = vrcp.f32 %v3598_v27 }
0x3a65   :  { %v6311_v48 = vpop.eup %6310 }
0x3a66   :  { %v3602_v2 = vmul.f32 %v6311_v48, %v3509_v49 }
0x3ac9   :  { %v3605_v17 = vpop.permute.xlu0 %3604 }
0x3aca   :  { %v3607_v63 = vmul.f32 %v6311_v48, %v3605_v17 }
0x3acc   :  { %3609 = vrot.lane.b32.xlu1 %v3607_v63, %s6535_s1 }
0x3b3e   :  { %v3610_v3 = vpop.permute.xlu1 %3609 }
0x3b3f   :  { %v3612_v4 = vadd.f32 %v3610_v3, %v3602_v2  ;;  %v3933_v3 = vld [vmem:[#allocation4 + $0x12] sm:$0x3] }
0x3b41   :  { %6312 = vtanh.f32 %v3612_v4 }
0x3b4b   :  { %v6313_v52 = vpop.eup %6312 }
0x3b4c   :  { %3615 = vrot.lane.b32.xlu0 %v6313_v52, %s6534_s24 }
0x3bbe   :  { %v3616_v6 = vpop.permute.xlu0 %3615 }
0x3bbf   :  { %v3618_v7 = vmul.f32 %v6311_v48, %v3616_v6 }
0x3bc1   :  { %3620 = vrot.lane.b32.xlu1 %v3618_v7, %s6535_s1 }
0x3c33   :  { %v3621_v8 = vpop.permute.xlu1 %3620 }
0x3c34   :  { %3623 = vst.msk [vmem:[#allocation3 + $0xa] sm:$0x3] %vm1338_vm6, %v3621_v8  ;;  %5578 = vmatmul.mubr.msk.f32.vlgmr.msra.gmra.mrb[52].mxu0 %vm1110_vm5, %v3621_v8 }
0x3c35   :  { %6063 = vmatpush3.bf16.msra.mxu0 %v7340_v55  ;;  %5599 = vmatprep.mubr.msk.f32.mxu0 %vm6532_vm4, %v6533_v57 }
0x3c36   :  { %6064 = vmatprep.subr.bf16.mxu0 %v6531_v0 }
0x3c39   :  { %6066 = vmatpush3.bf16.msra.mxu0 %v7350_v58 }
0x3c3a   :  { %6073 = vmatprep.subr.bf16.mxu0 %v6531_v0 }
0x3d07   :  { %v3693_v36 = vpop.f32.mrb[52].mxu0 }
0x3d08   :  { %v3697_v10 = vadd.f32 %v3693_v36, %v3624_v9  ;;  %v5579_v11 = vpop.f32.mrb[53].mxu0 }
0x3d0a   :  { %6314 = vtanh.f32 %v3697_v10  ;;  %v5033_v14 = vmul.f32 -1.442695, %v3697_v10 }
0x3d0c   :  { %6316 = vpow2.f32 %v5033_v14 }
0x3d14   :  { %v6315_v12 = vpop.eup %6314 }
0x3d15   :  { %3707 = vrot.lane.b32.xlu0 %v6315_v12, %s6534_s24 }
0x3d16   :  { %v6317_v40 = vpop.eup %6316 }
0x3d17   :  { %v3701_v15 = vadd.f32 1.0, %v6317_v40 }
0x3d19   :  { %6318 = vrcp.f32 %v3701_v15 }
0x3d23   :  { %v6319_v16 = vpop.eup %6318 }
0x3d24   :  { %v3705_v19 = vmul.f32 %v6319_v16, %v3612_v4 }
0x3d87   :  { %v3708_v18 = vpop.permute.xlu0 %3707 }
0x3d88   :  { %v3710_v42 = vmul.f32 %v6319_v16, %v3708_v18 }
0x3d8a   :  { %3712 = vrot.lane.b32.xlu1 %v3710_v42, %s6535_s1 }
0x3dfc   :  { %v3713_v20 = vpop.permute.xlu1 %3712 }
0x3dfd   :  { %v3715_v28 = vadd.f32 %v3713_v20, %v3705_v19  ;;  %v4036_v20 = vld [vmem:[#allocation4 + $0x14] sm:$0x3] }
0x3dff   :  { %6320 = vtanh.f32 %v3715_v28 }
0x3e09   :  { %v6321_v21 = vpop.eup %6320 }
0x3e0a   :  { %3718 = vrot.lane.b32.xlu0 %v6321_v21, %s6534_s24 }
0x3e7c   :  { %v3719_v38 = vpop.permute.xlu0 %3718 }
0x3e7d   :  { %v3721_v22 = vmul.f32 %v6319_v16, %v3719_v38 }
0x3e7f   :  { %3723 = vrot.lane.b32.xlu1 %v3721_v22, %s6535_s1 }
0x3ef1   :  { %v3724_v46 = vpop.permute.xlu1 %3723 }
0x3ef2   :  { %3726 = vst.msk [vmem:[#allocation3 + $0xc] sm:$0x3] %vm1338_vm6, %v3724_v46  ;;  %5589 = vmatmul.mubr.msk.f32.vlgmr.msra.gmra.mrb[56].mxu1 %vm1110_vm5, %v3724_v46 }
0x3ef3   :  { %6069 = vmatpush3.bf16.msra.mxu1 %v7340_v55  ;;  %5610 = vmatprep.mubr.msk.f32.mxu1 %vm6532_vm4, %v6533_v57 }
0x3ef4   :  { %6070 = vmatprep.subr.bf16.mxu1 %v6531_v0 }
0x3ef7   :  { %6072 = vmatpush3.bf16.msra.mxu1 %v7350_v58 }
0x3ef8   :  { %6079 = vmatprep.subr.bf16.mxu1 %v6531_v0 }
0x3fc5   :  { %v3796_v5 = vpop.f32.mrb[56].mxu1 }
0x3fc6   :  { %v3800_v62 = vadd.f32 %v3796_v5, %v3727_v23  ;;  %v5590_v24 = vpop.f32.mrb[57].mxu1 }
0x3fc8   :  { %6322 = vtanh.f32 %v3800_v62  ;;  %v5035_v26 = vmul.f32 -1.442695, %v3800_v62 }
0x3fca   :  { %6324 = vpow2.f32 %v5035_v26 }
0x3fd2   :  { %v6323_v25 = vpop.eup %6322 }
0x3fd3   :  { %3810 = vrot.lane.b32.xlu0 %v6323_v25, %s6534_s24 }
0x3fd4   :  { %v6325_v29 = vpop.eup %6324 }
0x3fd5   :  { %v3804_v30 = vadd.f32 1.0, %v6325_v29 }
0x3fd7   :  { %6326 = vrcp.f32 %v3804_v30 }
0x3fe1   :  { %v6327_v32 = vpop.eup %6326 }
0x3fe2   :  { %v3808_v35 = vmul.f32 %v6327_v32, %v3715_v28 }
0x4045   :  { %v3811_v33 = vpop.permute.xlu0 %3810 }
0x4046   :  { %v3813_v34 = vmul.f32 %v6327_v32, %v3811_v33 }
0x4048   :  { %3815 = vrot.lane.b32.xlu1 %v3813_v34, %s6535_s1 }
0x40ba   :  { %v3816_v37 = vpop.permute.xlu1 %3815 }
0x40bb   :  { %v3818_v39 = vadd.f32 %v3816_v37, %v3808_v35  ;;  %v4139_v37 = vld [vmem:[#allocation4 + $0x16] sm:$0x3] }
0x40bd   :  { %6328 = vtanh.f32 %v3818_v39 }
0x40c7   :  { %v6329_v41 = vpop.eup %6328 }
0x40c8   :  { %3821 = vrot.lane.b32.xlu0 %v6329_v41, %s6534_s24 }
0x413a   :  { %v3822_v43 = vpop.permute.xlu0 %3821 }
0x413b   :  { %v3824_v44 = vmul.f32 %v6327_v32, %v3822_v43 }
0x413d   :  { %3826 = vrot.lane.b32.xlu1 %v3824_v44, %s6535_s1 }
0x41af   :  { %v3827_v45 = vpop.permute.xlu1 %3826 }
0x41b0   :  { %3829 = vst.msk [vmem:[#allocation3 + $0xe] sm:$0x3] %vm1338_vm6, %v3827_v45  ;;  %5600 = vmatmul.mubr.msk.f32.vlgmr.msra.gmra.mrb[54].mxu0 %vm1110_vm5, %v3827_v45 }
0x41b1   :  { %6075 = vmatpush3.bf16.msra.mxu0 %v7340_v55  ;;  %5621 = vmatprep.mubr.msk.f32.mxu0 %vm6532_vm4, %v6533_v57 }
0x41b2   :  { %6076 = vmatprep.subr.bf16.mxu0 %v6531_v0 }
0x41b5   :  { %6078 = vmatpush3.bf16.msra.mxu0 %v7350_v58 }
0x41b6   :  { %6085 = vmatprep.subr.bf16.mxu0 %v6531_v0 }
0x4283   :  { %v3899_v49 = vpop.f32.mrb[54].mxu0 }
0x4284   :  { %v3903_v1 = vadd.f32 %v3899_v49, %v3830_v47  ;;  %v5601_v50 = vpop.f32.mrb[55].mxu0 }
0x4286   :  { %6330 = vtanh.f32 %v3903_v1  ;;  %v5037_v31 = vmul.f32 -1.442695, %v3903_v1 }
0x4288   :  { %6332 = vpow2.f32 %v5037_v31 }
0x4290   :  { %v6331_v51 = vpop.eup %6330 }
0x4291   :  { %3913 = vrot.lane.b32.xlu0 %v6331_v51, %s6534_s24 }
0x4292   :  { %v6333_v53 = vpop.eup %6332 }
0x4293   :  { %v3907_v54 = vadd.f32 1.0, %v6333_v53 }
0x4295   :  { %6334 = vrcp.f32 %v3907_v54 }
0x429f   :  { %v6335_v56 = vpop.eup %6334 }
0x42a0   :  { %v3911_v60 = vmul.f32 %v6335_v56, %v3818_v39 }
0x4303   :  { %v3914_v13 = vpop.permute.xlu0 %3913 }
0x4304   :  { %v3916_v59 = vmul.f32 %v6335_v56, %v3914_v13 }
0x4306   :  { %3918 = vrot.lane.b32.xlu1 %v3916_v59, %s6535_s1 }
0x4378   :  { %v3919_v61 = vpop.permute.xlu1 %3918 }
0x4379   :  { %v3921_v27 = vadd.f32 %v3919_v61, %v3911_v60  ;;  %v4242_v61 = vld [vmem:[#allocation4 + $0x18] sm:$0x3] }
0x437b   :  { %6336 = vtanh.f32 %v3921_v27 }
0x4385   :  { %v6337_v48 = vpop.eup %6336 }
0x4386   :  { %3924 = vrot.lane.b32.xlu0 %v6337_v48, %s6534_s24 }
0x43f8   :  { %v3925_v17 = vpop.permute.xlu0 %3924 }
0x43f9   :  { %v3927_v63 = vmul.f32 %v6335_v56, %v3925_v17 }
0x43fb   :  { %3929 = vrot.lane.b32.xlu1 %v3927_v63, %s6535_s1 }
0x446d   :  { %v3930_v2 = vpop.permute.xlu1 %3929 }
0x446e   :  { %3932 = vst.msk [vmem:[#allocation3 + $0x10] sm:$0x3] %vm1338_vm6, %v3930_v2  ;;  %5611 = vmatmul.mubr.msk.f32.vlgmr.msra.gmra.mrb[58].mxu1 %vm1110_vm5, %v3930_v2 }
0x446f   :  { %6081 = vmatpush3.bf16.msra.mxu1 %v7340_v55  ;;  %5632 = vmatprep.mubr.msk.f32.mxu1 %vm6532_vm4, %v6533_v57 }
0x4470   :  { %6082 = vmatprep.subr.bf16.mxu1 %v6531_v0 }
0x4473   :  { %6084 = vmatpush3.bf16.msra.mxu1 %v7350_v58 }
0x4474   :  { %6091 = vmatprep.subr.bf16.mxu1 %v6531_v0 }
0x4541   :  { %v4002_v4 = vpop.f32.mrb[58].mxu1 }
0x4542   :  { %v4006_v52 = vadd.f32 %v4002_v4, %v3933_v3  ;;  %v5612_v6 = vpop.f32.mrb[59].mxu1 }
0x4544   :  { %6338 = vtanh.f32 %v4006_v52  ;;  %v5039_v8 = vmul.f32 -1.442695, %v4006_v52 }
0x4546   :  { %6340 = vpow2.f32 %v5039_v8 }
0x454e   :  { %v6339_v7 = vpop.eup %6338 }
0x454f   :  { %4016 = vrot.lane.b32.xlu0 %v6339_v7, %s6534_s24 }
0x4550   :  { %v6341_v9 = vpop.eup %6340 }
0x4551   :  { %v4010_v36 = vadd.f32 1.0, %v6341_v9 }
0x4553   :  { %6342 = vrcp.f32 %v4010_v36 }
0x455d   :  { %v6343_v10 = vpop.eup %6342 }
0x455e   :  { %v4014_v14 = vmul.f32 %v6343_v10, %v3921_v27 }
0x45c1   :  { %v4017_v11 = vpop.permute.xlu0 %4016 }
0x45c2   :  { %v4019_v12 = vmul.f32 %v6343_v10, %v4017_v11 }
0x45c4   :  { %4021 = vrot.lane.b32.xlu1 %v4019_v12, %s6535_s1 }
0x4636   :  { %v4022_v40 = vpop.permute.xlu1 %4021 }
0x4637   :  { %v4024_v15 = vadd.f32 %v4022_v40, %v4014_v14  ;;  %v4345_v40 = vld [vmem:[#allocation4 + $0x1a] sm:$0x3] }
0x4639   :  { %6344 = vtanh.f32 %v4024_v15 }
0x4643   :  { %v6345_v16 = vpop.eup %6344 }
0x4644   :  { %4027 = vrot.lane.b32.xlu0 %v6345_v16, %s6534_s24 }
0x46b6   :  { %v4028_v18 = vpop.permute.xlu0 %4027 }
0x46b7   :  { %v4030_v42 = vmul.f32 %v6343_v10, %v4028_v18 }
0x46b9   :  { %4032 = vrot.lane.b32.xlu1 %v4030_v42, %s6535_s1 }
0x472b   :  { %v4033_v19 = vpop.permute.xlu1 %4032 }
0x472c   :  { %4035 = vst.msk [vmem:[#allocation3 + $0x12] sm:$0x3] %vm1338_vm6, %v4033_v19  ;;  %5622 = vmatmul.mubr.msk.f32.vlgmr.msra.gmra.mrb[56].mxu0 %vm1110_vm5, %v4033_v19 }
0x472d   :  { %6087 = vmatpush3.bf16.msra.mxu0 %v7340_v55  ;;  %5643 = vmatprep.mubr.msk.f32.mxu0 %vm6532_vm4, %v6533_v57 }
0x472e   :  { %6088 = vmatprep.subr.bf16.mxu0 %v6531_v0 }
0x4731   :  { %6090 = vmatpush3.bf16.msra.mxu0 %v7350_v58 }
0x4732   :  { %6097 = vmatprep.subr.bf16.mxu0 %v6531_v0 }
0x47ff   :  { %v4105_v28 = vpop.f32.mrb[56].mxu0 }
0x4800   :  { %v4109_v21 = vadd.f32 %v4105_v28, %v4036_v20  ;;  %v5623_v38 = vpop.f32.mrb[57].mxu0 }
0x4802   :  { %6346 = vtanh.f32 %v4109_v21  ;;  %v5041_v46 = vmul.f32 -1.442695, %v4109_v21 }
0x4804   :  { %6348 = vpow2.f32 %v5041_v46  ;;  %v4701_v46 = vld [vmem:[#allocation12 + $0x8] sm:$0xff] }
0x480c   :  { %v6347_v22 = vpop.eup %6346 }
0x480d   :  { %4119 = vrot.lane.b32.xlu0 %v6347_v22, %s6534_s24  ;;  %v4700_v22 = vld [vmem:[#allocation12] sm:$0xff] }
0x480e   :  { %v6349_v23 = vpop.eup %6348 }
0x480f   :  { %v4113_v5 = vadd.f32 1.0, %v6349_v23  ;;  %v6109_v23 = vpack.c.bf16 %v4701_v46, %v4700_v22  ;;  %v4551_v22 = vld [vmem:[#allocation4 + $0x1e] sm:$0x3] }
0x4811   :  { %6350 = vrcp.f32 %v4113_v5 }
0x481b   :  { %v6351_v62 = vpop.eup %6350 }
0x481c   :  { %v4117_v26 = vmul.f32 %v6351_v62, %v4024_v15 }
0x487f   :  { %v4120_v24 = vpop.permute.xlu0 %4119 }
0x4880   :  { %v4122_v25 = vmul.f32 %v6351_v62, %v4120_v24 }
0x4882   :  { %4124 = vrot.lane.b32.xlu1 %v4122_v25, %s6535_s1  ;;  %v4655_v25 = vld [vmem:[%s7637_s10] sm:$0xff] }
0x4883   :  { %vm4659_vm7 = vcmp.eq.s32.totalorder %v4655_v25, 0  ;;  %vm4669_vm8 = vcmp.eq.s32.totalorder %v4655_v25, 1 }
0x48f4   :  { %v4125_v29 = vpop.permute.xlu1 %4124 }
0x48f5   :  { %v4127_v30 = vadd.f32 %v4125_v29, %v4117_v26  ;;  %v7545_v26 = vstv %s4663_s7  ;;  %v7547_v29 = vstv %s5052_s17 }
0x48f7   :  { %6352 = vtanh.f32 %v4127_v30 }
0x4901   :  { %v6353_v32 = vpop.eup %6352 }
0x4902   :  { %4130 = vrot.lane.b32.xlu0 %v6353_v32, %s6534_s24  ;;  %v4676_v32 = vsel %vm4669_vm8, %v7547_v29, 0 }
0x4974   :  { %v4131_v33 = vpop.permute.xlu0 %4130 }
0x4975   :  { %v4133_v34 = vmul.f32 %v6351_v62, %v4131_v33  ;;  %v4656_v33 = vld [vmem:[%s7637_s10 + $0x8] sm:$0xff] }
0x4976   :  { %vm4660_vm9 = vcmp.eq.s32.totalorder %v4656_v33, 0  ;;  %vm4670_vm10 = vcmp.eq.s32.totalorder %v4656_v33, 1 }
0x4977   :  { %4135 = vrot.lane.b32.xlu1 %v4133_v34, %s6535_s1  ;;  %v4657_v34 = vld [vmem:[%s7637_s10 + $0x10] sm:$0xff] }
0x4978   :  { %vm4661_vm11 = vcmp.eq.s32.totalorder %v4657_v34, 0  ;;  %vm4671_vm12 = vcmp.eq.s32.totalorder %v4657_v34, 1 }
0x49e9   :  { %v4136_v35 = vpop.permute.xlu1 %4135 }
0x49ea   :  { %4138 = vst.msk [vmem:[#allocation3 + $0x14] sm:$0x3] %vm1338_vm6, %v4136_v35  ;;  %5633 = vmatmul.mubr.msk.f32.vlgmr.msra.gmra.mrb[60].mxu1 %vm1110_vm5, %v4136_v35 }
0x49eb   :  { %6093 = vmatpush3.bf16.msra.mxu1 %v7340_v55  ;;  %5654 = vmatprep.mubr.msk.f32.mxu1 %vm6532_vm4, %v6533_v57 }
0x49ec   :  { %6094 = vmatprep.subr.bf16.mxu1 %v6531_v0 }
0x49ef   :  { %6096 = vmatpush3.bf16.msra.mxu1 %v7350_v58 }
0x49f0   :  { %6103 = vmatprep.subr.bf16.mxu1 %v6531_v0 }
0x4abd   :  { %v4208_v39 = vpop.f32.mrb[60].mxu1 }
0x4abe   :  { %v4212_v41 = vadd.f32 %v4208_v39, %v4139_v37  ;;  %v5634_v43 = vpop.f32.mrb[61].mxu1  ;;  %v4684_v37 = vld [vmem:[%s7636_s9] sm:$0xff]  ;;  %v4702_v39 = vld [vmem:[#allocation12 + $0x10] sm:$0xff] }
0x4abf   :  { %v4692_v43 = vld [vmem:[#allocation3] sm:$0xff] }
0x4ac0   :  { %6354 = vtanh.f32 %v4212_v41  ;;  %v5043_v45 = vmul.f32 -1.442695, %v4212_v41  ;;  %v4703_v41 = vld [vmem:[#allocation12 + $0x18] sm:$0xff] }
0x4ac2   :  { %6356 = vpow2.f32 %v5043_v45  ;;  %v4677_v45 = vsel %vm4670_vm10, %v7547_v29, 0 }
0x4aca   :  { %v6355_v44 = vpop.eup %6354 }
0x4acb   :  { %4222 = vrot.lane.b32.xlu0 %v6355_v44, %s6534_s24  ;;  %v4666_v44 = vsel %vm4660_vm9, %v7545_v26, 0 }
0x4acc   :  { %v6357_v47 = vpop.eup %6356 }
0x4acd   :  { %v4216_v49 = vadd.f32 1.0, %v6357_v47  ;;  %v6113_v47 = vpack.c.bf16 %v4703_v41, %v4702_v39 }
0x4acf   :  { %6358 = vrcp.f32 %v4216_v49  ;;  %v4667_v49 = vsel %vm4661_vm11, %v7545_v26, 0 }
0x4ad9   :  { %v6359_v1 = vpop.eup %6358 }
0x4ada   :  { %v4220_v31 = vmul.f32 %v6359_v1, %v4127_v30  ;;  %v4665_v30 = vsel %vm4659_vm7, %v7545_v26, 0 }
0x4adb   :  { %v4680_v35 = vadd.s32 %v4676_v32, %v4665_v30 }
0x4add   :  { %vm4688_vm13 = vcmp.lt.s32.totalorder %v4684_v37, %v4680_v35 }
0x4b3d   :  { %v4223_v50 = vpop.permute.xlu0 %4222 }
0x4b3e   :  { %v4225_v51 = vmul.f32 %v6359_v1, %v4223_v50 }
0x4b40   :  { %4227 = vrot.lane.b32.xlu1 %v4225_v51, %s6535_s1  ;;  %v4696_v51 = vsel %vm4688_vm13, %v4692_v43, 0.0 }
0x4bb2   :  { %v4228_v53 = vpop.permute.xlu1 %4227 }
0x4bb3   :  { %v4230_v54 = vadd.f32 %v4228_v53, %v4220_v31  ;;  %v4681_v31 = vadd.s32 %v4677_v45, %v4666_v44  ;;  %v4685_v53 = vld [vmem:[%s7636_s9 + $0x8] sm:$0xff] }
0x4bb5   :  { %6360 = vtanh.f32 %v4230_v54  ;;  %vm4689_vm14 = vcmp.lt.s32.totalorder %v4685_v53, %v4681_v31 }
0x4bbf   :  { %v6361_v56 = vpop.eup %6360 }
0x4bc0   :  { %4233 = vrot.lane.b32.xlu0 %v6361_v56, %s6534_s24  ;;  %v4686_v56 = vld [vmem:[%s7636_s9 + $0x10] sm:$0xff] }
0x4c32   :  { %v4234_v13 = vpop.permute.xlu0 %4233 }
0x4c33   :  { %v4236_v59 = vmul.f32 %v6359_v1, %v4234_v13  ;;  %v4678_v1 = vsel %vm4671_vm12, %v7547_v29, 0  ;;  %v4693_v13 = vld [vmem:[#allocation3 + $0x8] sm:$0xff] }
0x4c35   :  { %4238 = vrot.lane.b32.xlu1 %v4236_v59, %s6535_s1 }
0x4ca7   :  { %v4239_v60 = vpop.permute.xlu1 %4238 }
0x4ca8   :  { %4241 = vst.msk [vmem:[#allocation3 + $0x16] sm:$0x3] %vm1338_vm6, %v4239_v60  ;;  %5644 = vmatmul.mubr.msk.f32.vlgmr.msra.gmra.mrb[58].mxu0 %vm1110_vm5, %v4239_v60  ;;  %v4697_v60 = vsel %vm4689_vm14, %v4693_v13, 0.0  ;;  %v4687_v13 = vld [vmem:[%s7636_s9 + $0x18] sm:$0xff] }
0x4ca9   :  { %6099 = vmatpush3.bf16.msra.mxu0 %v7340_v55  ;;  %5665 = vmatprep.mubr.msk.f32.mxu0 %vm6532_vm4, %v6533_v57 }
0x4caa   :  { %6100 = vmatprep.subr.bf16.mxu0 %v6531_v0 }
0x4cad   :  { %6102 = vmatpush3.bf16.msra.mxu0 %v7350_v58 }
0x4cae   :  { %6110 = vmatprep.subr.bf16.mxu0 %v6109_v23 }
0x4caf   :  { %v4694_v59 = vld [vmem:[#allocation3 + $0x10] sm:$0xff] }
0x4d7b   :  { %v4311_v27 = vpop.f32.mrb[58].mxu0 }
0x4d7c   :  { %v4315_v48 = vadd.f32 %v4311_v27, %v4242_v61  ;;  %v5645_v17 = vpop.f32.mrb[59].mxu0  ;;  %v4448_v27 = vld [vmem:[#allocation4 + $0x1c] sm:$0x3] }
0x4d7e   :  { %6362 = vtanh.f32 %v4315_v48  ;;  %v5045_v2 = vmul.f32 -1.442695, %v4315_v48 }
0x4d80   :  { %6364 = vpow2.f32 %v5045_v2 }
0x4d88   :  { %v6363_v63 = vpop.eup %6362 }
0x4d89   :  { %4325 = vrot.lane.b32.xlu0 %v6363_v63, %s6534_s24 }
0x4d8a   :  { %v6365_v3 = vpop.eup %6364 }
0x4d8b   :  { %v4319_v4 = vadd.f32 1.0, %v6365_v3 }
0x4d8d   :  { %6366 = vrcp.f32 %v4319_v4 }
0x4d97   :  { %v6367_v52 = vpop.eup %6366 }
0x4d98   :  { %v4323_v8 = vmul.f32 %v6367_v52, %v4230_v54  ;;  %v4682_v54 = vadd.s32 %v4678_v1, %v4667_v49 }
0x4d9a   :  { %vm4690_vm15 = vcmp.lt.s32.totalorder %v4686_v56, %v4682_v54 }
0x4d9b   :  { %v4698_v61 = vsel %vm4690_vm15, %v4694_v59, 0.0 }
0x4dfb   :  { %v4326_v6 = vpop.permute.xlu0 %4325 }
0x4dfc   :  { %v4328_v7 = vmul.f32 %v6367_v52, %v4326_v6 }
0x4dfe   :  { %4330 = vrot.lane.b32.xlu1 %v4328_v7, %s6535_s1 }
0x4e70   :  { %v4331_v9 = vpop.permute.xlu1 %4330 }
0x4e71   :  { %v4333_v36 = vadd.f32 %v4331_v9, %v4323_v8 }
0x4e73   :  { %6368 = vtanh.f32 %v4333_v36 }
0x4e7d   :  { %v6369_v10 = vpop.eup %6368 }
0x4e7e   :  { %4336 = vrot.lane.b32.xlu0 %v6369_v10, %s6534_s24 }
0x4ef0   :  { %v4337_v11 = vpop.permute.xlu0 %4336 }
0x4ef1   :  { %v4339_v12 = vmul.f32 %v6367_v52, %v4337_v11 }
0x4ef3   :  { %4341 = vrot.lane.b32.xlu1 %v4339_v12, %s6535_s1 }
0x4f65   :  { %v4342_v14 = vpop.permute.xlu1 %4341 }
0x4f66   :  { %4344 = vst.msk [vmem:[#allocation3 + $0x18] sm:$0x3] %vm1338_vm6, %v4342_v14  ;;  %5655 = vmatmul.mubr.msk.f32.vlgmr.msra.gmra.mrb[62].mxu1 %vm1110_vm5, %v4342_v14  ;;  %v4812_v14 = vld [vmem:[#allocation13] sm:$0xff] }
0x4f67   :  { %6105 = vmatpush3.bf16.msra.mxu1 %v7340_v55  ;;  %5676 = vmatprep.mubr.msk.f32.mxu1 %vm6532_vm4, %v6533_v57 }
0x4f68   :  { %6106 = vmatprep.subr.bf16.mxu1 %v6531_v0 }
0x4f6b   :  { %6108 = vmatpush3.bf16.msra.mxu1 %v7350_v58 }
0x5039   :  { %v4414_v15 = vpop.f32.mrb[62].mxu1 }
0x503a   :  { %v4418_v16 = vadd.f32 %v4414_v15, %v4345_v40  ;;  %v5656_v18 = vpop.f32.mrb[63].mxu1  ;;  %v4813_v40 = vld [vmem:[#allocation13 + $0x8] sm:$0xff] }
0x503b   :  { %v6117_v15 = vpack.c.bf16 %v4813_v40, %v4812_v14 }
0x503c   :  { %6370 = vtanh.f32 %v4418_v16  ;;  %v5047_v19 = vmul.f32 -1.442695, %v4418_v16 }
0x503d   :  { %6118 = vmatprep.subr.bf16.mxu1 %v6117_v15 }
0x503e   :  { %6372 = vpow2.f32 %v5047_v19  ;;  %v7583_v19 = vld [vmem:[%s7640_s13] ss:$0 sm:$0xff] }
0x5046   :  { %v6371_v42 = vpop.eup %6370 }
0x5047   :  { %4428 = vrot.lane.b32.xlu0 %v6371_v42, %s6534_s24 }
0x5048   :  { %v6373_v20 = vpop.eup %6372 }
0x5049   :  { %v4422_v28 = vadd.f32 1.0, %v6373_v20 }
0x504b   :  { %6374 = vrcp.f32 %v4422_v28  ;;  %v4814_v28 = vld [vmem:[#allocation13 + $0x10] sm:$0xff] }
0x5055   :  { %v6375_v55 = vpop.eup %6374 }
0x5056   :  { %v4426_v0 = vmul.f32 %v6375_v55, %v4333_v36 }
0x50b9   :  { %v4429_v21 = vpop.permute.xlu0 %4428 }
0x50ba   :  { %v4431_v57 = vmul.f32 %v6375_v55, %v4429_v21 }
0x50bc   :  { %4433 = vrot.lane.b32.xlu1 %v4431_v57, %s6535_s1 }
0x512e   :  { %v4434_v58 = vpop.permute.xlu1 %4433 }
0x512f   :  { %v7537_v38 = vadd.f32 %v4434_v58, %v4426_v0 }
0x5131   :  { %6376 = vtanh.f32 %v7537_v38 }
0x513b   :  { %v6377_v5 = vpop.eup %6376 }
0x513c   :  { %4439 = vrot.lane.b32.xlu0 %v6377_v5, %s6534_s24 }
0x51ae   :  { %v4440_v62 = vpop.permute.xlu0 %4439 }
0x51af   :  { %v4442_v24 = vmul.f32 %v6375_v55, %v4440_v62  ;;  %v4815_v55 = vld [vmem:[#allocation13 + $0x18] sm:$0xff] }
0x51b0   :  { %v6121_v21 = vpack.c.bf16 %v4815_v55, %v4814_v28  ;;  %v5058_v62 = vld [vmem:[%s7641_s14] ss:$0 sm:$0xff] }
0x51b1   :  { %4444 = vrot.lane.b32.xlu1 %v4442_v24, %s6535_s1 }
0x5223   :  { %v4445_v50 = vpop.permute.xlu1 %4444 }
0x5224   :  { %4447 = vst.msk [vmem:[#allocation3 + $0x1a] sm:$0x3] %vm1338_vm6, %v4445_v50  ;;  %5666 = vmatmul.mubr.msk.f32.vlgmr.msra.gmra.mrb[60].mxu0 %vm1110_vm5, %v4445_v50 }
0x5225   :  { %6112 = vmatpush3.bf16.msra.mxu0 %v6109_v23  ;;  %5687 = vmatprep.mubr.msk.f32.mxu0 %vm1110_vm5, %v4696_v51  ;;  %v4658_v51 = vld [vmem:[%s7637_s10 + $0x18] sm:$0xff]  ;;  %s6536_s10 = smov [#allocation15]  }
0x5226   :  { %6114 = vmatprep.subr.bf16.mxu0 %v6113_v47  ;;  %vm4662_vm0 = vcmp.eq.s32.totalorder %v4658_v51, 0  ;;  %vm4672_vm1 = vcmp.eq.s32.totalorder %v4658_v51, 1 }
0x5227   :  { %v4668_v31 = vsel %vm4662_vm0, %v7545_v26, 0  ;;  %v4679_v53 = vsel %vm4672_vm1, %v7547_v29, 0 }
0x5228   :  { %v4683_v56 = vadd.s32 %v4679_v53, %v4668_v31 }
0x5229   :  { %6116 = vmatpush3.bf16.msra.mxu0 %v6113_v47 }
0x522a   :  { %vm4691_vm2 = vcmp.lt.s32.totalorder %v4687_v13, %v4683_v56 }
0x522c   :  { %5688 = vmatmul.mubr.msk.f32.vlgmr.msra.gmra.mrb[62].mxu0 %vm1110_vm5, %v4697_v60 }
0x522d   :  { %5690 = vmatprep.mubr.msk.f32.mxu0 %vm1110_vm5, %v4698_v61 }
0x52f7   :  { %v4517_v48 = vpop.f32.mrb[60].mxu0 }
0x52f8   :  { %v4521_v17 = vadd.f32 %v4517_v48, %v4448_v27  ;;  %v5667_v63 = vpop.f32.mrb[61].mxu0 }
0x52fa   :  { %6378 = vtanh.f32 %v4521_v17  ;;  %v5049_v52 = vmul.f32 -1.442695, %v4521_v17 }
0x52fc   :  { %6380 = vpow2.f32 %v5049_v52 }
0x52ff   :  { %v5689_v2 = vpop.f32.mrb[62].mxu0 }
0x5300   :  { %v4789_v3 = vpop.f32.mrb[63].mxu0  ;;  %v4795_v58 = vadd.f32 %v5689_v2, %v7583_v19 }
0x5301   :  { %v4790_v20 = vadd.f32 %v7583_v19, %v4789_v3 }
0x5303   :  { %v4808_v57 = vmax.f32 %v4790_v20, 0.0 }
0x5304   :  { %v6379_v4 = vpop.eup %6378 }
0x5305   :  { %4531 = vrot.lane.b32.xlu0 %v6379_v4, %s6534_s24 }
0x5306   :  { %v6381_v6 = vpop.eup %6380 }
0x5307   :  { %v4525_v7 = vadd.f32 1.0, %v6381_v6 }
0x5309   :  { %6382 = vrcp.f32 %v4525_v7 }
0x5313   :  { %v6383_v8 = vpop.eup %6382 }
0x5314   :  { %v4529_v10 = vmul.f32 %v6383_v8, %v7537_v38  ;;  %v4809_v38 = vmax.f32 %v4795_v58, 0.0 }
0x5377   :  { %v4532_v9 = vpop.permute.xlu0 %4531 }
0x5378   :  { %v4534_v36 = vmul.f32 %v6383_v8, %v4532_v9 }
0x537a   :  { %4536 = vrot.lane.b32.xlu1 %v4534_v36, %s6535_s1 }
0x53ec   :  { %v4537_v11 = vpop.permute.xlu1 %4536 }
0x53ed   :  { %v4539_v12 = vadd.f32 %v4537_v11, %v4529_v10 }
0x53ef   :  { %6384 = vtanh.f32 %v4539_v12 }
0x53f9   :  { %v6385_v16 = vpop.eup %6384 }
0x53fa   :  { %4542 = vrot.lane.b32.xlu0 %v6385_v16, %s6534_s24 }
0x546c   :  { %v4543_v18 = vpop.permute.xlu0 %4542 }
0x546d   :  { %v4545_v42 = vmul.f32 %v6383_v8, %v4543_v18 }
0x546f   :  { %4547 = vrot.lane.b32.xlu1 %v4545_v42, %s6535_s1 }
0x54e1   :  { %v4548_v0 = vpop.permute.xlu1 %4547 }
0x54e2   :  { %4550 = vst.msk [vmem:[#allocation3 + $0x1c] sm:$0x3] %vm1338_vm6, %v4548_v0  ;;  %5677 = vmatmul.mubr.msk.f32.vlgmr.msra.gmra.mrb[64].mxu1 %vm1110_vm5, %v4548_v0 }
0x54e3   :  { %6120 = vmatpush3.bf16.msra.mxu1 %v6117_v15  ;;  %5701 = vmatprep.mubr.msk.f32.mxu1 %vm1110_vm5, %v4808_v57 }
0x54e4   :  { %6122 = vmatprep.subr.bf16.mxu1 %v6121_v21 }
0x54e7   :  { %6124 = vmatpush3.bf16.msra.mxu1 %v6121_v21 }
0x54ea   :  { %5702 = vmatmul.mubr.msk.f32.vlgmr.msra.gmra.mrb[66].mxu1 %vm1110_vm5, %v4809_v38 }
0x55b5   :  { %v4620_v46 = vpop.f32.mrb[64].mxu1 }
0x55b6   :  { %v4624_v23 = vadd.f32 %v4620_v46, %v4551_v22  ;;  %v5678_v5 = vpop.f32.mrb[65].mxu1 }
0x55b8   :  { %6386 = vtanh.f32 %v4624_v23  ;;  %v5051_v34 = vmul.f32 -1.442695, %v4624_v23 }
0x55ba   :  { %6388 = vpow2.f32 %v5051_v34 }
0x55bd   :  { %v5703_v24 = vpop.f32.mrb[66].mxu1 }
0x55be   :  { %v4907_v25 = vadd.f32 %v5703_v24, %v5058_v62  ;;  %v4901_v30 = vpop.f32.mrb[67].mxu1 }
0x55bf   :  { %v4902_v32 = vadd.f32 %v5058_v62, %v4901_v30 }
0x55c0   :  { %4921 = vst [vmem:[#allocation15 + $0x8] sm:$0xff] %v4907_v25 }
0x55c1   :  { %4920 = vst [vmem:[#allocation15] sm:$0xff] %v4902_v32 }
0x55c2   :  { %v6387_v33 = vpop.eup %6386 }
0x55c3   :  { %4634 = vrot.lane.b32.xlu0 %v6387_v33, %s6534_s24 }
0x55c4   :  { %v6389_v35 = vpop.eup %6388 }
0x55c5   :  { %v4628_v37 = vadd.f32 1.0, %v6389_v35 }
0x55c7   :  { %6390 = vrcp.f32 %v4628_v37 }
0x55d1   :  { %v6391_v39 = vpop.eup %6390 }
0x55d2   :  { %v4632_v44 = vmul.f32 %v6391_v39, %v4539_v12 }
0x5635   :  { %v4635_v41 = vpop.permute.xlu0 %4634 }
0x5636   :  { %v4637_v43 = vmul.f32 %v6391_v39, %v4635_v41 }
0x5638   :  { %4639 = vrot.lane.b32.xlu1 %v4637_v43, %s6535_s1 }
0x56aa   :  { %v4640_v45 = vpop.permute.xlu1 %4639 }
0x56ab   :  { %v4642_v47 = vadd.f32 %v4640_v45, %v4632_v44 }
0x56ad   :  { %6392 = vtanh.f32 %v4642_v47 }
0x56b7   :  { %v6393_v49 = vpop.eup %6392 }
0x56b8   :  { %4645 = vrot.lane.b32.xlu0 %v6393_v49, %s6534_s24 }
0x572a   :  { %v4646_v1 = vpop.permute.xlu0 %4645 }
0x572b   :  { %v4648_v50 = vmul.f32 %v6391_v39, %v4646_v1 }
0x572d   :  { %4650 = vrot.lane.b32.xlu1 %v4648_v50, %s6535_s1  ;;  %s4929_s1 = sshll.u32 %s6536_s10, 4  ;;  %s4930_s1 = int_to_ptr.vmem [resolvable:$true] %s4929_s1 }
0x572e   :  { %s6492_s9 = scalar_lea.vmem %s4930_s1, 512  ;;  %p6497_p8 = scmp.lt.s32.totalorder %s4930_s1, %s4930_s1 }
0x572f   :  { %p6493_p7 = scmp.ne.s32.totalorder %s4930_s1, %s6492_s9  ;;  %p6498_p9 = scmp.lt.s32.totalorder %s6492_s9, %s6492_s9 }
0x5731   :  { %p6499_p10 = por %p6498_p9, %p6497_p8 }
0x5733   :  { %p6500_p11 = pnand %p6499_p10, %p6493_p7 }
0x579f   :  { %v4651_v54 = vpop.permute.xlu1 %4650 }
0x57a0   :  { %4653 = vst.msk [vmem:[#allocation3 + $0x1e] sm:$0x3] %vm1338_vm6, %v4651_v54 }
0x57a7   :  { %v4695_v59 = vld [vmem:[#allocation3 + $0x18] sm:$0xff] }
0x57a8   :  { %v4699_v60 = vsel %vm4691_vm2, %v4695_v59, 0.0 }
0x57a9   :  { %5691 = vmatmul.mubr.msk.f32.gmra.mrb[64].mxu0 %vm1110_vm5, %v4699_v60 }
0x587c   :  { %v5692_v61 = vpop.f32.mrb[64].mxu0 }
0x587d   :  { %v4805_v27 = vadd.f32 %v5692_v61, %v7583_v19  ;;  %v4799_v48 = vpop.f32.mrb[65].mxu0 }
0x587e   :  { %v4800_v26 = vadd.f32 %v7583_v19, %v4799_v48 }
0x587f   :  { %v4811_v17 = vmax.f32 %v4805_v27, 0.0 }
0x5880   :  { %v4810_v29 = vmax.f32 %v4800_v26, 0.0 }
0x5882   :  { %5704 = vmatprep.mubr.msk.f32.mxu1 %vm1110_vm5, %v4810_v29 }
0x5883   :  { %5705 = vmatmul.mubr.msk.f32.gmra.mrb[68].mxu1 %vm1110_vm5, %v4811_v17 }
0x5956   :  { %v5706_v63 = vpop.f32.mrb[68].mxu1 }
0x5957   :  { %v4917_v2 = vadd.f32 %v5706_v63, %v5058_v62  ;;  %v4911_v3 = vpop.f32.mrb[69].mxu1 }
0x5958   :  { %v4912_v4 = vadd.f32 %v5058_v62, %v4911_v3 }
0x5959   :  { %4923 = vst [vmem:[#allocation15 + $0x18] sm:$0xff] %v4917_v2 }
0x595a   :  { %4922 = vst [vmem:[#allocation15 + $0x10] sm:$0xff] %v4912_v4 }
0x595b   :  { %6503 = shalt.err (!%p6500_p11)
}
0x595c   :  { %s6504_s30 = scalar_lea.hbm %s7642_s15, 512 }
0x595d   :  { %p6505_p12 = scmp.ne.s32.totalorder %s7642_s15, %s6504_s30  ;;  %p6508_p13 = scmp.lt.u32.totalorder %s6504_s30, %s7642_s15 }
0x595f   :  { %p6510_p0 = pnand %p6508_p13, %p6505_p12 }
0x5961   :  { %6513 = shalt.err (!%p6510_p0)
}
0x5962   :  { %4935 = dma.vmem_to_hbm [thread:$0]  %s4930_s1, 512, %s7642_s15, [#allocation9], %s6527_s5, %s6527_s5, %s6528_s29  }
0x5963   :  { %6522 = dma.done.wait [#allocation9], 512  }
0x5964   :  { %6523 = vsyncadd [#allocation9], 4294966784 }
0x5965   :  { %4939 = vsyncpa [#allocation8], 1 }
0x5966   :  { %4940 = vsyncpa [#allocation11], 1 }
0x5967   :  { %4941 = vsyncpa [#allocation14], 1 }
0x5968   :  { %4942 = vsyncpa [#allocation9], 1 }

</bundles_post_ra>
